<compile_context>
chip_gen: v7x
topology: tpu7x:2x2x1
jax: 0.10.0
libtpu: 0.0.40
codegen_flags: <defaults>
</compile_context>

<pallas_src>
import functools

import jax
import jax.numpy as jnp
from jax.experimental import pallas as pl
from jax.experimental.pallas import tpu as pltpu


CIN_PAD = 16  # stem conv input channels zero-padded 3 -> 16 (see init_resnet2_params)


# ----------------------------------------------------------------------------
# Pallas kernels
# ----------------------------------------------------------------------------
def _matmul_bias_act_kernel(a_ref, b_ref, bias_ref, o_ref, *, relu):
    """o = act(A @ B + bias); BN scale is pre-folded into B's columns."""
    acc = jnp.dot(a_ref[...], b_ref[...], preferred_element_type=jnp.float32)
    out = acc + bias_ref[...]
    if relu:
        out = jnp.maximum(out, 0.0)
    o_ref[...] = out.astype(o_ref.dtype)


def _matmul_bias_res_relu_kernel(a_ref, b_ref, bias_ref, res_ref, o_ref):
    """o = relu(A @ B + bias + residual): conv2 + BN2 + shortcut add + ReLU."""
    acc = jnp.dot(a_ref[...], b_ref[...], preferred_element_type=jnp.float32)
    out = acc + bias_ref[...] + res_ref[...].astype(jnp.float32)
    o_ref[...] = jnp.maximum(out, 0.0).astype(o_ref.dtype)


def _matmul_dual_out_kernel(a_ref, b_ref, bias_ref, main_ref, sc_ref, *, n_main):
    """One matmul, two outputs (down-sampling block entry):
       main = relu(conv1 3x3 + BN1), sc = shortcut 1x1 conv + BN (no ReLU).
    The weight columns are [conv1 | shortcut]; the shortcut's 1x1 weight lives
    only in the centre-tap rows of the shared im2col contraction axis."""
    acc = jnp.dot(a_ref[...], b_ref[...], preferred_element_type=jnp.float32)
    acc = acc + bias_ref[...]
    main_ref[...] = jnp.maximum(acc[:, :n_main], 0.0).astype(main_ref.dtype)
    sc_ref[...] = acc[:, n_main:].astype(sc_ref.dtype)


def _tile_m(M):
    return 256 if (M % 256 == 0 and M > 256) else M


def matmul_bias_act(a, b, bias, residual=None, relu=False, out_dtype=jnp.bfloat16):
    """out[m, n] = act(sum_k a[m,k] b[k,n] + bias[n] (+ residual[m,n])).

    a: [M, K] bf16 im2col patches, b: [K, N] bf16 BN-scale-folded weights,
    bias: [1, N] f32, residual: optional [M, N] bf16.
    K and N are small at this model size, so they stay untiled (full-extent
    blocks => no alignment padding needed). M is tiled at 256 when possible so
    the LHS fills the 256-wide MXU and the grid can spread across cores.
    """
    M, K = a.shape
    K2, N = b.shape
    assert K == K2 and bias.shape == (1, N)

    TM = _tile_m(M)
    grid = (M // TM,)

    in_specs = [
        pl.BlockSpec((TM, K), lambda i: (i, 0)),
        pl.BlockSpec((K, N), lambda i: (0, 0)),
        pl.BlockSpec((1, N), lambda i: (0, 0)),
    ]
    args = [a, b, bias]
    if residual is not None:
        assert residual.shape == (M, N)
        in_specs.append(pl.BlockSpec((TM, N), lambda i: (i, 0)))
        args.append(residual)
        kernel = _matmul_bias_res_relu_kernel
    else:
        kernel = functools.partial(_matmul_bias_act_kernel, relu=relu)

    return pl.pallas_call(
        kernel,
        out_shape=jax.ShapeDtypeStruct((M, N), out_dtype),
        grid_spec=pltpu.PrefetchScalarGridSpec(
            num_scalar_prefetch=0,
            grid=grid,
            in_specs=in_specs,
            out_specs=pl.BlockSpec((TM, N), lambda i: (i, 0)),
        ),
        compiler_params=pltpu.CompilerParams(
            dimension_semantics=("parallel",)),
    )(*args)


def matmul_dual(a, b, bias, n_main, out_dtype=jnp.bfloat16):
    """Fused conv1(3x3, stride) + BN1 + ReLU  AND  shortcut 1x1 conv + BN.

    a: [M, K] shared im2col patches, b: [K, n_main + n_sc] concatenated folded
    weights, bias: [1, n_main + n_sc]. Returns (main [M, n_main], sc [M, n_sc]).
    """
    M, K = a.shape
    K2, N = b.shape
    assert K == K2 and bias.shape == (1, N) and 0 < n_main < N
    n_sc = N - n_main

    TM = _tile_m(M)
    grid = (M // TM,)

    return pl.pallas_call(
        functools.partial(_matmul_dual_out_kernel, n_main=n_main),
        out_shape=(jax.ShapeDtypeStruct((M, n_main), out_dtype),
                   jax.ShapeDtypeStruct((M, n_sc), out_dtype)),
        grid_spec=pltpu.PrefetchScalarGridSpec(
            num_scalar_prefetch=0,
            grid=grid,
            in_specs=[
                pl.BlockSpec((TM, K), lambda i: (i, 0)),
                pl.BlockSpec((K, N), lambda i: (0, 0)),
                pl.BlockSpec((1, N), lambda i: (0, 0)),
            ],
            out_specs=[
                pl.BlockSpec((TM, n_main), lambda i: (i, 0)),
                pl.BlockSpec((TM, n_sc), lambda i: (i, 0)),
            ],
        ),
        compiler_params=pltpu.CompilerParams(
            dimension_semantics=("parallel",)),
    )(a, b, bias)


def _pool_fc_kernel(x_ref, w_ref, b_ref, o_ref):
    """Fused global average pool (over the flattened spatial axis) + Linear head."""
    feat = jnp.mean(x_ref[...].astype(jnp.float32), axis=1)          # [N, C]
    o_ref[...] = (jnp.dot(feat.astype(jnp.bfloat16), w_ref[...],
                          preferred_element_type=jnp.float32) + b_ref[...])


def avgpool_fc(x_nhwc, w_fc, b_fc):
    n, h, w, c = x_nhwc.shape
    x = x_nhwc.reshape(n, h * w, c)
    return pl.pallas_call(
        _pool_fc_kernel,
        out_shape=jax.ShapeDtypeStruct((n, w_fc.shape[1]), jnp.float32),
    )(x, w_fc, b_fc)


# ----------------------------------------------------------------------------
# Conv = im2col (bf16 glue) + Pallas matmul with fused BN/residual/ReLU epilogue
# ----------------------------------------------------------------------------
def _im2col(x, k, stride, pad):
    n, h, w, c = x.shape
    if pad:
        x = jnp.pad(x, ((0, 0), (pad, pad), (pad, pad), (0, 0)))
    ho = (h + 2 * pad - k) // stride + 1
    wo = (w + 2 * pad - k) // stride + 1
    taps = []
    for i in range(k):
        for j in range(k):
            taps.append(x[:, i:i + (ho - 1) * stride + 1:stride,
                          j:j + (wo - 1) * stride + 1:stride, :])
    patches = jnp.concatenate(taps, axis=-1)          # [n, ho, wo, k*k*c]
    return patches.reshape(n * ho * wo, k * k * c), ho, wo


def conv_bn_act(x_nhwc, layer, k, stride, pad, relu, residual=None):
    n = x_nhwc.shape[0]
    cout = layer["w"].shape[1]
    a, ho, wo = _im2col(x_nhwc, k, stride, pad)
    res = None if residual is None else residual.reshape(-1, cout)
    y = matmul_bias_act(a, layer["w"], layer["b"], residual=res, relu=relu)
    return y.reshape(n, ho, wo, cout)


# ----------------------------------------------------------------------------
# Deterministic synthetic parameters, with all weight-side work hoisted to init
# ----------------------------------------------------------------------------
def _fold_conv_bn(key, cin, cout, k, cin_pad=None):
    """Kaiming conv weight + synthetic BN stats, folded (eval mode) into a
    bf16 [k*k*cin, cout] matmul operand (BN scale folded into columns) and an
    f32 [1, cout] bias row."""
    kw, k1, k2, k3, k4 = jax.random.split(key, 5)
    fan_in = cin * k * k
    w = jax.random.normal(kw, (cout, cin, k, k), jnp.float32) * (2.0 / fan_in) ** 0.5
    gamma = 1.0 + 0.1 * jax.random.normal(k1, (cout,), jnp.float32)
    beta = 0.1 * jax.random.normal(k2, (cout,), jnp.float32)
    mean = 0.1 * jax.random.normal(k3, (cout,), jnp.float32)
    var = jax.random.uniform(k4, (cout,), jnp.float32, minval=0.5, maxval=1.5)
    scale = gamma / jnp.sqrt(var + 1e-5)
    bias = (beta - mean * scale).reshape(1, cout)
    if cin_pad is not None and cin_pad > cin:
        w = jnp.pad(w, ((0, 0), (0, cin_pad - cin), (0, 0), (0, 0)))
        cin = cin_pad
    # PyTorch OIHW -> (kh, kw, cin, cout), flatten to [k*k*cin, cout]; fold scale.
    w_mat = jnp.transpose(w, (2, 3, 1, 0)).reshape(k * k * cin, cout)
    w_mat = (w_mat * scale[None, :]).astype(jnp.bfloat16)
    return {"w": w_mat, "b": bias}


def init_resnet2_params(key, num_blocks=(2, 2, 2), kernel_size=3, num_classes=10):
    keys = iter(jax.random.split(key, 4 + 3 * sum(num_blocks)))
    params = {
        # conv1 = Conv2d(3, 16, k, stride=1, padding=1, bias=False). Its cin is
        # zero-padded 3 -> CIN_PAD (matching a channel-padded input) so the
        # im2col contraction dim is 9*16 = 144, identical to the layer1 convs.
        "conv1": _fold_conv_bn(next(keys), 3, 16, kernel_size, cin_pad=CIN_PAD),
    }
    blocks, strides = [], []
    in_planes = 16
    for planes, nb, stage_stride in zip((16, 32, 64), num_blocks, (1, 2, 2)):
        for bi in range(nb):
            stride = stage_stride if bi == 0 else 1
            blk = {
                "conv1": _fold_conv_bn(next(keys), in_planes, planes, kernel_size),
                "conv2": _fold_conv_bn(next(keys), planes, planes, kernel_size),
            }
            if stride != 1 or in_planes != planes:
                blk["down"] = _fold_conv_bn(next(keys), in_planes, planes, 1)
                if kernel_size == 3:
                    # Fuse conv1(3x3) and the 1x1 shortcut into one matmul:
                    # embed the 1x1 folded weight into the centre-tap rows of
                    # the shared [k*k*cin, .] contraction axis, concat columns.
                    kk = kernel_size * kernel_size
                    center = (kernel_size // 2) * kernel_size + (kernel_size // 2)
                    wd_full = jnp.zeros((kk * in_planes, planes), jnp.bfloat16)
                    wd_full = wd_full.at[center * in_planes:(center + 1) * in_planes, :
                                         ].set(blk["down"]["w"])
                    blk["fused_w"] = jnp.concatenate([blk["conv1"]["w"], wd_full], axis=1)
                    blk["fused_b"] = jnp.concatenate([blk["conv1"]["b"], blk["down"]["b"]],
                                                     axis=1)
            blocks.append(blk)
            strides.append(stride)
            in_planes = planes
    params["blocks"] = blocks
    # linear = Linear(64, num_classes); stored pre-transposed [64, nc] in bf16.
    w_fc = jax.random.normal(next(keys), (num_classes, 64), jnp.float32) * (2.0 / 64.0) ** 0.5
    params["fc_w"] = w_fc.T.astype(jnp.bfloat16)
    params["fc_b"] = 0.01 * jax.random.normal(next(keys), (1, num_classes), jnp.float32)
    return params, tuple(strides)


# ----------------------------------------------------------------------------
# Forward pass
# ----------------------------------------------------------------------------
def resnet2_forward(params, x_nchw, *, kernel_size, block_strides):
    # NCHW f32 (PyTorch) -> NHWC bf16; pad channels 3 -> CIN_PAD once (tiny).
    x = jnp.transpose(x_nchw, (0, 2, 3, 1)).astype(jnp.bfloat16)
    x = jnp.pad(x, ((0, 0), (0, 0), (0, 0), (0, CIN_PAD - x.shape[-1])))

    # conv1 + bn1 + relu
    x = conv_bn_act(x, params["conv1"], kernel_size, stride=1, pad=1, relu=True)

    for blk, stride in zip(params["blocks"], block_strides):
        n = x.shape[0]
        if "fused_w" in blk:
            # Down-sampling block: one dual-output matmul computes both
            # relu(BN1(conv1_3x3(x))) and the BN'd 1x1-conv shortcut.
            planes = blk["conv1"]["w"].shape[1]
            a, ho, wo = _im2col(x, kernel_size, stride, 1)
            out_flat, identity = matmul_dual(a, blk["fused_w"], blk["fused_b"], planes)
            out = out_flat.reshape(n, ho, wo, planes)
        else:
            identity = x
            out = conv_bn_act(x, blk["conv1"], kernel_size, stride, pad=1, relu=True)
            if "down" in blk:   # generic fallback (kernel_size != 3)
                identity = conv_bn_act(x, blk["down"], 1, stride, pad=0, relu=False)
        # conv2 + bn2 + residual add + relu, fused into one kernel epilogue.
        x = conv_bn_act(out, blk["conv2"], kernel_size, 1, pad=1, relu=True,
                        residual=identity)

    # F.avg_pool2d over the full spatial extent + Linear(64, num_classes), fused.
    return avgpool_fc(x, params["fc_w"], params["fc_b"])


if __name__ == "__main__":
    key = jax.random.PRNGKey(0)
    pkey, xkey = jax.random.split(key)
    num_blocks, kernel_size, num_classes = (2, 2, 2), 3, 10
    params, block_strides = init_resnet2_params(
        pkey, num_blocks=num_blocks, kernel_size=kernel_size, num_classes=num_classes)
    x = jax.random.normal(xkey, (2, 3, 16, 16), jnp.float32)   # NCHW, like PyTorch

    fwd = jax.jit(functools.partial(resnet2_forward,
                                    kernel_size=kernel_size,
                                    block_strides=block_strides))
    logits = jax.block_until_ready(fwd(params, x))
    assert logits.shape == (2, num_classes)
    assert bool(jnp.all(jnp.isfinite(logits)))
    print("KERNEL_OK")
</pallas_src>

<mosaic_0001>
module attributes {stable_mosaic.version = 11 : i64} {
  func.func @_matmul_bias_act_kernel(%arg0: i32, %arg1: memref<256x144xbf16, #tpu.memory_space<vmem>>, %arg2: memref<144x16xbf16, #tpu.memory_space<vmem>>, %arg3: memref<1x16xf32, #tpu.memory_space<vmem>>, %arg4: memref<256x16xbf16, #tpu.memory_space<vmem>>) attributes {dimension_semantics = [#tpu.dimension_semantics<parallel>], iteration_bounds = array<i64: 2>, scalar_prefetch = 0 : i64, scratch_operands = 0 : i64, tpu.core_type = #tpu.core_type<tc>, window_params = [{transform_indices = @transform_0, window_bounds = array<i64: 256, 144>}, {pipeline_mode = #tpu.pipeline_mode<synchronous>, transform_indices = @transform_1, window_bounds = array<i64: 144, 16>}, {pipeline_mode = #tpu.pipeline_mode<synchronous>, transform_indices = @transform_2, window_bounds = array<i64: 1, 16>}, {transform_indices = @transform_3, window_bounds = array<i64: 256, 16>}]} {
    %c0 = arith.constant 0 : index
    %c0_0 = arith.constant 0 : index
    %0 = vector.load %arg1[%c0, %c0_0] : memref<256x144xbf16, #tpu.memory_space<vmem>>, vector<256x144xbf16>
    %c0_1 = arith.constant 0 : index
    %c0_2 = arith.constant 0 : index
    %1 = vector.load %arg2[%c0_1, %c0_2] : memref<144x16xbf16, #tpu.memory_space<vmem>>, vector<144x16xbf16>
    %cst = arith.constant dense<0.000000e+00> : vector<256x16xf32>
    %2 = tpu.matmul %0, %1, %cst {dimension_numbers = #tpu.dot_dimension_numbers<[1], [0], [0], [1], [0, 0, 1, 1], [], []>} : vector<256x144xbf16>, vector<144x16xbf16>, vector<256x16xf32> -> vector<256x16xf32>
    %c0_3 = arith.constant 0 : index
    %c0_4 = arith.constant 0 : index
    %3 = vector.load %arg3[%c0_3, %c0_4] : memref<1x16xf32, #tpu.memory_space<vmem>>, vector<1x16xf32>
    %4 = vector.broadcast %3 : vector<1x16xf32> to vector<256x16xf32>
    %5 = arith.addf %2, %4 : vector<256x16xf32>
    %cst_5 = arith.constant 0.000000e+00 : f32
    %6 = vector.broadcast %cst_5 : f32 to vector<256x16xf32>
    %7 = arith.maximumf %5, %6 : vector<256x16xf32>
    %8 = arith.truncf %7 : vector<256x16xf32> to vector<256x16xbf16>
    %c0_6 = arith.constant 0 : index
    %c0_7 = arith.constant 0 : index
    %9 = vector.load %arg4[%c0_6, %c0_7] : memref<256x16xbf16, #tpu.memory_space<vmem>>, vector<256x16xbf16>
    tpu.vector_store %arg4[%c0_6, %c0_7], %8 {strides = array<i32>} : memref<256x16xbf16, #tpu.memory_space<vmem>>, vector<256x16xbf16>,
    return
  }
  func.func @transform_0(%arg0: i32) -> (i32, i32) {
    %c0_i32 = arith.constant 0 : i32
    %c0_i32_0 = arith.constant 0 : i32
    return %arg0, %c0_i32 : i32, i32
  }
  func.func @transform_1(%arg0: i32) -> (i32, i32) {
    %c0_i32 = arith.constant 0 : i32
    %c0_i32_0 = arith.constant 0 : i32
    %c0_i32_1 = arith.constant 0 : i32
    return %c0_i32, %c0_i32_0 : i32, i32
  }
  func.func @transform_2(%arg0: i32) -> (i32, i32) {
    %c0_i32 = arith.constant 0 : i32
    %c0_i32_0 = arith.constant 0 : i32
    %c0_i32_1 = arith.constant 0 : i32
    return %c0_i32, %c0_i32_0 : i32, i32
  }
  func.func @transform_3(%arg0: i32) -> (i32, i32) {
    %c0_i32 = arith.constant 0 : i32
    %c0_i32_0 = arith.constant 0 : i32
    return %arg0, %c0_i32 : i32, i32
  }
}

module attributes {stable_mosaic.version = 11 : i64} {
  func.func @_matmul_bias_res_relu_kernel(%arg0: i32, %arg1: memref<256x144xbf16, #tpu.memory_space<vmem>>, %arg2: memref<144x16xbf16, #tpu.memory_space<vmem>>, %arg3: memref<1x16xf32, #tpu.memory_space<vmem>>, %arg4: memref<256x16xbf16, #tpu.memory_space<vmem>>, %arg5: memref<256x16xbf16, #tpu.memory_space<vmem>>) attributes {dimension_semantics = [#tpu.dimension_semantics<parallel>], iteration_bounds = array<i64: 2>, scalar_prefetch = 0 : i64, scratch_operands = 0 : i64, tpu.core_type = #tpu.core_type<tc>, window_params = [{transform_indices = @transform_0, window_bounds = array<i64: 256, 144>}, {pipeline_mode = #tpu.pipeline_mode<synchronous>, transform_indices = @transform_1, window_bounds = array<i64: 144, 16>}, {pipeline_mode = #tpu.pipeline_mode<synchronous>, transform_indices = @transform_2, window_bounds = array<i64: 1, 16>}, {transform_indices = @transform_3, window_bounds = array<i64: 256, 16>}, {transform_indices = @transform_4, window_bounds = array<i64: 256, 16>}]} {
    %c0 = arith.constant 0 : index
    %c0_0 = arith.constant 0 : index
    %0 = vector.load %arg1[%c0, %c0_0] : memref<256x144xbf16, #tpu.memory_space<vmem>>, vector<256x144xbf16>
    %c0_1 = arith.constant 0 : index
    %c0_2 = arith.constant 0 : index
    %1 = vector.load %arg2[%c0_1, %c0_2] : memref<144x16xbf16, #tpu.memory_space<vmem>>, vector<144x16xbf16>
    %cst = arith.constant dense<0.000000e+00> : vector<256x16xf32>
    %2 = tpu.matmul %0, %1, %cst {dimension_numbers = #tpu.dot_dimension_numbers<[1], [0], [0], [1], [0, 0, 1, 1], [], []>} : vector<256x144xbf16>, vector<144x16xbf16>, vector<256x16xf32> -> vector<256x16xf32>
    %c0_3 = arith.constant 0 : index
    %c0_4 = arith.constant 0 : index
    %3 = vector.load %arg3[%c0_3, %c0_4] : memref<1x16xf32, #tpu.memory_space<vmem>>, vector<1x16xf32>
    %4 = vector.broadcast %3 : vector<1x16xf32> to vector<256x16xf32>
    %5 = arith.addf %2, %4 : vector<256x16xf32>
    %c0_5 = arith.constant 0 : index
    %c0_6 = arith.constant 0 : index
    %6 = vector.load %arg4[%c0_5, %c0_6] : memref<256x16xbf16, #tpu.memory_space<vmem>>, vector<256x16xbf16>
    %7 = arith.extf %6 : vector<256x16xbf16> to vector<256x16xf32>
    %8 = arith.addf %5, %7 : vector<256x16xf32>
    %cst_7 = arith.constant 0.000000e+00 : f32
    %9 = vector.broadcast %cst_7 : f32 to vector<256x16xf32>
    %10 = arith.maximumf %8, %9 : vector<256x16xf32>
    %11 = arith.truncf %10 : vector<256x16xf32> to vector<256x16xbf16>
    %c0_8 = arith.constant 0 : index
    %c0_9 = arith.constant 0 : index
    %12 = vector.load %arg5[%c0_8, %c0_9] : memref<256x16xbf16, #tpu.memory_space<vmem>>, vector<256x16xbf16>
    tpu.vector_store %arg5[%c0_8, %c0_9], %11 {strides = array<i32>} : memref<256x16xbf16, #tpu.memory_space<vmem>>, vector<256x16xbf16>,
    return
  }
  func.func @transform_0(%arg0: i32) -> (i32, i32) {
    %c0_i32 = arith.constant 0 : i32
    %c0_i32_0 = arith.constant 0 : i32
    return %arg0, %c0_i32 : i32, i32
  }
  func.func @transform_1(%arg0: i32) -> (i32, i32) {
    %c0_i32 = arith.constant 0 : i32
    %c0_i32_0 = arith.constant 0 : i32
    %c0_i32_1 = arith.constant 0 : i32
    return %c0_i32, %c0_i32_0 : i32, i32
  }
  func.func @transform_2(%arg0: i32) -> (i32, i32) {
    %c0_i32 = arith.constant 0 : i32
    %c0_i32_0 = arith.constant 0 : i32
    %c0_i32_1 = arith.constant 0 : i32
    return %c0_i32, %c0_i32_0 : i32, i32
  }
  func.func @transform_3(%arg0: i32) -> (i32, i32) {
    %c0_i32 = arith.constant 0 : i32
    %c0_i32_0 = arith.constant 0 : i32
    return %arg0, %c0_i32 : i32, i32
  }
  func.func @transform_4(%arg0: i32) -> (i32, i32) {
    %c0_i32 = arith.constant 0 : i32
    %c0_i32_0 = arith.constant 0 : i32
    return %arg0, %c0_i32 : i32, i32
  }
}

module attributes {stable_mosaic.version = 11 : i64} {
  func.func @_matmul_dual_out_kernel(%arg0: i32, %arg1: memref<128x144xbf16, #tpu.memory_space<vmem>>, %arg2: memref<144x64xbf16, #tpu.memory_space<vmem>>, %arg3: memref<1x64xf32, #tpu.memory_space<vmem>>, %arg4: memref<128x32xbf16, #tpu.memory_space<vmem>>, %arg5: memref<128x32xbf16, #tpu.memory_space<vmem>>) attributes {dimension_semantics = [#tpu.dimension_semantics<parallel>], iteration_bounds = array<i64: 1>, scalar_prefetch = 0 : i64, scratch_operands = 0 : i64, tpu.core_type = #tpu.core_type<tc>, window_params = [{transform_indices = @transform_0, window_bounds = array<i64: 128, 144>}, {pipeline_mode = #tpu.pipeline_mode<synchronous>, transform_indices = @transform_1, window_bounds = array<i64: 144, 64>}, {pipeline_mode = #tpu.pipeline_mode<synchronous>, transform_indices = @transform_2, window_bounds = array<i64: 1, 64>}, {transform_indices = @transform_3, window_bounds = array<i64: 128, 32>}, {transform_indices = @transform_4, window_bounds = array<i64: 128, 32>}]} {
    %c0 = arith.constant 0 : index
    %c0_0 = arith.constant 0 : index
    %0 = vector.load %arg1[%c0, %c0_0] : memref<128x144xbf16, #tpu.memory_space<vmem>>, vector<128x144xbf16>
    %c0_1 = arith.constant 0 : index
    %c0_2 = arith.constant 0 : index
    %1 = vector.load %arg2[%c0_1, %c0_2] : memref<144x64xbf16, #tpu.memory_space<vmem>>, vector<144x64xbf16>
    %cst = arith.constant dense<0.000000e+00> : vector<128x64xf32>
    %2 = tpu.matmul %0, %1, %cst {dimension_numbers = #tpu.dot_dimension_numbers<[1], [0], [0], [1], [0, 0, 1, 1], [], []>} : vector<128x144xbf16>, vector<144x64xbf16>, vector<128x64xf32> -> vector<128x64xf32>
    %c0_3 = arith.constant 0 : index
    %c0_4 = arith.constant 0 : index
    %3 = vector.load %arg3[%c0_3, %c0_4] : memref<1x64xf32, #tpu.memory_space<vmem>>, vector<1x64xf32>
    %4 = vector.broadcast %3 : vector<1x64xf32> to vector<128x64xf32>
    %5 = arith.addf %2, %4 : vector<128x64xf32>
    %6 = vector.extract_strided_slice %5 {offsets = [0, 0], sizes = [128, 32], strides = [1, 1]} : vector<128x64xf32> to vector<128x32xf32>
    %cst_5 = arith.constant 0.000000e+00 : f32
    %7 = vector.broadcast %cst_5 : f32 to vector<128x32xf32>
    %8 = arith.maximumf %6, %7 : vector<128x32xf32>
    %9 = arith.truncf %8 : vector<128x32xf32> to vector<128x32xbf16>
    %c0_6 = arith.constant 0 : index
    %c0_7 = arith.constant 0 : index
    %10 = vector.load %arg4[%c0_6, %c0_7] : memref<128x32xbf16, #tpu.memory_space<vmem>>, vector<128x32xbf16>
    tpu.vector_store %arg4[%c0_6, %c0_7], %9 {strides = array<i32>} : memref<128x32xbf16, #tpu.memory_space<vmem>>, vector<128x32xbf16>,
    %11 = vector.extract_strided_slice %5 {offsets = [0, 32], sizes = [128, 32], strides = [1, 1]} : vector<128x64xf32> to vector<128x32xf32>
    %12 = arith.truncf %11 : vector<128x32xf32> to vector<128x32xbf16>
    %c0_8 = arith.constant 0 : index
    %c0_9 = arith.constant 0 : index
    %13 = vector.load %arg5[%c0_8, %c0_9] : memref<128x32xbf16, #tpu.memory_space<vmem>>, vector<128x32xbf16>
    tpu.vector_store %arg5[%c0_8, %c0_9], %12 {strides = array<i32>} : memref<128x32xbf16, #tpu.memory_space<vmem>>, vector<128x32xbf16>,
    return
  }
  func.func @transform_0(%arg0: i32) -> (i32, i32) {
    %c0_i32 = arith.constant 0 : i32
    %c0_i32_0 = arith.constant 0 : i32
    return %arg0, %c0_i32 : i32, i32
  }
  func.func @transform_1(%arg0: i32) -> (i32, i32) {
    %c0_i32 = arith.constant 0 : i32
    %c0_i32_0 = arith.constant 0 : i32
    %c0_i32_1 = arith.constant 0 : i32
    return %c0_i32, %c0_i32_0 : i32, i32
  }
  func.func @transform_2(%arg0: i32) -> (i32, i32) {
    %c0_i32 = arith.constant 0 : i32
    %c0_i32_0 = arith.constant 0 : i32
    %c0_i32_1 = arith.constant 0 : i32
    return %c0_i32, %c0_i32_0 : i32, i32
  }
  func.func @transform_3(%arg0: i32) -> (i32, i32) {
    %c0_i32 = arith.constant 0 : i32
    %c0_i32_0 = arith.constant 0 : i32
    return %arg0, %c0_i32 : i32, i32
  }
  func.func @transform_4(%arg0: i32) -> (i32, i32) {
    %c0_i32 = arith.constant 0 : i32
    %c0_i32_0 = arith.constant 0 : i32
    return %arg0, %c0_i32 : i32, i32
  }
}

module attributes {stable_mosaic.version = 11 : i64} {
  func.func @_matmul_bias_res_relu_kernel(%arg0: i32, %arg1: memref<128x288xbf16, #tpu.memory_space<vmem>>, %arg2: memref<288x32xbf16, #tpu.memory_space<vmem>>, %arg3: memref<1x32xf32, #tpu.memory_space<vmem>>, %arg4: memref<128x32xbf16, #tpu.memory_space<vmem>>, %arg5: memref<128x32xbf16, #tpu.memory_space<vmem>>) attributes {dimension_semantics = [#tpu.dimension_semantics<parallel>], iteration_bounds = array<i64: 1>, scalar_prefetch = 0 : i64, scratch_operands = 0 : i64, tpu.core_type = #tpu.core_type<tc>, window_params = [{transform_indices = @transform_0, window_bounds = array<i64: 128, 288>}, {pipeline_mode = #tpu.pipeline_mode<synchronous>, transform_indices = @transform_1, window_bounds = array<i64: 288, 32>}, {pipeline_mode = #tpu.pipeline_mode<synchronous>, transform_indices = @transform_2, window_bounds = array<i64: 1, 32>}, {transform_indices = @transform_3, window_bounds = array<i64: 128, 32>}, {transform_indices = @transform_4, window_bounds = array<i64: 128, 32>}]} {
    %c0 = arith.constant 0 : index
    %c0_0 = arith.constant 0 : index
    %0 = vector.load %arg1[%c0, %c0_0] : memref<128x288xbf16, #tpu.memory_space<vmem>>, vector<128x288xbf16>
    %c0_1 = arith.constant 0 : index
    %c0_2 = arith.constant 0 : index
    %1 = vector.load %arg2[%c0_1, %c0_2] : memref<288x32xbf16, #tpu.memory_space<vmem>>, vector<288x32xbf16>
    %cst = arith.constant dense<0.000000e+00> : vector<128x32xf32>
    %2 = tpu.matmul %0, %1, %cst {dimension_numbers = #tpu.dot_dimension_numbers<[1], [0], [0], [1], [0, 0, 1, 1], [], []>} : vector<128x288xbf16>, vector<288x32xbf16>, vector<128x32xf32> -> vector<128x32xf32>
    %c0_3 = arith.constant 0 : index
    %c0_4 = arith.constant 0 : index
    %3 = vector.load %arg3[%c0_3, %c0_4] : memref<1x32xf32, #tpu.memory_space<vmem>>, vector<1x32xf32>
    %4 = vector.broadcast %3 : vector<1x32xf32> to vector<128x32xf32>
    %5 = arith.addf %2, %4 : vector<128x32xf32>
    %c0_5 = arith.constant 0 : index
    %c0_6 = arith.constant 0 : index
    %6 = vector.load %arg4[%c0_5, %c0_6] : memref<128x32xbf16, #tpu.memory_space<vmem>>, vector<128x32xbf16>
    %7 = arith.extf %6 : vector<128x32xbf16> to vector<128x32xf32>
    %8 = arith.addf %5, %7 : vector<128x32xf32>
    %cst_7 = arith.constant 0.000000e+00 : f32
    %9 = vector.broadcast %cst_7 : f32 to vector<128x32xf32>
    %10 = arith.maximumf %8, %9 : vector<128x32xf32>
    %11 = arith.truncf %10 : vector<128x32xf32> to vector<128x32xbf16>
    %c0_8 = arith.constant 0 : index
    %c0_9 = arith.constant 0 : index
    %12 = vector.load %arg5[%c0_8, %c0_9] : memref<128x32xbf16, #tpu.memory_space<vmem>>, vector<128x32xbf16>
    tpu.vector_store %arg5[%c0_8, %c0_9], %11 {strides = array<i32>} : memref<128x32xbf16, #tpu.memory_space<vmem>>, vector<128x32xbf16>,
    return
  }
  func.func @transform_0(%arg0: i32) -> (i32, i32) {
    %c0_i32 = arith.constant 0 : i32
    %c0_i32_0 = arith.constant 0 : i32
    return %arg0, %c0_i32 : i32, i32
  }
  func.func @transform_1(%arg0: i32) -> (i32, i32) {
    %c0_i32 = arith.constant 0 : i32
    %c0_i32_0 = arith.constant 0 : i32
    %c0_i32_1 = arith.constant 0 : i32
    return %c0_i32, %c0_i32_0 : i32, i32
  }
  func.func @transform_2(%arg0: i32) -> (i32, i32) {
    %c0_i32 = arith.constant 0 : i32
    %c0_i32_0 = arith.constant 0 : i32
    %c0_i32_1 = arith.constant 0 : i32
    return %c0_i32, %c0_i32_0 : i32, i32
  }
  func.func @transform_3(%arg0: i32) -> (i32, i32) {
    %c0_i32 = arith.constant 0 : i32
    %c0_i32_0 = arith.constant 0 : i32
    return %arg0, %c0_i32 : i32, i32
  }
  func.func @transform_4(%arg0: i32) -> (i32, i32) {
    %c0_i32 = arith.constant 0 : i32
    %c0_i32_0 = arith.constant 0 : i32
    return %arg0, %c0_i32 : i32, i32
  }
}

module attributes {stable_mosaic.version = 11 : i64} {
  func.func @_matmul_bias_act_kernel(%arg0: i32, %arg1: memref<128x288xbf16, #tpu.memory_space<vmem>>, %arg2: memref<288x32xbf16, #tpu.memory_space<vmem>>, %arg3: memref<1x32xf32, #tpu.memory_space<vmem>>, %arg4: memref<128x32xbf16, #tpu.memory_space<vmem>>) attributes {dimension_semantics = [#tpu.dimension_semantics<parallel>], iteration_bounds = array<i64: 1>, scalar_prefetch = 0 : i64, scratch_operands = 0 : i64, tpu.core_type = #tpu.core_type<tc>, window_params = [{transform_indices = @transform_0, window_bounds = array<i64: 128, 288>}, {pipeline_mode = #tpu.pipeline_mode<synchronous>, transform_indices = @transform_1, window_bounds = array<i64: 288, 32>}, {pipeline_mode = #tpu.pipeline_mode<synchronous>, transform_indices = @transform_2, window_bounds = array<i64: 1, 32>}, {transform_indices = @transform_3, window_bounds = array<i64: 128, 32>}]} {
    %c0 = arith.constant 0 : index
    %c0_0 = arith.constant 0 : index
    %0 = vector.load %arg1[%c0, %c0_0] : memref<128x288xbf16, #tpu.memory_space<vmem>>, vector<128x288xbf16>
    %c0_1 = arith.constant 0 : index
    %c0_2 = arith.constant 0 : index
    %1 = vector.load %arg2[%c0_1, %c0_2] : memref<288x32xbf16, #tpu.memory_space<vmem>>, vector<288x32xbf16>
    %cst = arith.constant dense<0.000000e+00> : vector<128x32xf32>
    %2 = tpu.matmul %0, %1, %cst {dimension_numbers = #tpu.dot_dimension_numbers<[1], [0], [0], [1], [0, 0, 1, 1], [], []>} : vector<128x288xbf16>, vector<288x32xbf16>, vector<128x32xf32> -> vector<128x32xf32>
    %c0_3 = arith.constant 0 : index
    %c0_4 = arith.constant 0 : index
    %3 = vector.load %arg3[%c0_3, %c0_4] : memref<1x32xf32, #tpu.memory_space<vmem>>, vector<1x32xf32>
    %4 = vector.broadcast %3 : vector<1x32xf32> to vector<128x32xf32>
    %5 = arith.addf %2, %4 : vector<128x32xf32>
    %cst_5 = arith.constant 0.000000e+00 : f32
    %6 = vector.broadcast %cst_5 : f32 to vector<128x32xf32>
    %7 = arith.maximumf %5, %6 : vector<128x32xf32>
    %8 = arith.truncf %7 : vector<128x32xf32> to vector<128x32xbf16>
    %c0_6 = arith.constant 0 : index
    %c0_7 = arith.constant 0 : index
    %9 = vector.load %arg4[%c0_6, %c0_7] : memref<128x32xbf16, #tpu.memory_space<vmem>>, vector<128x32xbf16>
    tpu.vector_store %arg4[%c0_6, %c0_7], %8 {strides = array<i32>} : memref<128x32xbf16, #tpu.memory_space<vmem>>, vector<128x32xbf16>,
    return
  }
  func.func @transform_0(%arg0: i32) -> (i32, i32) {
    %c0_i32 = arith.constant 0 : i32
    %c0_i32_0 = arith.constant 0 : i32
    return %arg0, %c0_i32 : i32, i32
  }
  func.func @transform_1(%arg0: i32) -> (i32, i32) {
    %c0_i32 = arith.constant 0 : i32
    %c0_i32_0 = arith.constant 0 : i32
    %c0_i32_1 = arith.constant 0 : i32
    return %c0_i32, %c0_i32_0 : i32, i32
  }
  func.func @transform_2(%arg0: i32) -> (i32, i32) {
    %c0_i32 = arith.constant 0 : i32
    %c0_i32_0 = arith.constant 0 : i32
    %c0_i32_1 = arith.constant 0 : i32
    return %c0_i32, %c0_i32_0 : i32, i32
  }
  func.func @transform_3(%arg0: i32) -> (i32, i32) {
    %c0_i32 = arith.constant 0 : i32
    %c0_i32_0 = arith.constant 0 : i32
    return %arg0, %c0_i32 : i32, i32
  }
}

module attributes {stable_mosaic.version = 11 : i64} {
  func.func @_matmul_dual_out_kernel(%arg0: i32, %arg1: memref<32x288xbf16, #tpu.memory_space<vmem>>, %arg2: memref<288x128xbf16, #tpu.memory_space<vmem>>, %arg3: memref<1x128xf32, #tpu.memory_space<vmem>>, %arg4: memref<32x64xbf16, #tpu.memory_space<vmem>>, %arg5: memref<32x64xbf16, #tpu.memory_space<vmem>>) attributes {dimension_semantics = [#tpu.dimension_semantics<parallel>], iteration_bounds = array<i64: 1>, scalar_prefetch = 0 : i64, scratch_operands = 0 : i64, tpu.core_type = #tpu.core_type<tc>, window_params = [{transform_indices = @transform_0, window_bounds = array<i64: 32, 288>}, {pipeline_mode = #tpu.pipeline_mode<synchronous>, transform_indices = @transform_1, window_bounds = array<i64: 288, 128>}, {pipeline_mode = #tpu.pipeline_mode<synchronous>, transform_indices = @transform_2, window_bounds = array<i64: 1, 128>}, {transform_indices = @transform_3, window_bounds = array<i64: 32, 64>}, {transform_indices = @transform_4, window_bounds = array<i64: 32, 64>}]} {
    %c0 = arith.constant 0 : index
    %c0_0 = arith.constant 0 : index
    %0 = vector.load %arg1[%c0, %c0_0] : memref<32x288xbf16, #tpu.memory_space<vmem>>, vector<32x288xbf16>
    %c0_1 = arith.constant 0 : index
    %c0_2 = arith.constant 0 : index
    %1 = vector.load %arg2[%c0_1, %c0_2] : memref<288x128xbf16, #tpu.memory_space<vmem>>, vector<288x128xbf16>
    %cst = arith.constant dense<0.000000e+00> : vector<32x128xf32>
    %2 = tpu.matmul %0, %1, %cst {dimension_numbers = #tpu.dot_dimension_numbers<[1], [0], [0], [1], [0, 0, 1, 1], [], []>} : vector<32x288xbf16>, vector<288x128xbf16>, vector<32x128xf32> -> vector<32x128xf32>
    %c0_3 = arith.constant 0 : index
    %c0_4 = arith.constant 0 : index
    %3 = vector.load %arg3[%c0_3, %c0_4] : memref<1x128xf32, #tpu.memory_space<vmem>>, vector<1x128xf32>
    %4 = vector.broadcast %3 : vector<1x128xf32> to vector<32x128xf32>
    %5 = arith.addf %2, %4 : vector<32x128xf32>
    %6 = vector.extract_strided_slice %5 {offsets = [0, 0], sizes = [32, 64], strides = [1, 1]} : vector<32x128xf32> to vector<32x64xf32>
    %cst_5 = arith.constant 0.000000e+00 : f32
    %7 = vector.broadcast %cst_5 : f32 to vector<32x64xf32>
    %8 = arith.maximumf %6, %7 : vector<32x64xf32>
    %9 = arith.truncf %8 : vector<32x64xf32> to vector<32x64xbf16>
    %c0_6 = arith.constant 0 : index
    %c0_7 = arith.constant 0 : index
    %10 = vector.load %arg4[%c0_6, %c0_7] : memref<32x64xbf16, #tpu.memory_space<vmem>>, vector<32x64xbf16>
    tpu.vector_store %arg4[%c0_6, %c0_7], %9 {strides = array<i32>} : memref<32x64xbf16, #tpu.memory_space<vmem>>, vector<32x64xbf16>,
    %11 = vector.extract_strided_slice %5 {offsets = [0, 64], sizes = [32, 64], strides = [1, 1]} : vector<32x128xf32> to vector<32x64xf32>
    %12 = arith.truncf %11 : vector<32x64xf32> to vector<32x64xbf16>
    %c0_8 = arith.constant 0 : index
    %c0_9 = arith.constant 0 : index
    %13 = vector.load %arg5[%c0_8, %c0_9] : memref<32x64xbf16, #tpu.memory_space<vmem>>, vector<32x64xbf16>
    tpu.vector_store %arg5[%c0_8, %c0_9], %12 {strides = array<i32>} : memref<32x64xbf16, #tpu.memory_space<vmem>>, vector<32x64xbf16>,
    return
  }
  func.func @transform_0(%arg0: i32) -> (i32, i32) {
    %c0_i32 = arith.constant 0 : i32
    %c0_i32_0 = arith.constant 0 : i32
    return %arg0, %c0_i32 : i32, i32
  }
  func.func @transform_1(%arg0: i32) -> (i32, i32) {
    %c0_i32 = arith.constant 0 : i32
    %c0_i32_0 = arith.constant 0 : i32
    %c0_i32_1 = arith.constant 0 : i32
    return %c0_i32, %c0_i32_0 : i32, i32
  }
  func.func @transform_2(%arg0: i32) -> (i32, i32) {
    %c0_i32 = arith.constant 0 : i32
    %c0_i32_0 = arith.constant 0 : i32
    %c0_i32_1 = arith.constant 0 : i32
    return %c0_i32, %c0_i32_0 : i32, i32
  }
  func.func @transform_3(%arg0: i32) -> (i32, i32) {
    %c0_i32 = arith.constant 0 : i32
    %c0_i32_0 = arith.constant 0 : i32
    return %arg0, %c0_i32 : i32, i32
  }
  func.func @transform_4(%arg0: i32) -> (i32, i32) {
    %c0_i32 = arith.constant 0 : i32
    %c0_i32_0 = arith.constant 0 : i32
    return %arg0, %c0_i32 : i32, i32
  }
}

module attributes {stable_mosaic.version = 11 : i64} {
  func.func @_matmul_bias_res_relu_kernel(%arg0: i32, %arg1: memref<32x576xbf16, #tpu.memory_space<vmem>>, %arg2: memref<576x64xbf16, #tpu.memory_space<vmem>>, %arg3: memref<1x64xf32, #tpu.memory_space<vmem>>, %arg4: memref<32x64xbf16, #tpu.memory_space<vmem>>, %arg5: memref<32x64xbf16, #tpu.memory_space<vmem>>) attributes {dimension_semantics = [#tpu.dimension_semantics<parallel>], iteration_bounds = array<i64: 1>, scalar_prefetch = 0 : i64, scratch_operands = 0 : i64, tpu.core_type = #tpu.core_type<tc>, window_params = [{transform_indices = @transform_0, window_bounds = array<i64: 32, 576>}, {pipeline_mode = #tpu.pipeline_mode<synchronous>, transform_indices = @transform_1, window_bounds = array<i64: 576, 64>}, {pipeline_mode = #tpu.pipeline_mode<synchronous>, transform_indices = @transform_2, window_bounds = array<i64: 1, 64>}, {transform_indices = @transform_3, window_bounds = array<i64: 32, 64>}, {transform_indices = @transform_4, window_bounds = array<i64: 32, 64>}]} {
    %c0 = arith.constant 0 : index
    %c0_0 = arith.constant 0 : index
    %0 = vector.load %arg1[%c0, %c0_0] : memref<32x576xbf16, #tpu.memory_space<vmem>>, vector<32x576xbf16>
    %c0_1 = arith.constant 0 : index
    %c0_2 = arith.constant 0 : index
    %1 = vector.load %arg2[%c0_1, %c0_2] : memref<576x64xbf16, #tpu.memory_space<vmem>>, vector<576x64xbf16>
    %cst = arith.constant dense<0.000000e+00> : vector<32x64xf32>
    %2 = tpu.matmul %0, %1, %cst {dimension_numbers = #tpu.dot_dimension_numbers<[1], [0], [0], [1], [0, 0, 1, 1], [], []>} : vector<32x576xbf16>, vector<576x64xbf16>, vector<32x64xf32> -> vector<32x64xf32>
    %c0_3 = arith.constant 0 : index
    %c0_4 = arith.constant 0 : index
    %3 = vector.load %arg3[%c0_3, %c0_4] : memref<1x64xf32, #tpu.memory_space<vmem>>, vector<1x64xf32>
    %4 = vector.broadcast %3 : vector<1x64xf32> to vector<32x64xf32>
    %5 = arith.addf %2, %4 : vector<32x64xf32>
    %c0_5 = arith.constant 0 : index
    %c0_6 = arith.constant 0 : index
    %6 = vector.load %arg4[%c0_5, %c0_6] : memref<32x64xbf16, #tpu.memory_space<vmem>>, vector<32x64xbf16>
    %7 = arith.extf %6 : vector<32x64xbf16> to vector<32x64xf32>
    %8 = arith.addf %5, %7 : vector<32x64xf32>
    %cst_7 = arith.constant 0.000000e+00 : f32
    %9 = vector.broadcast %cst_7 : f32 to vector<32x64xf32>
    %10 = arith.maximumf %8, %9 : vector<32x64xf32>
    %11 = arith.truncf %10 : vector<32x64xf32> to vector<32x64xbf16>
    %c0_8 = arith.constant 0 : index
    %c0_9 = arith.constant 0 : index
    %12 = vector.load %arg5[%c0_8, %c0_9] : memref<32x64xbf16, #tpu.memory_space<vmem>>, vector<32x64xbf16>
    tpu.vector_store %arg5[%c0_8, %c0_9], %11 {strides = array<i32>} : memref<32x64xbf16, #tpu.memory_space<vmem>>, vector<32x64xbf16>,
    return
  }
  func.func @transform_0(%arg0: i32) -> (i32, i32) {
    %c0_i32 = arith.constant 0 : i32
    %c0_i32_0 = arith.constant 0 : i32
    return %arg0, %c0_i32 : i32, i32
  }
  func.func @transform_1(%arg0: i32) -> (i32, i32) {
    %c0_i32 = arith.constant 0 : i32
    %c0_i32_0 = arith.constant 0 : i32
    %c0_i32_1 = arith.constant 0 : i32
    return %c0_i32, %c0_i32_0 : i32, i32
  }
  func.func @transform_2(%arg0: i32) -> (i32, i32) {
    %c0_i32 = arith.constant 0 : i32
    %c0_i32_0 = arith.constant 0 : i32
    %c0_i32_1 = arith.constant 0 : i32
    return %c0_i32, %c0_i32_0 : i32, i32
  }
  func.func @transform_3(%arg0: i32) -> (i32, i32) {
    %c0_i32 = arith.constant 0 : i32
    %c0_i32_0 = arith.constant 0 : i32
    return %arg0, %c0_i32 : i32, i32
  }
  func.func @transform_4(%arg0: i32) -> (i32, i32) {
    %c0_i32 = arith.constant 0 : i32
    %c0_i32_0 = arith.constant 0 : i32
    return %arg0, %c0_i32 : i32, i32
  }
}

module attributes {stable_mosaic.version = 11 : i64} {
  func.func @_matmul_bias_act_kernel(%arg0: i32, %arg1: memref<32x576xbf16, #tpu.memory_space<vmem>>, %arg2: memref<576x64xbf16, #tpu.memory_space<vmem>>, %arg3: memref<1x64xf32, #tpu.memory_space<vmem>>, %arg4: memref<32x64xbf16, #tpu.memory_space<vmem>>) attributes {dimension_semantics = [#tpu.dimension_semantics<parallel>], iteration_bounds = array<i64: 1>, scalar_prefetch = 0 : i64, scratch_operands = 0 : i64, tpu.core_type = #tpu.core_type<tc>, window_params = [{transform_indices = @transform_0, window_bounds = array<i64: 32, 576>}, {pipeline_mode = #tpu.pipeline_mode<synchronous>, transform_indices = @transform_1, window_bounds = array<i64: 576, 64>}, {pipeline_mode = #tpu.pipeline_mode<synchronous>, transform_indices = @transform_2, window_bounds = array<i64: 1, 64>}, {transform_indices = @transform_3, window_bounds = array<i64: 32, 64>}]} {
    %c0 = arith.constant 0 : index
    %c0_0 = arith.constant 0 : index
    %0 = vector.load %arg1[%c0, %c0_0] : memref<32x576xbf16, #tpu.memory_space<vmem>>, vector<32x576xbf16>
    %c0_1 = arith.constant 0 : index
    %c0_2 = arith.constant 0 : index
    %1 = vector.load %arg2[%c0_1, %c0_2] : memref<576x64xbf16, #tpu.memory_space<vmem>>, vector<576x64xbf16>
    %cst = arith.constant dense<0.000000e+00> : vector<32x64xf32>
    %2 = tpu.matmul %0, %1, %cst {dimension_numbers = #tpu.dot_dimension_numbers<[1], [0], [0], [1], [0, 0, 1, 1], [], []>} : vector<32x576xbf16>, vector<576x64xbf16>, vector<32x64xf32> -> vector<32x64xf32>
    %c0_3 = arith.constant 0 : index
    %c0_4 = arith.constant 0 : index
    %3 = vector.load %arg3[%c0_3, %c0_4] : memref<1x64xf32, #tpu.memory_space<vmem>>, vector<1x64xf32>
    %4 = vector.broadcast %3 : vector<1x64xf32> to vector<32x64xf32>
    %5 = arith.addf %2, %4 : vector<32x64xf32>
    %cst_5 = arith.constant 0.000000e+00 : f32
    %6 = vector.broadcast %cst_5 : f32 to vector<32x64xf32>
    %7 = arith.maximumf %5, %6 : vector<32x64xf32>
    %8 = arith.truncf %7 : vector<32x64xf32> to vector<32x64xbf16>
    %c0_6 = arith.constant 0 : index
    %c0_7 = arith.constant 0 : index
    %9 = vector.load %arg4[%c0_6, %c0_7] : memref<32x64xbf16, #tpu.memory_space<vmem>>, vector<32x64xbf16>
    tpu.vector_store %arg4[%c0_6, %c0_7], %8 {strides = array<i32>} : memref<32x64xbf16, #tpu.memory_space<vmem>>, vector<32x64xbf16>,
    return
  }
  func.func @transform_0(%arg0: i32) -> (i32, i32) {
    %c0_i32 = arith.constant 0 : i32
    %c0_i32_0 = arith.constant 0 : i32
    return %arg0, %c0_i32 : i32, i32
  }
  func.func @transform_1(%arg0: i32) -> (i32, i32) {
    %c0_i32 = arith.constant 0 : i32
    %c0_i32_0 = arith.constant 0 : i32
    %c0_i32_1 = arith.constant 0 : i32
    return %c0_i32, %c0_i32_0 : i32, i32
  }
  func.func @transform_2(%arg0: i32) -> (i32, i32) {
    %c0_i32 = arith.constant 0 : i32
    %c0_i32_0 = arith.constant 0 : i32
    %c0_i32_1 = arith.constant 0 : i32
    return %c0_i32, %c0_i32_0 : i32, i32
  }
  func.func @transform_3(%arg0: i32) -> (i32, i32) {
    %c0_i32 = arith.constant 0 : i32
    %c0_i32_0 = arith.constant 0 : i32
    return %arg0, %c0_i32 : i32, i32
  }
}

module attributes {stable_mosaic.version = 11 : i64} {
  func.func @_pool_fc_kernel(%arg0: memref<2x16x64xbf16, #tpu.memory_space<vmem>>, %arg1: memref<64x10xbf16, #tpu.memory_space<vmem>>, %arg2: memref<1x10xf32, #tpu.memory_space<vmem>>, %arg3: memref<2x10xf32, #tpu.memory_space<vmem>>) attributes {dimension_semantics = [], scalar_prefetch = 0 : i64, scratch_operands = 0 : i64, tpu.core_type = #tpu.core_type<tc>} {
    %c0 = arith.constant 0 : index
    %c0_0 = arith.constant 0 : index
    %c0_1 = arith.constant 0 : index
    %0 = vector.load %arg0[%c0, %c0_0, %c0_1] : memref<2x16x64xbf16, #tpu.memory_space<vmem>>, vector<2x16x64xbf16>
    %1 = arith.extf %0 : vector<2x16x64xbf16> to vector<2x16x64xf32>
    %cst = arith.constant dense<0.000000e+00> : vector<2x64xf32>
    %2 = vector.multi_reduction <add>, %1, %cst [1] : vector<2x16x64xf32> to vector<2x64xf32>
    %cst_2 = arith.constant 1.600000e+01 : f32
    %3 = vector.broadcast %cst_2 : f32 to vector<2x64xf32>
    %4 = arith.divf %2, %3 : vector<2x64xf32>
    %5 = arith.truncf %4 : vector<2x64xf32> to vector<2x64xbf16>
    %c0_3 = arith.constant 0 : index
    %c0_4 = arith.constant 0 : index
    %6 = vector.load %arg1[%c0_3, %c0_4] : memref<64x10xbf16, #tpu.memory_space<vmem>>, vector<64x10xbf16>
    %cst_5 = arith.constant dense<0.000000e+00> : vector<2x10xf32>
    %7 = tpu.matmul %5, %6, %cst_5 {dimension_numbers = #tpu.dot_dimension_numbers<[1], [0], [0], [1], [0, 0, 1, 1], [], []>} : vector<2x64xbf16>, vector<64x10xbf16>, vector<2x10xf32> -> vector<2x10xf32>
    %c0_6 = arith.constant 0 : index
    %c0_7 = arith.constant 0 : index
    %8 = vector.load %arg2[%c0_6, %c0_7] : memref<1x10xf32, #tpu.memory_space<vmem>>, vector<1x10xf32>
    %9 = vector.broadcast %8 : vector<1x10xf32> to vector<2x10xf32>
    %10 = arith.addf %7, %9 : vector<2x10xf32>
    %c0_8 = arith.constant 0 : index
    %c0_9 = arith.constant 0 : index
    %11 = vector.load %arg3[%c0_8, %c0_9] : memref<2x10xf32, #tpu.memory_space<vmem>>, vector<2x10xf32>
    tpu.vector_store %arg3[%c0_8, %c0_9], %10 {strides = array<i32>} : memref<2x10xf32, #tpu.memory_space<vmem>>, vector<2x10xf32>,
    return
  }
}

</mosaic_0001>

<bundles_post_ra>
// kernel: resnet2_forward.14
= control target key start
LH: loop header
LB: loop body
LE: loop exit
PB: predicated region body
PF: predicated region fallthrough
CT: control target
= control target key end

     0   :  { %s1140_s12 = smov 0   ;;  %s1341_s0 = inlined_call_operand.vmem [shape: bf16[512,144], index: 0, kind: input, shape index: {}]   ;;  %s1342_s1 = inlined_call_operand.vmem [shape: bf16[144,16], index: 1, kind: input, shape index: {}]   ;;  %s1343_s2 = inlined_call_operand.vmem [shape: f32[1,16], index: 2, kind: input, shape index: {}]   ;;  %s1344_s3 = inlined_call_operand.vmem [shape: bf16[512,16], index: 3, kind: output, shape index: {}]  }
   0x1 LB: > { %s892_s13 = sadd.s32 4294967295, %s1117_s12   ;;  %p896_p0 = scmp.ge.s32.totalorder %s1117_s12, 1  ;;  %s1117_s12 = sphi %s1140_s12, %s13_s12  }
   0x2   : > { %p139_p1 = scmp.lt.s32.totalorder %s1117_s12, 3 }
   0x4   : > { %p140_p2 = pnand %p896_p0, %p139_p1 }
   0x5   : > { %v1054_v0 = vld [vmem:[%s1342_s1] sm:$0xff] (!%p140_p2)   ;;  %v1119_v1 = vmov (!%p140_p2), 0   ;;  %s897_s16 = sshll.u32 (!%p140_p2), %s892_s13, 5  ;;  %v1055_v2 = vld [vmem:[%s1342_s1 + $0x8] sm:$0xff] (!%p140_p2)   ;;  %v1056_v3 = vld [vmem:[%s1342_s1 + $0x10] sm:$0xff] (!%p140_p2)   ;;  %vm433_vm0 = vcmask (!%p140_p2), 130048  }
   0x6   : > { %143 = sbr.rel (%p140_p2) target bundleno = 319 (0x13f), region = 32  ;;  %482 = vmatprep.subr.bf16.mxu0 (!%p140_p2), %v1119_v1  ;;  %1027 = vmatprep.subr.bf16.mxu1 (!%p140_p2), %v1119_v1  ;;  %p165_p3 = scmp.lt.s32.totalorder (!%p140_p2), %s897_s16, 63  ;;  %v1057_v4 = vld [vmem:[%s1342_s1 + $0x18] sm:$0xff] (!%p140_p2)   ;;  %v1058_v7 = vld [vmem:[%s1342_s1 + $0x20] sm:$0xff] (!%p140_p2)   ;;  %v1059_v8 = vld [vmem:[%s1342_s1 + $0x28] sm:$0xff] (!%p140_p2)   ;;  %vm803_vm1 = vcmask (!%p140_p2), 125952  }
   0x7   : > { %483 = vmatpush1.bf16.msra.mxu0 (!%p140_p2), %v1054_v0  ;;  %1036 = vmatpush1.bf16.msra.mxu1 (!%p140_p2), %v1054_v0  ;;  %v1060_v9 = vld [vmem:[%s1342_s1 + $0x30] sm:$0xff] (!%p140_p2)   ;;  %v1061_v10 = vld [vmem:[%s1342_s1 + $0x38] sm:$0xff] (!%p140_p2)   ;;  %v1062_v11 = vld [vmem:[%s1342_s1 + $0x40] sm:$0xff] (!%p140_p2)  }
   0x8   : > { %484 = vmatprep.subr.bf16.mxu0 (!%p140_p2), %v1119_v1  ;;  %1028 = vmatprep.subr.bf16.mxu1 (!%p140_p2), %v1119_v1  ;;  %v1234_v42 = vld [vmem:[%s1343_s2] ss:$0 sm:$0xff] (!%p140_p2) }
   0xb   : > { %485 = vmatpush1.bf16.msra.mxu0 (!%p140_p2), %v1055_v2  ;;  %1037 = vmatpush1.bf16.msra.mxu1 (!%p140_p2), %v1055_v2 }
   0xc   : > { %486 = vmatprep.subr.bf16.mxu0 (!%p140_p2), %v1119_v1  ;;  %1029 = vmatprep.subr.bf16.mxu1 (!%p140_p2), %v1119_v1 }
   0xd   : > { %s1346_s16 = smov (!%p165_p3, %s897_s16), 63 }
   0xe   : > { %s994_s21 = sshll.u32 %s1346_s16, 3  ;;  %s901_s13 = sshll.u32 %s1346_s16, 2 }
   0xf   : > { %s1163_s24 = scalar_lea.vmem %s1341_s0, %s994_s21  ;;  %487 = vmatpush1.bf16.msra.mxu0 %v1056_v3  ;;  %1038 = vmatpush1.bf16.msra.mxu1 %v1056_v3  ;;  %s1244_s16 = scalar_lea.vmem %s1344_s3, %s901_s13 }
  0x10   : > { %v1065_v5 = vld [vmem:[%s1163_s24 + $0x4] ss:$8 sps:$4 sm:$0xff]   ;;  %488 = vmatprep.subr.bf16.mxu0 %v1119_v1  ;;  %1030 = vmatprep.subr.bf16.mxu1 %v1119_v1  ;;  %v1063_v12 = vld [vmem:[%s1163_s24] ss:$8 sps:$4 sm:$0xff]   ;;  %v1069_v14 = vld [vmem:[%s1163_s24 + $0x14] ss:$8 sps:$4 sm:$0xff]  }
  0x11   : > { %v1068_v6 = vld [vmem:[%s1163_s24 + $0x84] ss:$8 sps:$4 sm:$0xff]   ;;  %944 = vmatprep.mubr.msk.bf16.mxu0 %vm433_vm0, %v1065_v5  ;;  %v1066_v13 = vld [vmem:[%s1163_s24 + $0x80] ss:$8 sps:$4 sm:$0xff]   ;;  %v1071_v15 = vld [vmem:[%s1163_s24 + $0x94] ss:$8 sps:$4 sm:$0xff]  }
  0x12   : > { %952 = vmatprep.mubr.msk.bf16.mxu1 %vm433_vm0, %v1068_v6  ;;  %v1073_v16 = vld [vmem:[%s1163_s24 + $0x10] ss:$8 sps:$4 sm:$0xff]   ;;  %v1075_v18 = vld [vmem:[%s1163_s24 + $0x24] ss:$8 sps:$4 sm:$0xff]   ;;  %v1079_v20 = vld [vmem:[%s1163_s24 + $0x20] ss:$8 sps:$4 sm:$0xff]  }
  0x13   : > { %489 = vmatpush1.bf16.msra.mxu0 %v1057_v4  ;;  %1039 = vmatpush1.bf16.msra.mxu1 %v1057_v4  ;;  %v1074_v17 = vld [vmem:[%s1163_s24 + $0x90] ss:$8 sps:$4 sm:$0xff]   ;;  %v1077_v19 = vld [vmem:[%s1163_s24 + $0xa4] ss:$8 sps:$4 sm:$0xff]   ;;  %v1080_v21 = vld [vmem:[%s1163_s24 + $0xa0] ss:$8 sps:$4 sm:$0xff]  }
  0x14   : > { %490 = vmatprep.subr.bf16.mxu0 %v1119_v1  ;;  %1031 = vmatprep.subr.bf16.mxu1 %v1119_v1  ;;  %v1081_v22 = vld [vmem:[%s1163_s24 + $0x34] ss:$8 sps:$4 sm:$0xff]   ;;  %v1085_v24 = vld [vmem:[%s1163_s24 + $0x30] ss:$8 sps:$4 sm:$0xff]   ;;  %v1087_v26 = vld [vmem:[%s1163_s24 + $0x44] ss:$8 sps:$4 sm:$0xff]  }
  0x15   : > { %v1083_v23 = vld [vmem:[%s1163_s24 + $0xb4] ss:$8 sps:$4 sm:$0xff]   ;;  %v1086_v25 = vld [vmem:[%s1163_s24 + $0xb0] ss:$8 sps:$4 sm:$0xff]   ;;  %v1089_v27 = vld [vmem:[%s1163_s24 + $0xc4] ss:$8 sps:$4 sm:$0xff]  }
  0x16   : > { %v1091_v28 = vld [vmem:[%s1163_s24 + $0x40] ss:$8 sps:$4 sm:$0xff]   ;;  %v1093_v30 = vld [vmem:[%s1163_s24 + $0x54] ss:$8 sps:$4 sm:$0xff]   ;;  %v1097_v32 = vld [vmem:[%s1163_s24 + $0x50] ss:$8 sps:$4 sm:$0xff]  }
  0x17   : > { %491 = vmatpush1.bf16.msra.mxu0 %v1058_v7  ;;  %1040 = vmatpush1.bf16.msra.mxu1 %v1058_v7  ;;  %v1092_v29 = vld [vmem:[%s1163_s24 + $0xc0] ss:$8 sps:$4 sm:$0xff]   ;;  %v1095_v31 = vld [vmem:[%s1163_s24 + $0xd4] ss:$8 sps:$4 sm:$0xff]   ;;  %v1098_v33 = vld [vmem:[%s1163_s24 + $0xd0] ss:$8 sps:$4 sm:$0xff]  }
  0x18   : > { %492 = vmatprep.subr.bf16.mxu0 %v1119_v1  ;;  %1032 = vmatprep.subr.bf16.mxu1 %v1119_v1  ;;  %v1099_v34 = vld [vmem:[%s1163_s24 + $0x64] ss:$8 sps:$4 sm:$0xff]   ;;  %v1103_v36 = vld [vmem:[%s1163_s24 + $0x60] ss:$8 sps:$4 sm:$0xff]   ;;  %v1105_v38 = vld [vmem:[%s1163_s24 + $0x74] ss:$8 sps:$4 sm:$0xff]  }
  0x19   : > { %v1101_v35 = vld [vmem:[%s1163_s24 + $0xe4] ss:$8 sps:$4 sm:$0xff]   ;;  %v1104_v37 = vld [vmem:[%s1163_s24 + $0xe0] ss:$8 sps:$4 sm:$0xff]   ;;  %v1107_v39 = vld [vmem:[%s1163_s24 + $0xf4] ss:$8 sps:$4 sm:$0xff]  }
  0x1a   : > { %v1109_v40 = vld [vmem:[%s1163_s24 + $0x70] ss:$8 sps:$4 sm:$0xff]  }
  0x1b   : > { %493 = vmatpush1.bf16.msra.mxu0 %v1059_v8  ;;  %1041 = vmatpush1.bf16.msra.mxu1 %v1059_v8  ;;  %v1110_v41 = vld [vmem:[%s1163_s24 + $0xf0] ss:$8 sps:$4 sm:$0xff]  }
  0x1c   : > { %494 = vmatprep.subr.bf16.mxu0 %v1119_v1  ;;  %1033 = vmatprep.subr.bf16.mxu1 %v1119_v1 }
  0x1f   : > { %495 = vmatpush1.bf16.msra.mxu0 %v1060_v9  ;;  %1042 = vmatpush1.bf16.msra.mxu1 %v1060_v9 }
  0x20   : > { %496 = vmatprep.subr.bf16.mxu0 %v1119_v1  ;;  %1034 = vmatprep.subr.bf16.mxu1 %v1119_v1 }
  0x23   : > { %497 = vmatpush1.bf16.msra.mxu0 %v1061_v10  ;;  %1043 = vmatpush1.bf16.msra.mxu1 %v1061_v10 }
  0x24   : > { %498 = vmatprep.subr.bf16.mxu0 %v1119_v1  ;;  %1035 = vmatprep.subr.bf16.mxu1 %v1119_v1 }
  0x27   : > { %499 = vmatpush1.bf16.msra.mxu0 %v1062_v11  ;;  %1044 = vmatpush1.bf16.msra.mxu1 %v1062_v11 }
  0x2a   : > { %515 = vmatmul.mubr.bf16.vlgmr.msra.gmra.mrb[0].mxu0 %v1063_v12  ;;  %579 = vmatmul.mubr.bf16.vlgmr.msra.gmra.mrb[0].mxu1 %v1066_v13 }
  0x2b   : > { %945 = vmatprep.mubr.msk.bf16.mxu0 %vm433_vm0, %v1069_v14  ;;  %953 = vmatprep.mubr.msk.bf16.mxu1 %vm433_vm0, %v1071_v15 }
  0x32   : > { %523 = vmatmul.mubr.bf16.gmra.mrb[4].mxu0 %v1073_v16  ;;  %587 = vmatmul.mubr.bf16.gmra.mrb[4].mxu1 %v1074_v17 }
  0x33   : > { %946 = vmatprep.mubr.msk.bf16.mxu0 %vm433_vm0, %v1075_v18  ;;  %954 = vmatprep.mubr.msk.bf16.mxu1 %vm433_vm0, %v1077_v19 }
  0x3a   : > { %531 = vmatmul.mubr.bf16.gmra.mrb[8].mxu0 %v1079_v20  ;;  %595 = vmatmul.mubr.bf16.gmra.mrb[8].mxu1 %v1080_v21 }
  0x3b   : > { %947 = vmatprep.mubr.msk.bf16.mxu0 %vm433_vm0, %v1081_v22  ;;  %955 = vmatprep.mubr.msk.bf16.mxu1 %vm433_vm0, %v1083_v23 }
  0x42   : > { %539 = vmatmul.mubr.bf16.gmra.mrb[12].mxu0 %v1085_v24  ;;  %603 = vmatmul.mubr.bf16.gmra.mrb[12].mxu1 %v1086_v25 }
  0x43   : > { %948 = vmatprep.mubr.msk.bf16.mxu0 %vm433_vm0, %v1087_v26  ;;  %956 = vmatprep.mubr.msk.bf16.mxu1 %vm433_vm0, %v1089_v27 }
  0x4a   : > { %547 = vmatmul.mubr.bf16.gmra.mrb[16].mxu0 %v1091_v28  ;;  %611 = vmatmul.mubr.bf16.gmra.mrb[16].mxu1 %v1092_v29 }
  0x4b   : > { %949 = vmatprep.mubr.msk.bf16.mxu0 %vm433_vm0, %v1093_v30  ;;  %957 = vmatprep.mubr.msk.bf16.mxu1 %vm433_vm0, %v1095_v31 }
  0x52   : > { %555 = vmatmul.mubr.bf16.gmra.mrb[20].mxu0 %v1097_v32  ;;  %619 = vmatmul.mubr.bf16.gmra.mrb[20].mxu1 %v1098_v33 }
  0x53   : > { %950 = vmatprep.mubr.msk.bf16.mxu0 %vm433_vm0, %v1099_v34  ;;  %958 = vmatprep.mubr.msk.bf16.mxu1 %vm433_vm0, %v1101_v35 }
  0x5a   : > { %563 = vmatmul.mubr.bf16.gmra.mrb[24].mxu0 %v1103_v36  ;;  %627 = vmatmul.mubr.bf16.gmra.mrb[24].mxu1 %v1104_v37 }
  0x5b   : > { %951 = vmatprep.mubr.msk.bf16.mxu0 %vm433_vm0, %v1105_v38  ;;  %959 = vmatprep.mubr.msk.bf16.mxu1 %vm433_vm0, %v1107_v39 }
  0x62   : > { %571 = vmatmul.mubr.bf16.gmra.mrb[28].mxu0 %v1109_v40  ;;  %635 = vmatmul.mubr.bf16.gmra.mrb[28].mxu1 %v1110_v41 }
  0xfd   : > { %v516_v43 = vpop.f32.mrb[0].mxu0  ;;  %v580_v44 = vpop.f32.mrb[0].mxu1 }
  0xfe   : > { %v517_v45 = vadd.f32 %v1234_v42, %v516_v43  ;;  %v581_v46 = vadd.f32 %v1234_v42, %v580_v44  ;;  %v518_v47 = vpop.f32.mrb[1].mxu0  ;;  %v582_v48 = vpop.f32.mrb[1].mxu1 }
  0xff   : > { %v519_v49 = vpop.f32.mrb[2].mxu0  ;;  %v583_v50 = vpop.f32.mrb[2].mxu1 }
 0x100   : > { %v643_v51 = vmax.f32 %v517_v45, 0.0  ;;  %v659_v52 = vmax.f32 %v581_v46, 0.0  ;;  %v520_v53 = vadd.f32 %v1234_v42, %v519_v49  ;;  %v584_v54 = vadd.f32 %v1234_v42, %v583_v50  ;;  %v521_v55 = vpop.f32.mrb[3].mxu0  ;;  %v585_v56 = vpop.f32.mrb[3].mxu1 }
 0x102   : > { %v995_v57 = vpack.c.bf16 %v643_v51, %v643_v51  ;;  %v1011_v58 = vpack.c.bf16 %v659_v52, %v659_v52  ;;  %v644_v59 = vmax.f32 %v520_v53, 0.0  ;;  %v660_v60 = vmax.f32 %v584_v54, 0.0 }
 0x104   : > { %804 = vst.msk [vmem:[%s1244_s16] sm:$0xf] %vm803_vm1, %v995_v57  ;;  %820 = vst.msk [vmem:[%s1244_s16 + $0x40] sm:$0xf] %vm803_vm1, %v1011_v58  ;;  %v996_v61 = vpack.c.bf16 %v644_v59, %v644_v59  ;;  %v1012_v62 = vpack.c.bf16 %v660_v60, %v660_v60 }
 0x105   : > { %v524_v63 = vpop.f32.mrb[4].mxu0  ;;  %v588_v0 = vpop.f32.mrb[4].mxu1 }
 0x106   : > { %805 = vst.msk [vmem:[%s1244_s16 + $0x4] sm:$0xf] %vm803_vm1, %v996_v61  ;;  %821 = vst.msk [vmem:[%s1244_s16 + $0x44] sm:$0xf] %vm803_vm1, %v1012_v62  ;;  %v525_v1 = vadd.f32 %v1234_v42, %v524_v63  ;;  %v589_v2 = vadd.f32 %v1234_v42, %v588_v0  ;;  %v526_v3 = vpop.f32.mrb[5].mxu0  ;;  %v590_v4 = vpop.f32.mrb[5].mxu1 }
 0x107   : > { %v527_v5 = vpop.f32.mrb[6].mxu0  ;;  %v591_v6 = vpop.f32.mrb[6].mxu1 }
 0x108   : > { %v645_v7 = vmax.f32 %v525_v1, 0.0  ;;  %v661_v8 = vmax.f32 %v589_v2, 0.0  ;;  %v528_v9 = vadd.f32 %v1234_v42, %v527_v5  ;;  %v592_v10 = vadd.f32 %v1234_v42, %v591_v6  ;;  %v529_v11 = vpop.f32.mrb[7].mxu0  ;;  %v593_v12 = vpop.f32.mrb[7].mxu1 }
 0x10a   : > { %v997_v13 = vpack.c.bf16 %v645_v7, %v645_v7  ;;  %v1013_v14 = vpack.c.bf16 %v661_v8, %v661_v8  ;;  %v646_v15 = vmax.f32 %v528_v9, 0.0  ;;  %v662_v16 = vmax.f32 %v592_v10, 0.0 }
 0x10c   : > { %806 = vst.msk [vmem:[%s1244_s16 + $0x8] sm:$0xf] %vm803_vm1, %v997_v13  ;;  %822 = vst.msk [vmem:[%s1244_s16 + $0x48] sm:$0xf] %vm803_vm1, %v1013_v14  ;;  %v998_v17 = vpack.c.bf16 %v646_v15, %v646_v15  ;;  %v1014_v18 = vpack.c.bf16 %v662_v16, %v662_v16 }
 0x10d   : > { %v532_v19 = vpop.f32.mrb[8].mxu0  ;;  %v596_v20 = vpop.f32.mrb[8].mxu1 }
 0x10e   : > { %807 = vst.msk [vmem:[%s1244_s16 + $0xc] sm:$0xf] %vm803_vm1, %v998_v17  ;;  %823 = vst.msk [vmem:[%s1244_s16 + $0x4c] sm:$0xf] %vm803_vm1, %v1014_v18  ;;  %v533_v21 = vadd.f32 %v1234_v42, %v532_v19  ;;  %v597_v22 = vadd.f32 %v1234_v42, %v596_v20  ;;  %v534_v23 = vpop.f32.mrb[9].mxu0  ;;  %v598_v24 = vpop.f32.mrb[9].mxu1 }
 0x10f   : > { %v535_v25 = vpop.f32.mrb[10].mxu0  ;;  %v599_v26 = vpop.f32.mrb[10].mxu1 }
 0x110   : > { %v647_v27 = vmax.f32 %v533_v21, 0.0  ;;  %v663_v28 = vmax.f32 %v597_v22, 0.0  ;;  %v536_v29 = vadd.f32 %v1234_v42, %v535_v25  ;;  %v600_v30 = vadd.f32 %v1234_v42, %v599_v26  ;;  %v537_v31 = vpop.f32.mrb[11].mxu0  ;;  %v601_v32 = vpop.f32.mrb[11].mxu1 }
 0x112   : > { %v999_v33 = vpack.c.bf16 %v647_v27, %v647_v27  ;;  %v1015_v34 = vpack.c.bf16 %v663_v28, %v663_v28  ;;  %v648_v35 = vmax.f32 %v536_v29, 0.0  ;;  %v664_v36 = vmax.f32 %v600_v30, 0.0 }
 0x114   : > { %808 = vst.msk [vmem:[%s1244_s16 + $0x10] sm:$0xf] %vm803_vm1, %v999_v33  ;;  %824 = vst.msk [vmem:[%s1244_s16 + $0x50] sm:$0xf] %vm803_vm1, %v1015_v34  ;;  %v1000_v37 = vpack.c.bf16 %v648_v35, %v648_v35  ;;  %v1016_v38 = vpack.c.bf16 %v664_v36, %v664_v36 }
 0x115   : > { %v540_v39 = vpop.f32.mrb[12].mxu0  ;;  %v604_v40 = vpop.f32.mrb[12].mxu1 }
 0x116   : > { %809 = vst.msk [vmem:[%s1244_s16 + $0x14] sm:$0xf] %vm803_vm1, %v1000_v37  ;;  %825 = vst.msk [vmem:[%s1244_s16 + $0x54] sm:$0xf] %vm803_vm1, %v1016_v38  ;;  %v541_v41 = vadd.f32 %v1234_v42, %v540_v39  ;;  %v605_v43 = vadd.f32 %v1234_v42, %v604_v40  ;;  %v542_v44 = vpop.f32.mrb[13].mxu0  ;;  %v606_v45 = vpop.f32.mrb[13].mxu1 }
 0x117   : > { %v543_v46 = vpop.f32.mrb[14].mxu0  ;;  %v607_v47 = vpop.f32.mrb[14].mxu1 }
 0x118   : > { %v649_v48 = vmax.f32 %v541_v41, 0.0  ;;  %v665_v49 = vmax.f32 %v605_v43, 0.0  ;;  %v544_v50 = vadd.f32 %v1234_v42, %v543_v46  ;;  %v608_v51 = vadd.f32 %v1234_v42, %v607_v47  ;;  %v545_v52 = vpop.f32.mrb[15].mxu0  ;;  %v609_v53 = vpop.f32.mrb[15].mxu1 }
 0x11a   : > { %v1001_v54 = vpack.c.bf16 %v649_v48, %v649_v48  ;;  %v1017_v55 = vpack.c.bf16 %v665_v49, %v665_v49  ;;  %v650_v56 = vmax.f32 %v544_v50, 0.0  ;;  %v666_v57 = vmax.f32 %v608_v51, 0.0 }
 0x11c   : > { %810 = vst.msk [vmem:[%s1244_s16 + $0x18] sm:$0xf] %vm803_vm1, %v1001_v54  ;;  %826 = vst.msk [vmem:[%s1244_s16 + $0x58] sm:$0xf] %vm803_vm1, %v1017_v55  ;;  %v1002_v58 = vpack.c.bf16 %v650_v56, %v650_v56  ;;  %v1018_v59 = vpack.c.bf16 %v666_v57, %v666_v57 }
 0x11d   : > { %v548_v60 = vpop.f32.mrb[16].mxu0  ;;  %v612_v61 = vpop.f32.mrb[16].mxu1 }
 0x11e   : > { %811 = vst.msk [vmem:[%s1244_s16 + $0x1c] sm:$0xf] %vm803_vm1, %v1002_v58  ;;  %827 = vst.msk [vmem:[%s1244_s16 + $0x5c] sm:$0xf] %vm803_vm1, %v1018_v59  ;;  %v549_v62 = vadd.f32 %v1234_v42, %v548_v60  ;;  %v613_v63 = vadd.f32 %v1234_v42, %v612_v61  ;;  %v550_v0 = vpop.f32.mrb[17].mxu0  ;;  %v614_v1 = vpop.f32.mrb[17].mxu1 }
 0x11f   : > { %v551_v2 = vpop.f32.mrb[18].mxu0  ;;  %v615_v3 = vpop.f32.mrb[18].mxu1 }
 0x120   : > { %v651_v4 = vmax.f32 %v549_v62, 0.0  ;;  %v667_v5 = vmax.f32 %v613_v63, 0.0  ;;  %v552_v6 = vadd.f32 %v1234_v42, %v551_v2  ;;  %v616_v7 = vadd.f32 %v1234_v42, %v615_v3  ;;  %v553_v8 = vpop.f32.mrb[19].mxu0  ;;  %v617_v9 = vpop.f32.mrb[19].mxu1 }
 0x122   : > { %v1003_v10 = vpack.c.bf16 %v651_v4, %v651_v4  ;;  %v1019_v11 = vpack.c.bf16 %v667_v5, %v667_v5  ;;  %v652_v12 = vmax.f32 %v552_v6, 0.0  ;;  %v668_v13 = vmax.f32 %v616_v7, 0.0 }
 0x124   : > { %812 = vst.msk [vmem:[%s1244_s16 + $0x20] sm:$0xf] %vm803_vm1, %v1003_v10  ;;  %828 = vst.msk [vmem:[%s1244_s16 + $0x60] sm:$0xf] %vm803_vm1, %v1019_v11  ;;  %v1004_v14 = vpack.c.bf16 %v652_v12, %v652_v12  ;;  %v1020_v15 = vpack.c.bf16 %v668_v13, %v668_v13 }
 0x125   : > { %v556_v16 = vpop.f32.mrb[20].mxu0  ;;  %v620_v17 = vpop.f32.mrb[20].mxu1 }
 0x126   : > { %813 = vst.msk [vmem:[%s1244_s16 + $0x24] sm:$0xf] %vm803_vm1, %v1004_v14  ;;  %829 = vst.msk [vmem:[%s1244_s16 + $0x64] sm:$0xf] %vm803_vm1, %v1020_v15  ;;  %v557_v18 = vadd.f32 %v1234_v42, %v556_v16  ;;  %v621_v19 = vadd.f32 %v1234_v42, %v620_v17  ;;  %v558_v20 = vpop.f32.mrb[21].mxu0  ;;  %v622_v21 = vpop.f32.mrb[21].mxu1 }
 0x127   : > { %v559_v22 = vpop.f32.mrb[22].mxu0  ;;  %v623_v23 = vpop.f32.mrb[22].mxu1 }
 0x128   : > { %v653_v24 = vmax.f32 %v557_v18, 0.0  ;;  %v669_v25 = vmax.f32 %v621_v19, 0.0  ;;  %v560_v26 = vadd.f32 %v1234_v42, %v559_v22  ;;  %v624_v27 = vadd.f32 %v1234_v42, %v623_v23  ;;  %v561_v28 = vpop.f32.mrb[23].mxu0  ;;  %v625_v29 = vpop.f32.mrb[23].mxu1 }
 0x12a   : > { %v1005_v30 = vpack.c.bf16 %v653_v24, %v653_v24  ;;  %v1021_v31 = vpack.c.bf16 %v669_v25, %v669_v25  ;;  %v654_v32 = vmax.f32 %v560_v26, 0.0  ;;  %v670_v33 = vmax.f32 %v624_v27, 0.0 }
 0x12c   : > { %814 = vst.msk [vmem:[%s1244_s16 + $0x28] sm:$0xf] %vm803_vm1, %v1005_v30  ;;  %830 = vst.msk [vmem:[%s1244_s16 + $0x68] sm:$0xf] %vm803_vm1, %v1021_v31  ;;  %v1006_v34 = vpack.c.bf16 %v654_v32, %v654_v32  ;;  %v1022_v35 = vpack.c.bf16 %v670_v33, %v670_v33 }
 0x12d   : > { %v564_v36 = vpop.f32.mrb[24].mxu0  ;;  %v628_v37 = vpop.f32.mrb[24].mxu1 }
 0x12e   : > { %815 = vst.msk [vmem:[%s1244_s16 + $0x2c] sm:$0xf] %vm803_vm1, %v1006_v34  ;;  %831 = vst.msk [vmem:[%s1244_s16 + $0x6c] sm:$0xf] %vm803_vm1, %v1022_v35  ;;  %v565_v38 = vadd.f32 %v1234_v42, %v564_v36  ;;  %v629_v39 = vadd.f32 %v1234_v42, %v628_v37  ;;  %v566_v40 = vpop.f32.mrb[25].mxu0  ;;  %v630_v41 = vpop.f32.mrb[25].mxu1 }
 0x12f   : > { %v567_v43 = vpop.f32.mrb[26].mxu0  ;;  %v631_v44 = vpop.f32.mrb[26].mxu1 }
 0x130   : > { %v655_v45 = vmax.f32 %v565_v38, 0.0  ;;  %v671_v46 = vmax.f32 %v629_v39, 0.0  ;;  %v568_v47 = vadd.f32 %v1234_v42, %v567_v43  ;;  %v632_v48 = vadd.f32 %v1234_v42, %v631_v44  ;;  %v569_v49 = vpop.f32.mrb[27].mxu0  ;;  %v633_v50 = vpop.f32.mrb[27].mxu1 }
 0x132   : > { %v1007_v51 = vpack.c.bf16 %v655_v45, %v655_v45  ;;  %v1023_v52 = vpack.c.bf16 %v671_v46, %v671_v46  ;;  %v656_v53 = vmax.f32 %v568_v47, 0.0  ;;  %v672_v54 = vmax.f32 %v632_v48, 0.0 }
 0x134   : > { %816 = vst.msk [vmem:[%s1244_s16 + $0x30] sm:$0xf] %vm803_vm1, %v1007_v51  ;;  %832 = vst.msk [vmem:[%s1244_s16 + $0x70] sm:$0xf] %vm803_vm1, %v1023_v52  ;;  %v1008_v55 = vpack.c.bf16 %v656_v53, %v656_v53  ;;  %v1024_v56 = vpack.c.bf16 %v672_v54, %v672_v54 }
 0x135   : > { %v572_v57 = vpop.f32.mrb[28].mxu0  ;;  %v636_v58 = vpop.f32.mrb[28].mxu1 }
 0x136   : > { %817 = vst.msk [vmem:[%s1244_s16 + $0x34] sm:$0xf] %vm803_vm1, %v1008_v55  ;;  %833 = vst.msk [vmem:[%s1244_s16 + $0x74] sm:$0xf] %vm803_vm1, %v1024_v56  ;;  %v573_v59 = vadd.f32 %v1234_v42, %v572_v57  ;;  %v637_v60 = vadd.f32 %v1234_v42, %v636_v58  ;;  %v574_v61 = vpop.f32.mrb[29].mxu0  ;;  %v638_v62 = vpop.f32.mrb[29].mxu1 }
 0x137   : > { %v575_v63 = vpop.f32.mrb[30].mxu0  ;;  %v639_v0 = vpop.f32.mrb[30].mxu1 }
 0x138   : > { %v657_v1 = vmax.f32 %v573_v59, 0.0  ;;  %v673_v2 = vmax.f32 %v637_v60, 0.0  ;;  %v576_v3 = vadd.f32 %v1234_v42, %v575_v63  ;;  %v640_v4 = vadd.f32 %v1234_v42, %v639_v0  ;;  %v577_v5 = vpop.f32.mrb[31].mxu0  ;;  %v641_v6 = vpop.f32.mrb[31].mxu1 }
 0x13a   : > { %v1009_v7 = vpack.c.bf16 %v657_v1, %v657_v1  ;;  %v1025_v8 = vpack.c.bf16 %v673_v2, %v673_v2  ;;  %v658_v9 = vmax.f32 %v576_v3, 0.0  ;;  %v674_v10 = vmax.f32 %v640_v4, 0.0 }
 0x13c   : > { %818 = vst.msk [vmem:[%s1244_s16 + $0x38] sm:$0xf] %vm803_vm1, %v1009_v7  ;;  %834 = vst.msk [vmem:[%s1244_s16 + $0x78] sm:$0xf] %vm803_vm1, %v1025_v8  ;;  %v1010_v11 = vpack.c.bf16 %v658_v9, %v658_v9  ;;  %v1026_v12 = vpack.c.bf16 %v674_v10, %v674_v10 }
 0x13e   : > { %819 = vst.msk [vmem:[%s1244_s16 + $0x3c] sm:$0xf] %vm803_vm1, %v1010_v11  ;;  %835 = vst.msk [vmem:[%s1244_s16 + $0x7c] sm:$0xf] %vm803_vm1, %v1026_v12 }
 0x13f PF: > { %s13_s12 = sadd.s32 1, %s1117_s12  }
 0x140   : > { %p10_p4 = scmp.ge.s32.totalorder %s13_s12, 4  }
 0x142   :  { %12 = sbr.rel (!%p10_p4) target bundleno = 1 (0x1), region = 62 }

// kernel: resnet2_forward.16
= control target key start
LH: loop header
LB: loop body
LE: loop exit
PB: predicated region body
PF: predicated region fallthrough
CT: control target
= control target key end

     0   :  { %s1383_s15 = smov 0   ;;  %s1609_s0 = inlined_call_operand.vmem [shape: bf16[512,144], index: 0, kind: input, shape index: {}]   ;;  %s1610_s1 = inlined_call_operand.vmem [shape: bf16[144,16], index: 1, kind: input, shape index: {}]   ;;  %s1611_s2 = inlined_call_operand.vmem [shape: f32[1,16], index: 2, kind: input, shape index: {}]   ;;  %s1612_s3 = inlined_call_operand.vmem [shape: bf16[512,16], index: 3, kind: input, shape index: {}]   ;;  %s1613_s4 = inlined_call_operand.vmem [shape: bf16[512,16], index: 4, kind: output, shape index: {}]  }
   0x1 LB: > { %s1049_s16 = sadd.s32 4294967295, %s1355_s15   ;;  %p1053_p0 = scmp.ge.s32.totalorder %s1355_s15, 1  ;;  %s1355_s15 = sphi %s1383_s15, %s14_s15  }
   0x2   : > { %p175_p1 = scmp.lt.s32.totalorder %s1355_s15, 3 }
   0x4   : > { %p176_p2 = pnand %p1053_p0, %p175_p1 }
   0x5   : > { %v1292_v0 = vld [vmem:[%s1610_s1] sm:$0xff] (!%p176_p2)   ;;  %v1357_v1 = vmov (!%p176_p2), 0   ;;  %s1054_s19 = sshll.u32 (!%p176_p2), %s1049_s16, 5  ;;  %v1293_v2 = vld [vmem:[%s1610_s1 + $0x8] sm:$0xff] (!%p176_p2)   ;;  %v1294_v3 = vld [vmem:[%s1610_s1 + $0x10] sm:$0xff] (!%p176_p2)   ;;  %vm482_vm0 = vcmask (!%p176_p2), 130048  }
   0x6   : > { %179 = sbr.rel (%p176_p2) target bundleno = 321 (0x141), region = 36  ;;  %531 = vmatprep.subr.bf16.mxu0 (!%p176_p2), %v1357_v1  ;;  %1265 = vmatprep.subr.bf16.mxu1 (!%p176_p2), %v1357_v1  ;;  %p208_p3 = scmp.lt.s32.totalorder (!%p176_p2), %s1054_s19, 63  ;;  %v1295_v4 = vld [vmem:[%s1610_s1 + $0x18] sm:$0xff] (!%p176_p2)   ;;  %v1296_v7 = vld [vmem:[%s1610_s1 + $0x20] sm:$0xff] (!%p176_p2)   ;;  %v1297_v8 = vld [vmem:[%s1610_s1 + $0x28] sm:$0xff] (!%p176_p2)   ;;  %vm948_vm1 = vcmask (!%p176_p2), 125952  }
   0x7   : > { %532 = vmatpush1.bf16.msra.mxu0 (!%p176_p2), %v1292_v0  ;;  %1274 = vmatpush1.bf16.msra.mxu1 (!%p176_p2), %v1292_v0  ;;  %v1298_v9 = vld [vmem:[%s1610_s1 + $0x30] sm:$0xff] (!%p176_p2)   ;;  %v1299_v10 = vld [vmem:[%s1610_s1 + $0x38] sm:$0xff] (!%p176_p2)   ;;  %v1300_v11 = vld [vmem:[%s1610_s1 + $0x40] sm:$0xff] (!%p176_p2)  }
   0x8   : > { %533 = vmatprep.subr.bf16.mxu0 (!%p176_p2), %v1357_v1  ;;  %1266 = vmatprep.subr.bf16.mxu1 (!%p176_p2), %v1357_v1  ;;  %v1487_v44 = vld [vmem:[%s1611_s2] ss:$0 sm:$0xff] (!%p176_p2) }
   0xb   : > { %534 = vmatpush1.bf16.msra.mxu0 (!%p176_p2), %v1293_v2  ;;  %1275 = vmatpush1.bf16.msra.mxu1 (!%p176_p2), %v1293_v2 }
   0xc   : > { %535 = vmatprep.subr.bf16.mxu0 (!%p176_p2), %v1357_v1  ;;  %1267 = vmatprep.subr.bf16.mxu1 (!%p176_p2), %v1357_v1 }
   0xd   : > { %s1615_s19 = smov (!%p208_p3, %s1054_s19), 63 }
   0xe   : > { %s1153_s24 = sshll.u32 %s1615_s19, 3  ;;  %s1058_s14 = sshll.u32 %s1615_s19, 2 }
   0xf   : > { %s1406_s27 = scalar_lea.vmem %s1609_s0, %s1153_s24  ;;  %536 = vmatpush1.bf16.msra.mxu0 %v1294_v3  ;;  %1276 = vmatpush1.bf16.msra.mxu1 %v1294_v3  ;;  %s1480_s18 = scalar_lea.vmem %s1612_s3, %s1058_s14 }
  0x10   : > { %v1303_v5 = vld [vmem:[%s1406_s27 + $0x4] ss:$8 sps:$4 sm:$0xff]   ;;  %537 = vmatprep.subr.bf16.mxu0 %v1357_v1  ;;  %1268 = vmatprep.subr.bf16.mxu1 %v1357_v1  ;;  %v1301_v12 = vld [vmem:[%s1406_s27] ss:$8 sps:$4 sm:$0xff]   ;;  %v1307_v14 = vld [vmem:[%s1406_s27 + $0x14] ss:$8 sps:$4 sm:$0xff]   ;;  %s1500_s24 = scalar_lea.vmem %s1613_s4, %s1058_s14 }
  0x11   : > { %v1306_v6 = vld [vmem:[%s1406_s27 + $0x84] ss:$8 sps:$4 sm:$0xff]   ;;  %1103 = vmatprep.mubr.msk.bf16.mxu0 %vm482_vm0, %v1303_v5  ;;  %v1304_v13 = vld [vmem:[%s1406_s27 + $0x80] ss:$8 sps:$4 sm:$0xff]   ;;  %v1309_v15 = vld [vmem:[%s1406_s27 + $0x94] ss:$8 sps:$4 sm:$0xff]  }
  0x12   : > { %1111 = vmatprep.mubr.msk.bf16.mxu1 %vm482_vm0, %v1306_v6  ;;  %v1311_v16 = vld [vmem:[%s1406_s27 + $0x10] ss:$8 sps:$4 sm:$0xff]   ;;  %v1313_v18 = vld [vmem:[%s1406_s27 + $0x24] ss:$8 sps:$4 sm:$0xff]   ;;  %v1317_v20 = vld [vmem:[%s1406_s27 + $0x20] ss:$8 sps:$4 sm:$0xff]  }
  0x13   : > { %538 = vmatpush1.bf16.msra.mxu0 %v1295_v4  ;;  %1277 = vmatpush1.bf16.msra.mxu1 %v1295_v4  ;;  %v1312_v17 = vld [vmem:[%s1406_s27 + $0x90] ss:$8 sps:$4 sm:$0xff]   ;;  %v1315_v19 = vld [vmem:[%s1406_s27 + $0xa4] ss:$8 sps:$4 sm:$0xff]   ;;  %v1318_v21 = vld [vmem:[%s1406_s27 + $0xa0] ss:$8 sps:$4 sm:$0xff]  }
  0x14   : > { %539 = vmatprep.subr.bf16.mxu0 %v1357_v1  ;;  %1269 = vmatprep.subr.bf16.mxu1 %v1357_v1  ;;  %v1319_v22 = vld [vmem:[%s1406_s27 + $0x34] ss:$8 sps:$4 sm:$0xff]   ;;  %v1323_v24 = vld [vmem:[%s1406_s27 + $0x30] ss:$8 sps:$4 sm:$0xff]   ;;  %v1325_v26 = vld [vmem:[%s1406_s27 + $0x44] ss:$8 sps:$4 sm:$0xff]  }
  0x15   : > { %v1321_v23 = vld [vmem:[%s1406_s27 + $0xb4] ss:$8 sps:$4 sm:$0xff]   ;;  %v1324_v25 = vld [vmem:[%s1406_s27 + $0xb0] ss:$8 sps:$4 sm:$0xff]   ;;  %v1327_v27 = vld [vmem:[%s1406_s27 + $0xc4] ss:$8 sps:$4 sm:$0xff]  }
  0x16   : > { %v1329_v28 = vld [vmem:[%s1406_s27 + $0x40] ss:$8 sps:$4 sm:$0xff]   ;;  %v1331_v30 = vld [vmem:[%s1406_s27 + $0x54] ss:$8 sps:$4 sm:$0xff]   ;;  %v1335_v32 = vld [vmem:[%s1406_s27 + $0x50] ss:$8 sps:$4 sm:$0xff]  }
  0x17   : > { %540 = vmatpush1.bf16.msra.mxu0 %v1296_v7  ;;  %1278 = vmatpush1.bf16.msra.mxu1 %v1296_v7  ;;  %v1330_v29 = vld [vmem:[%s1406_s27 + $0xc0] ss:$8 sps:$4 sm:$0xff]   ;;  %v1333_v31 = vld [vmem:[%s1406_s27 + $0xd4] ss:$8 sps:$4 sm:$0xff]   ;;  %v1336_v33 = vld [vmem:[%s1406_s27 + $0xd0] ss:$8 sps:$4 sm:$0xff]  }
  0x18   : > { %541 = vmatprep.subr.bf16.mxu0 %v1357_v1  ;;  %1270 = vmatprep.subr.bf16.mxu1 %v1357_v1  ;;  %v1337_v34 = vld [vmem:[%s1406_s27 + $0x64] ss:$8 sps:$4 sm:$0xff]   ;;  %v1341_v36 = vld [vmem:[%s1406_s27 + $0x60] ss:$8 sps:$4 sm:$0xff]   ;;  %v1343_v38 = vld [vmem:[%s1406_s27 + $0x74] ss:$8 sps:$4 sm:$0xff]  }
  0x19   : > { %v1339_v35 = vld [vmem:[%s1406_s27 + $0xe4] ss:$8 sps:$4 sm:$0xff]   ;;  %v1342_v37 = vld [vmem:[%s1406_s27 + $0xe0] ss:$8 sps:$4 sm:$0xff]   ;;  %v1345_v39 = vld [vmem:[%s1406_s27 + $0xf4] ss:$8 sps:$4 sm:$0xff]  }
  0x1a   : > { %v1347_v40 = vld [vmem:[%s1406_s27 + $0x70] ss:$8 sps:$4 sm:$0xff]   ;;  %v1187_v42 = vld [vmem:[%s1480_s18] sm:$0xff]   ;;  %v1250_v63 = vld [vmem:[%s1480_s18 + $0x8] sm:$0xff]  }
  0x1b   : > { %542 = vmatpush1.bf16.msra.mxu0 %v1297_v8  ;;  %1279 = vmatpush1.bf16.msra.mxu1 %v1297_v8  ;;  %v1348_v41 = vld [vmem:[%s1406_s27 + $0xf0] ss:$8 sps:$4 sm:$0xff]   ;;  %v1257_v43 = vld [vmem:[%s1480_s18 + $0x40] sm:$0xff]   ;;  %v1188_v45 = vunpack.c.l.bf16 %v1187_v42  ;;  %v1189_v53 = vunpack.c.h.bf16 %v1187_v42  ;;  %v1258_v0 = vld [vmem:[%s1480_s18 + $0x48] sm:$0xff]   ;;  %v1192_v5 = vunpack.c.l.bf16 %v1250_v63 }
  0x1c   : > { %543 = vmatprep.subr.bf16.mxu0 %v1357_v1  ;;  %1271 = vmatprep.subr.bf16.mxu1 %v1357_v1  ;;  %v1220_v46 = vunpack.c.l.bf16 %v1257_v43  ;;  %v1221_v54 = vunpack.c.h.bf16 %v1257_v43  ;;  %v1224_v6 = vunpack.c.l.bf16 %v1258_v0 }
  0x1f   : > { %544 = vmatpush1.bf16.msra.mxu0 %v1298_v9  ;;  %1280 = vmatpush1.bf16.msra.mxu1 %v1298_v9 }
  0x20   : > { %545 = vmatprep.subr.bf16.mxu0 %v1357_v1  ;;  %1272 = vmatprep.subr.bf16.mxu1 %v1357_v1 }
  0x23   : > { %546 = vmatpush1.bf16.msra.mxu0 %v1299_v10  ;;  %1281 = vmatpush1.bf16.msra.mxu1 %v1299_v10 }
  0x24   : > { %547 = vmatprep.subr.bf16.mxu0 %v1357_v1  ;;  %1273 = vmatprep.subr.bf16.mxu1 %v1357_v1 }
  0x27   : > { %548 = vmatpush1.bf16.msra.mxu0 %v1300_v11  ;;  %1282 = vmatpush1.bf16.msra.mxu1 %v1300_v11 }
  0x2a   : > { %564 = vmatmul.mubr.bf16.vlgmr.msra.gmra.mrb[0].mxu0 %v1301_v12  ;;  %628 = vmatmul.mubr.bf16.vlgmr.msra.gmra.mrb[0].mxu1 %v1304_v13  ;;  %v1193_v13 = vunpack.c.h.bf16 %v1250_v63 }
  0x2b   : > { %1104 = vmatprep.mubr.msk.bf16.mxu0 %vm482_vm0, %v1307_v14  ;;  %1112 = vmatprep.mubr.msk.bf16.mxu1 %vm482_vm0, %v1309_v15  ;;  %v1225_v14 = vunpack.c.h.bf16 %v1258_v0 }
  0x32   : > { %572 = vmatmul.mubr.bf16.gmra.mrb[4].mxu0 %v1311_v16  ;;  %636 = vmatmul.mubr.bf16.gmra.mrb[4].mxu1 %v1312_v17 }
  0x33   : > { %1105 = vmatprep.mubr.msk.bf16.mxu0 %vm482_vm0, %v1313_v18  ;;  %1113 = vmatprep.mubr.msk.bf16.mxu1 %vm482_vm0, %v1315_v19 }
  0x3a   : > { %580 = vmatmul.mubr.bf16.gmra.mrb[8].mxu0 %v1317_v20  ;;  %644 = vmatmul.mubr.bf16.gmra.mrb[8].mxu1 %v1318_v21 }
  0x3b   : > { %1106 = vmatprep.mubr.msk.bf16.mxu0 %vm482_vm0, %v1319_v22  ;;  %1114 = vmatprep.mubr.msk.bf16.mxu1 %vm482_vm0, %v1321_v23 }
  0x42   : > { %588 = vmatmul.mubr.bf16.gmra.mrb[12].mxu0 %v1323_v24  ;;  %652 = vmatmul.mubr.bf16.gmra.mrb[12].mxu1 %v1324_v25 }
  0x43   : > { %1107 = vmatprep.mubr.msk.bf16.mxu0 %vm482_vm0, %v1325_v26  ;;  %1115 = vmatprep.mubr.msk.bf16.mxu1 %vm482_vm0, %v1327_v27 }
  0x4a   : > { %596 = vmatmul.mubr.bf16.gmra.mrb[16].mxu0 %v1329_v28  ;;  %660 = vmatmul.mubr.bf16.gmra.mrb[16].mxu1 %v1330_v29  ;;  %v1251_v29 = vld [vmem:[%s1480_s18 + $0x10] sm:$0xff]  }
  0x4b   : > { %1108 = vmatprep.mubr.msk.bf16.mxu0 %vm482_vm0, %v1331_v30  ;;  %1116 = vmatprep.mubr.msk.bf16.mxu1 %vm482_vm0, %v1333_v31  ;;  %v1259_v30 = vld [vmem:[%s1480_s18 + $0x50] sm:$0xff]   ;;  %v1197_v43 = vunpack.c.h.bf16 %v1251_v29 }
  0x52   : > { %604 = vmatmul.mubr.bf16.gmra.mrb[20].mxu0 %v1335_v32  ;;  %668 = vmatmul.mubr.bf16.gmra.mrb[20].mxu1 %v1336_v33 }
  0x53   : > { %1109 = vmatprep.mubr.msk.bf16.mxu0 %vm482_vm0, %v1337_v34  ;;  %1117 = vmatprep.mubr.msk.bf16.mxu1 %vm482_vm0, %v1339_v35  ;;  %v1196_v35 = vunpack.c.l.bf16 %v1251_v29 }
  0x5a   : > { %612 = vmatmul.mubr.bf16.gmra.mrb[24].mxu0 %v1341_v36  ;;  %676 = vmatmul.mubr.bf16.gmra.mrb[24].mxu1 %v1342_v37  ;;  %v1228_v36 = vunpack.c.l.bf16 %v1259_v30 }
  0x5b   : > { %1110 = vmatprep.mubr.msk.bf16.mxu0 %vm482_vm0, %v1343_v38  ;;  %1118 = vmatprep.mubr.msk.bf16.mxu1 %vm482_vm0, %v1345_v39 }
  0x62   : > { %620 = vmatmul.mubr.bf16.gmra.mrb[28].mxu0 %v1347_v40  ;;  %684 = vmatmul.mubr.bf16.gmra.mrb[28].mxu1 %v1348_v41 }
  0xfd   : > { %v565_v47 = vpop.f32.mrb[0].mxu0  ;;  %v629_v48 = vpop.f32.mrb[0].mxu1 }
  0xfe   : > { %v566_v49 = vadd.f32 %v1487_v44, %v565_v47  ;;  %v630_v50 = vadd.f32 %v1487_v44, %v629_v48  ;;  %v567_v51 = vpop.f32.mrb[1].mxu0  ;;  %v631_v52 = vpop.f32.mrb[1].mxu1 }
  0xff   : > { %v568_v55 = vpop.f32.mrb[2].mxu0  ;;  %v632_v56 = vpop.f32.mrb[2].mxu1 }
 0x100   : > { %v756_v57 = vadd.f32 %v1188_v45, %v566_v49  ;;  %v772_v58 = vadd.f32 %v1220_v46, %v630_v50  ;;  %v569_v59 = vadd.f32 %v1487_v44, %v568_v55  ;;  %v633_v60 = vadd.f32 %v1487_v44, %v632_v56  ;;  %v570_v61 = vpop.f32.mrb[3].mxu0  ;;  %v634_v62 = vpop.f32.mrb[3].mxu1 }
 0x101   : > { %v1229_v45 = vunpack.c.h.bf16 %v1259_v30  ;;  %v1260_v61 = vld [vmem:[%s1480_s18 + $0x58] sm:$0xff]  }
 0x102   : > { %v788_v1 = vmax.f32 %v756_v57, 0.0  ;;  %v804_v2 = vmax.f32 %v772_v58, 0.0  ;;  %v757_v3 = vadd.f32 %v1189_v53, %v569_v59  ;;  %v773_v4 = vadd.f32 %v1221_v54, %v633_v60  ;;  %v1252_v60 = vld [vmem:[%s1480_s18 + $0x18] sm:$0xff]  }
 0x104   : > { %v1154_v7 = vpack.c.bf16 %v788_v1, %v788_v1  ;;  %v1170_v8 = vpack.c.bf16 %v804_v2, %v804_v2  ;;  %v789_v9 = vmax.f32 %v757_v3, 0.0  ;;  %v805_v10 = vmax.f32 %v773_v4, 0.0 }
 0x105   : > { %v573_v11 = vpop.f32.mrb[4].mxu0  ;;  %v637_v12 = vpop.f32.mrb[4].mxu1  ;;  %v1200_v2 = vunpack.c.l.bf16 %v1252_v60  ;;  %v1232_v3 = vunpack.c.l.bf16 %v1260_v61 }
 0x106   : > { %949 = vst.msk [vmem:[%s1500_s24] sm:$0xf] %vm948_vm1, %v1154_v7  ;;  %965 = vst.msk [vmem:[%s1500_s24 + $0x40] sm:$0xf] %vm948_vm1, %v1170_v8  ;;  %v1155_v15 = vpack.c.bf16 %v789_v9, %v789_v9  ;;  %v1171_v16 = vpack.c.bf16 %v805_v10, %v805_v10  ;;  %v574_v17 = vadd.f32 %v1487_v44, %v573_v11  ;;  %v575_v19 = vpop.f32.mrb[5].mxu0  ;;  %v639_v20 = vpop.f32.mrb[5].mxu1  ;;  %v1201_v10 = vunpack.c.h.bf16 %v1252_v60 }
 0x107   : > { %v638_v18 = vadd.f32 %v1487_v44, %v637_v12  ;;  %v576_v21 = vpop.f32.mrb[6].mxu0  ;;  %v640_v22 = vpop.f32.mrb[6].mxu1  ;;  %v1233_v11 = vunpack.c.h.bf16 %v1260_v61 }
 0x108   : > { %950 = vst.msk [vmem:[%s1500_s24 + $0x4] sm:$0xf] %vm948_vm1, %v1155_v15  ;;  %966 = vst.msk [vmem:[%s1500_s24 + $0x44] sm:$0xf] %vm948_vm1, %v1171_v16  ;;  %v758_v23 = vadd.f32 %v1192_v5, %v574_v17  ;;  %v577_v25 = vadd.f32 %v1487_v44, %v576_v21  ;;  %v641_v26 = vadd.f32 %v1487_v44, %v640_v22  ;;  %v578_v27 = vpop.f32.mrb[7].mxu0  ;;  %v642_v28 = vpop.f32.mrb[7].mxu1 }
 0x109   : > { %v774_v24 = vadd.f32 %v1224_v6, %v638_v18  ;;  %v1261_v27 = vld [vmem:[%s1480_s18 + $0x60] sm:$0xff]  }
 0x10a   : > { %v790_v31 = vmax.f32 %v758_v23, 0.0  ;;  %v759_v33 = vadd.f32 %v1193_v13, %v577_v25  ;;  %v775_v34 = vadd.f32 %v1225_v14, %v641_v26  ;;  %v1253_v26 = vld [vmem:[%s1480_s18 + $0x20] sm:$0xff]  }
 0x10b   : > { %v806_v32 = vmax.f32 %v774_v24, 0.0 }
 0x10c   : > { %v1156_v37 = vpack.c.bf16 %v790_v31, %v790_v31  ;;  %v791_v39 = vmax.f32 %v759_v33, 0.0  ;;  %v807_v40 = vmax.f32 %v775_v34, 0.0  ;;  %v1236_v33 = vunpack.c.l.bf16 %v1261_v27 }
 0x10d   : > { %v1172_v38 = vpack.c.bf16 %v806_v32, %v806_v32  ;;  %v581_v41 = vpop.f32.mrb[8].mxu0  ;;  %v645_v42 = vpop.f32.mrb[8].mxu1  ;;  %v1204_v32 = vunpack.c.l.bf16 %v1253_v26 }
 0x10e   : > { %951 = vst.msk [vmem:[%s1500_s24 + $0x8] sm:$0xf] %vm948_vm1, %v1156_v37  ;;  %v1157_v46 = vpack.c.bf16 %v791_v39, %v791_v39  ;;  %v1173_v47 = vpack.c.bf16 %v807_v40, %v807_v40  ;;  %v582_v48 = vadd.f32 %v1487_v44, %v581_v41  ;;  %v646_v49 = vadd.f32 %v1487_v44, %v645_v42  ;;  %v583_v50 = vpop.f32.mrb[9].mxu0  ;;  %v647_v51 = vpop.f32.mrb[9].mxu1 }
 0x10f   : > { %967 = vst.msk [vmem:[%s1500_s24 + $0x48] sm:$0xf] %vm948_vm1, %v1172_v38  ;;  %v584_v52 = vpop.f32.mrb[10].mxu0  ;;  %v648_v53 = vpop.f32.mrb[10].mxu1  ;;  %v1205_v40 = vunpack.c.h.bf16 %v1253_v26  ;;  %v1237_v41 = vunpack.c.h.bf16 %v1261_v27 }
 0x110   : > { %952 = vst.msk [vmem:[%s1500_s24 + $0xc] sm:$0xf] %vm948_vm1, %v1157_v46  ;;  %968 = vst.msk [vmem:[%s1500_s24 + $0x4c] sm:$0xf] %vm948_vm1, %v1173_v47  ;;  %v760_v54 = vadd.f32 %v1196_v35, %v582_v48  ;;  %v776_v55 = vadd.f32 %v1228_v36, %v646_v49  ;;  %v585_v56 = vadd.f32 %v1487_v44, %v584_v52  ;;  %v586_v58 = vpop.f32.mrb[11].mxu0  ;;  %v650_v59 = vpop.f32.mrb[11].mxu1 }
 0x111   : > { %v649_v57 = vadd.f32 %v1487_v44, %v648_v53  ;;  %v1262_v58 = vld [vmem:[%s1480_s18 + $0x68] sm:$0xff]  }
 0x112   : > { %v792_v62 = vmax.f32 %v760_v54, 0.0  ;;  %v808_v63 = vmax.f32 %v776_v55, 0.0  ;;  %v761_v0 = vadd.f32 %v1197_v43, %v585_v56 }
 0x113   : > { %v777_v1 = vadd.f32 %v1229_v45, %v649_v57  ;;  %v1254_v57 = vld [vmem:[%s1480_s18 + $0x28] sm:$0xff]  }
 0x114   : > { %v1158_v4 = vpack.c.bf16 %v792_v62, %v792_v62  ;;  %v1174_v5 = vpack.c.bf16 %v808_v63, %v808_v63  ;;  %v793_v6 = vmax.f32 %v761_v0, 0.0  ;;  %v1208_v63 = vunpack.c.l.bf16 %v1254_v57 }
 0x115   : > { %v809_v7 = vmax.f32 %v777_v1, 0.0  ;;  %v589_v8 = vpop.f32.mrb[12].mxu0  ;;  %v653_v9 = vpop.f32.mrb[12].mxu1  ;;  %v1240_v0 = vunpack.c.l.bf16 %v1262_v58 }
 0x116   : > { %953 = vst.msk [vmem:[%s1500_s24 + $0x10] sm:$0xf] %vm948_vm1, %v1158_v4  ;;  %969 = vst.msk [vmem:[%s1500_s24 + $0x50] sm:$0xf] %vm948_vm1, %v1174_v5  ;;  %v1159_v12 = vpack.c.bf16 %v793_v6, %v793_v6  ;;  %v590_v14 = vadd.f32 %v1487_v44, %v589_v8  ;;  %v654_v15 = vadd.f32 %v1487_v44, %v653_v9  ;;  %v591_v16 = vpop.f32.mrb[13].mxu0  ;;  %v655_v17 = vpop.f32.mrb[13].mxu1  ;;  %v1241_v8 = vunpack.c.h.bf16 %v1262_v58 }
 0x117   : > { %v1175_v13 = vpack.c.bf16 %v809_v7, %v809_v7  ;;  %v592_v18 = vpop.f32.mrb[14].mxu0  ;;  %v656_v19 = vpop.f32.mrb[14].mxu1  ;;  %v1209_v7 = vunpack.c.h.bf16 %v1254_v57 }
 0x118   : > { %954 = vst.msk [vmem:[%s1500_s24 + $0x14] sm:$0xf] %vm948_vm1, %v1159_v12  ;;  %v762_v20 = vadd.f32 %v1200_v2, %v590_v14  ;;  %v778_v21 = vadd.f32 %v1232_v3, %v654_v15  ;;  %v593_v22 = vadd.f32 %v1487_v44, %v592_v18  ;;  %v657_v23 = vadd.f32 %v1487_v44, %v656_v19  ;;  %v594_v24 = vpop.f32.mrb[15].mxu0  ;;  %v658_v25 = vpop.f32.mrb[15].mxu1 }
 0x119   : > { %970 = vst.msk [vmem:[%s1500_s24 + $0x54] sm:$0xf] %vm948_vm1, %v1175_v13  ;;  %v1263_v24 = vld [vmem:[%s1480_s18 + $0x70] sm:$0xff]  }
 0x11a   : > { %v794_v28 = vmax.f32 %v762_v20, 0.0  ;;  %v810_v29 = vmax.f32 %v778_v21, 0.0  ;;  %v763_v30 = vadd.f32 %v1201_v10, %v593_v22  ;;  %v779_v31 = vadd.f32 %v1233_v11, %v657_v23  ;;  %v1255_v23 = vld [vmem:[%s1480_s18 + $0x30] sm:$0xff]  }
 0x11c   : > { %v1160_v34 = vpack.c.bf16 %v794_v28, %v794_v28  ;;  %v1176_v35 = vpack.c.bf16 %v810_v29, %v810_v29  ;;  %v795_v36 = vmax.f32 %v763_v30, 0.0  ;;  %v811_v37 = vmax.f32 %v779_v31, 0.0 }
 0x11d   : > { %v597_v38 = vpop.f32.mrb[16].mxu0  ;;  %v661_v39 = vpop.f32.mrb[16].mxu1  ;;  %v1212_v29 = vunpack.c.l.bf16 %v1255_v23  ;;  %v1244_v30 = vunpack.c.l.bf16 %v1263_v24 }
 0x11e   : > { %955 = vst.msk [vmem:[%s1500_s24 + $0x18] sm:$0xf] %vm948_vm1, %v1160_v34  ;;  %971 = vst.msk [vmem:[%s1500_s24 + $0x58] sm:$0xf] %vm948_vm1, %v1176_v35  ;;  %v1161_v42 = vpack.c.bf16 %v795_v36, %v795_v36  ;;  %v1177_v43 = vpack.c.bf16 %v811_v37, %v811_v37  ;;  %v598_v45 = vadd.f32 %v1487_v44, %v597_v38  ;;  %v599_v47 = vpop.f32.mrb[17].mxu0  ;;  %v663_v48 = vpop.f32.mrb[17].mxu1  ;;  %v1213_v37 = vunpack.c.h.bf16 %v1255_v23 }
 0x11f   : > { %v662_v46 = vadd.f32 %v1487_v44, %v661_v39  ;;  %v600_v49 = vpop.f32.mrb[18].mxu0  ;;  %v664_v50 = vpop.f32.mrb[18].mxu1  ;;  %v1245_v38 = vunpack.c.h.bf16 %v1263_v24 }
 0x120   : > { %956 = vst.msk [vmem:[%s1500_s24 + $0x1c] sm:$0xf] %vm948_vm1, %v1161_v42  ;;  %972 = vst.msk [vmem:[%s1500_s24 + $0x5c] sm:$0xf] %vm948_vm1, %v1177_v43  ;;  %v764_v51 = vadd.f32 %v1204_v32, %v598_v45  ;;  %v601_v53 = vadd.f32 %v1487_v44, %v600_v49  ;;  %v665_v54 = vadd.f32 %v1487_v44, %v664_v50  ;;  %v602_v55 = vpop.f32.mrb[19].mxu0  ;;  %v666_v56 = vpop.f32.mrb[19].mxu1 }
 0x121   : > { %v780_v52 = vadd.f32 %v1236_v33, %v662_v46  ;;  %v1264_v55 = vld [vmem:[%s1480_s18 + $0x78] sm:$0xff]  }
 0x122   : > { %v796_v59 = vmax.f32 %v764_v51, 0.0  ;;  %v765_v61 = vadd.f32 %v1205_v40, %v601_v53  ;;  %v781_v62 = vadd.f32 %v1237_v41, %v665_v54  ;;  %v1256_v54 = vld [vmem:[%s1480_s18 + $0x38] sm:$0xff]  }
 0x123   : > { %v812_v60 = vmax.f32 %v780_v52, 0.0 }
 0x124   : > { %v1162_v1 = vpack.c.bf16 %v796_v59, %v796_v59  ;;  %v797_v3 = vmax.f32 %v765_v61, 0.0  ;;  %v813_v4 = vmax.f32 %v781_v62, 0.0  ;;  %v1248_v61 = vunpack.c.l.bf16 %v1264_v55 }
 0x125   : > { %v1178_v2 = vpack.c.bf16 %v812_v60, %v812_v60  ;;  %v605_v5 = vpop.f32.mrb[20].mxu0  ;;  %v669_v6 = vpop.f32.mrb[20].mxu1  ;;  %v1216_v60 = vunpack.c.l.bf16 %v1256_v54 }
 0x126   : > { %957 = vst.msk [vmem:[%s1500_s24 + $0x20] sm:$0xf] %vm948_vm1, %v1162_v1  ;;  %v1163_v9 = vpack.c.bf16 %v797_v3, %v797_v3  ;;  %v1179_v10 = vpack.c.bf16 %v813_v4, %v813_v4  ;;  %v606_v11 = vadd.f32 %v1487_v44, %v605_v5  ;;  %v670_v12 = vadd.f32 %v1487_v44, %v669_v6  ;;  %v607_v13 = vpop.f32.mrb[21].mxu0  ;;  %v671_v14 = vpop.f32.mrb[21].mxu1 }
 0x127   : > { %973 = vst.msk [vmem:[%s1500_s24 + $0x60] sm:$0xf] %vm948_vm1, %v1178_v2  ;;  %v608_v15 = vpop.f32.mrb[22].mxu0  ;;  %v672_v16 = vpop.f32.mrb[22].mxu1  ;;  %v1217_v4 = vunpack.c.h.bf16 %v1256_v54  ;;  %v1249_v5 = vunpack.c.h.bf16 %v1264_v55 }
 0x128   : > { %958 = vst.msk [vmem:[%s1500_s24 + $0x24] sm:$0xf] %vm948_vm1, %v1163_v9  ;;  %974 = vst.msk [vmem:[%s1500_s24 + $0x64] sm:$0xf] %vm948_vm1, %v1179_v10  ;;  %v766_v17 = vadd.f32 %v1208_v63, %v606_v11  ;;  %v782_v18 = vadd.f32 %v1240_v0, %v670_v12  ;;  %v609_v19 = vadd.f32 %v1487_v44, %v608_v15  ;;  %v610_v21 = vpop.f32.mrb[23].mxu0  ;;  %v674_v22 = vpop.f32.mrb[23].mxu1 }
 0x129   : > { %v673_v20 = vadd.f32 %v1487_v44, %v672_v16 }
 0x12a   : > { %v798_v25 = vmax.f32 %v766_v17, 0.0  ;;  %v814_v26 = vmax.f32 %v782_v18, 0.0  ;;  %v767_v27 = vadd.f32 %v1209_v7, %v609_v19 }
 0x12b   : > { %v783_v28 = vadd.f32 %v1241_v8, %v673_v20 }
 0x12c   : > { %v1164_v31 = vpack.c.bf16 %v798_v25, %v798_v25  ;;  %v1180_v32 = vpack.c.bf16 %v814_v26, %v814_v26  ;;  %v799_v33 = vmax.f32 %v767_v27, 0.0 }
 0x12d   : > { %v815_v34 = vmax.f32 %v783_v28, 0.0  ;;  %v613_v35 = vpop.f32.mrb[24].mxu0  ;;  %v677_v36 = vpop.f32.mrb[24].mxu1 }
 0x12e   : > { %959 = vst.msk [vmem:[%s1500_s24 + $0x28] sm:$0xf] %vm948_vm1, %v1164_v31  ;;  %975 = vst.msk [vmem:[%s1500_s24 + $0x68] sm:$0xf] %vm948_vm1, %v1180_v32  ;;  %v1165_v39 = vpack.c.bf16 %v799_v33, %v799_v33  ;;  %v614_v41 = vadd.f32 %v1487_v44, %v613_v35  ;;  %v678_v42 = vadd.f32 %v1487_v44, %v677_v36  ;;  %v615_v43 = vpop.f32.mrb[25].mxu0  ;;  %v679_v45 = vpop.f32.mrb[25].mxu1 }
 0x12f   : > { %v1181_v40 = vpack.c.bf16 %v815_v34, %v815_v34  ;;  %v616_v46 = vpop.f32.mrb[26].mxu0  ;;  %v680_v47 = vpop.f32.mrb[26].mxu1 }
 0x130   : > { %960 = vst.msk [vmem:[%s1500_s24 + $0x2c] sm:$0xf] %vm948_vm1, %v1165_v39  ;;  %v768_v48 = vadd.f32 %v1212_v29, %v614_v41  ;;  %v784_v49 = vadd.f32 %v1244_v30, %v678_v42  ;;  %v617_v50 = vadd.f32 %v1487_v44, %v616_v46  ;;  %v681_v51 = vadd.f32 %v1487_v44, %v680_v47  ;;  %v618_v52 = vpop.f32.mrb[27].mxu0  ;;  %v682_v53 = vpop.f32.mrb[27].mxu1 }
 0x131   : > { %976 = vst.msk [vmem:[%s1500_s24 + $0x6c] sm:$0xf] %vm948_vm1, %v1181_v40 }
 0x132   : > { %v800_v56 = vmax.f32 %v768_v48, 0.0  ;;  %v816_v57 = vmax.f32 %v784_v49, 0.0  ;;  %v769_v58 = vadd.f32 %v1213_v37, %v617_v50  ;;  %v785_v59 = vadd.f32 %v1245_v38, %v681_v51 }
 0x134   : > { %v1166_v62 = vpack.c.bf16 %v800_v56, %v800_v56  ;;  %v1182_v63 = vpack.c.bf16 %v816_v57, %v816_v57  ;;  %v801_v0 = vmax.f32 %v769_v58, 0.0  ;;  %v817_v1 = vmax.f32 %v785_v59, 0.0 }
 0x135   : > { %v621_v2 = vpop.f32.mrb[28].mxu0  ;;  %v685_v3 = vpop.f32.mrb[28].mxu1 }
 0x136   : > { %961 = vst.msk [vmem:[%s1500_s24 + $0x30] sm:$0xf] %vm948_vm1, %v1166_v62  ;;  %977 = vst.msk [vmem:[%s1500_s24 + $0x70] sm:$0xf] %vm948_vm1, %v1182_v63  ;;  %v1167_v6 = vpack.c.bf16 %v801_v0, %v801_v0  ;;  %v1183_v7 = vpack.c.bf16 %v817_v1, %v817_v1  ;;  %v622_v8 = vadd.f32 %v1487_v44, %v621_v2  ;;  %v623_v10 = vpop.f32.mrb[29].mxu0  ;;  %v687_v11 = vpop.f32.mrb[29].mxu1 }
 0x137   : > { %v686_v9 = vadd.f32 %v1487_v44, %v685_v3  ;;  %v624_v12 = vpop.f32.mrb[30].mxu0  ;;  %v688_v13 = vpop.f32.mrb[30].mxu1 }
 0x138   : > { %962 = vst.msk [vmem:[%s1500_s24 + $0x34] sm:$0xf] %vm948_vm1, %v1167_v6  ;;  %978 = vst.msk [vmem:[%s1500_s24 + $0x74] sm:$0xf] %vm948_vm1, %v1183_v7  ;;  %v770_v14 = vadd.f32 %v1216_v60, %v622_v8  ;;  %v625_v16 = vadd.f32 %v1487_v44, %v624_v12  ;;  %v689_v17 = vadd.f32 %v1487_v44, %v688_v13  ;;  %v626_v18 = vpop.f32.mrb[31].mxu0  ;;  %v690_v19 = vpop.f32.mrb[31].mxu1 }
 0x139   : > { %v786_v15 = vadd.f32 %v1248_v61, %v686_v9 }
 0x13a   : > { %v802_v20 = vmax.f32 %v770_v14, 0.0  ;;  %v771_v22 = vadd.f32 %v1217_v4, %v625_v16  ;;  %v787_v23 = vadd.f32 %v1249_v5, %v689_v17 }
 0x13b   : > { %v818_v21 = vmax.f32 %v786_v15, 0.0 }
 0x13c   : > { %v1168_v24 = vpack.c.bf16 %v802_v20, %v802_v20  ;;  %v803_v26 = vmax.f32 %v771_v22, 0.0  ;;  %v819_v27 = vmax.f32 %v787_v23, 0.0 }
 0x13d   : > { %v1184_v25 = vpack.c.bf16 %v818_v21, %v818_v21 }
 0x13e   : > { %963 = vst.msk [vmem:[%s1500_s24 + $0x38] sm:$0xf] %vm948_vm1, %v1168_v24  ;;  %v1169_v28 = vpack.c.bf16 %v803_v26, %v803_v26  ;;  %v1185_v29 = vpack.c.bf16 %v819_v27, %v819_v27 }
 0x13f   : > { %979 = vst.msk [vmem:[%s1500_s24 + $0x78] sm:$0xf] %vm948_vm1, %v1184_v25 }
 0x140   : > { %964 = vst.msk [vmem:[%s1500_s24 + $0x3c] sm:$0xf] %vm948_vm1, %v1169_v28  ;;  %980 = vst.msk [vmem:[%s1500_s24 + $0x7c] sm:$0xf] %vm948_vm1, %v1185_v29 }
 0x141 PF: > { %s14_s15 = sadd.s32 1, %s1355_s15  }
 0x142   : > { %p11_p4 = scmp.ge.s32.totalorder %s14_s15, 4  }
 0x144   :  { %13 = sbr.rel (!%p11_p4) target bundleno = 1 (0x1), region = 69 }

// kernel: resnet2_forward.19
= control target key start
LH: loop header
LB: loop body
LE: loop exit
PB: predicated region body
PF: predicated region fallthrough
CT: control target
= control target key end

     0   :  { %v674_v0 = vmov 0   ;;  %vm184_vm0 = vcmask 130048   ;;  %vm386_vm1 = vcmask 257024   ;;  %s949_s1 = inlined_call_operand.vmem [shape: bf16[144,64], index: 1, kind: input, shape index: {}]   ;;  %s950_s0 = inlined_call_operand.vmem [shape: bf16[128,144], index: 0, kind: input, shape index: {}]   ;;  %s951_s2 = inlined_call_operand.vmem [shape: f32[1,64], index: 2, kind: input, shape index: {}]   ;;  %s952_s3 = inlined_call_operand.vmem [shape: bf16[128,32], index: 3, kind: output, shape index: {0}]   ;;  %s953_s4 = inlined_call_operand.vmem [shape: bf16[128,32], index: 4, kind: output, shape index: {1}]  }
   0x1   :  { %209 = vmatprep.subr.bf16.mxu0 %v674_v0  ;;  %621 = vmatprep.subr.bf16.mxu1 %v674_v0  ;;  %v641_v1 = vld [vmem:[%s949_s1] sm:$0xff]   ;;  %v642_v2 = vld [vmem:[%s949_s1 + $0x8] sm:$0xff]   ;;  %v643_v3 = vld [vmem:[%s949_s1 + $0x10] sm:$0xff]  }
   0x2   :  { %210 = vmatpush1.bf16.msra.mxu0 %v641_v1  ;;  %630 = vmatpush1.bf16.msra.mxu1 %v641_v1  ;;  %v644_v4 = vld [vmem:[%s949_s1 + $0x18] sm:$0xff]   ;;  %v652_v5 = vld [vmem:[%s950_s0 + $0x4] ss:$8 sps:$4 sm:$0xff]   ;;  %v647_v9 = vld [vmem:[%s949_s1 + $0x30] sm:$0xff]  }
   0x3   :  { %211 = vmatprep.subr.bf16.mxu0 %v674_v0  ;;  %622 = vmatprep.subr.bf16.mxu1 %v674_v0  ;;  %v655_v6 = vld [vmem:[%s950_s0 + $0x44] ss:$8 sps:$4 sm:$0xff]   ;;  %v648_v10 = vld [vmem:[%s949_s1 + $0x38] sm:$0xff]   ;;  %v650_v12 = vld [vmem:[%s950_s0] ss:$8 sps:$4 sm:$0xff]  }
   0x4   :  { %549 = vmatprep.mubr.msk.bf16.mxu0 %vm184_vm0, %v652_v5  ;;  %553 = vmatprep.mubr.msk.bf16.mxu1 %vm184_vm0, %v655_v6  ;;  %v645_v7 = vld [vmem:[%s949_s1 + $0x20] sm:$0xff]   ;;  %v646_v8 = vld [vmem:[%s949_s1 + $0x28] sm:$0xff]   ;;  %v656_v14 = vld [vmem:[%s950_s0 + $0x14] ss:$8 sps:$4 sm:$0xff]  }
   0x5   :  { %v649_v11 = vld [vmem:[%s949_s1 + $0x40] sm:$0xff]   ;;  %v659_v15 = vld [vmem:[%s950_s0 + $0x54] ss:$8 sps:$4 sm:$0xff]   ;;  %v658_v16 = vld [vmem:[%s950_s0 + $0x10] ss:$8 sps:$4 sm:$0xff]  }
   0x6   :  { %212 = vmatpush1.bf16.msra.mxu0 %v642_v2  ;;  %631 = vmatpush1.bf16.msra.mxu1 %v642_v2  ;;  %v653_v13 = vld [vmem:[%s950_s0 + $0x40] ss:$8 sps:$4 sm:$0xff]   ;;  %v661_v17 = vld [vmem:[%s950_s0 + $0x50] ss:$8 sps:$4 sm:$0xff]   ;;  %v662_v18 = vld [vmem:[%s950_s0 + $0x24] ss:$8 sps:$4 sm:$0xff]  }
   0x7   :  { %213 = vmatprep.subr.bf16.mxu0 %v674_v0  ;;  %623 = vmatprep.subr.bf16.mxu1 %v674_v0  ;;  %v665_v19 = vld [vmem:[%s950_s0 + $0x64] ss:$8 sps:$4 sm:$0xff]   ;;  %v664_v20 = vld [vmem:[%s950_s0 + $0x20] ss:$8 sps:$4 sm:$0xff]   ;;  %v668_v22 = vld [vmem:[%s950_s0 + $0x34] ss:$8 sps:$4 sm:$0xff]  }
   0x8   :  { %v667_v21 = vld [vmem:[%s950_s0 + $0x60] ss:$8 sps:$4 sm:$0xff]   ;;  %v671_v23 = vld [vmem:[%s950_s0 + $0x74] ss:$8 sps:$4 sm:$0xff]   ;;  %v670_v24 = vld [vmem:[%s950_s0 + $0x30] ss:$8 sps:$4 sm:$0xff]  }
   0x9   :  { %v673_v25 = vld [vmem:[%s950_s0 + $0x70] ss:$8 sps:$4 sm:$0xff]   ;;  %v787_v26 = vld [vmem:[%s951_s2] ss:$0 sm:$0xff]  ;;  %s675_s0 = smov 96  }
   0xa   :  { %214 = vmatpush1.bf16.msra.mxu0 %v643_v3  ;;  %632 = vmatpush1.bf16.msra.mxu1 %v643_v3 }
   0xb   :  { %215 = vmatprep.subr.bf16.mxu0 %v674_v0  ;;  %624 = vmatprep.subr.bf16.mxu1 %v674_v0 }
   0xe   :  { %216 = vmatpush1.bf16.msra.mxu0 %v644_v4  ;;  %633 = vmatpush1.bf16.msra.mxu1 %v644_v4 }
   0xf   :  { %217 = vmatprep.subr.bf16.mxu0 %v674_v0  ;;  %625 = vmatprep.subr.bf16.mxu1 %v674_v0 }
  0x12   :  { %218 = vmatpush1.bf16.msra.mxu0 %v645_v7  ;;  %634 = vmatpush1.bf16.msra.mxu1 %v645_v7 }
  0x13   :  { %219 = vmatprep.subr.bf16.mxu0 %v674_v0  ;;  %626 = vmatprep.subr.bf16.mxu1 %v674_v0 }
  0x16   :  { %220 = vmatpush1.bf16.msra.mxu0 %v646_v8  ;;  %635 = vmatpush1.bf16.msra.mxu1 %v646_v8 }
  0x17   :  { %221 = vmatprep.subr.bf16.mxu0 %v674_v0  ;;  %627 = vmatprep.subr.bf16.mxu1 %v674_v0 }
  0x1a   :  { %222 = vmatpush1.bf16.msra.mxu0 %v647_v9  ;;  %636 = vmatpush1.bf16.msra.mxu1 %v647_v9 }
  0x1b   :  { %223 = vmatprep.subr.bf16.mxu0 %v674_v0  ;;  %628 = vmatprep.subr.bf16.mxu1 %v674_v0 }
  0x1e   :  { %224 = vmatpush1.bf16.msra.mxu0 %v648_v10  ;;  %637 = vmatpush1.bf16.msra.mxu1 %v648_v10 }
  0x1f   :  { %225 = vmatprep.subr.bf16.mxu0 %v674_v0  ;;  %629 = vmatprep.subr.bf16.mxu1 %v674_v0 }
  0x22   :  { %226 = vmatpush1.bf16.msra.mxu0 %v649_v11  ;;  %638 = vmatpush1.bf16.msra.mxu1 %v649_v11 }
  0x25   :  { %242 = vmatmul.mubr.bf16.vlgmr.msra.gmra.mrb[0].mxu0 %v650_v12  ;;  %274 = vmatmul.mubr.bf16.vlgmr.msra.gmra.mrb[0].mxu1 %v653_v13 }
  0x26   :  { %550 = vmatprep.mubr.msk.bf16.mxu0 %vm184_vm0, %v656_v14  ;;  %554 = vmatprep.mubr.msk.bf16.mxu1 %vm184_vm0, %v659_v15 }
  0x2d   :  { %250 = vmatmul.mubr.bf16.gmra.mrb[4].mxu0 %v658_v16  ;;  %282 = vmatmul.mubr.bf16.gmra.mrb[4].mxu1 %v661_v17 }
  0x2e   :  { %551 = vmatprep.mubr.msk.bf16.mxu0 %vm184_vm0, %v662_v18  ;;  %555 = vmatprep.mubr.msk.bf16.mxu1 %vm184_vm0, %v665_v19 }
  0x35   :  { %258 = vmatmul.mubr.bf16.gmra.mrb[8].mxu0 %v664_v20  ;;  %290 = vmatmul.mubr.bf16.gmra.mrb[8].mxu1 %v667_v21 }
  0x36   :  { %552 = vmatprep.mubr.msk.bf16.mxu0 %vm184_vm0, %v668_v22  ;;  %556 = vmatprep.mubr.msk.bf16.mxu1 %vm184_vm0, %v671_v23 }
  0x3d   :  { %266 = vmatmul.mubr.bf16.gmra.mrb[12].mxu0 %v670_v24  ;;  %298 = vmatmul.mubr.bf16.gmra.mrb[12].mxu1 %v673_v25 }
  0xf8   :  { %v243_v27 = vpop.f32.mrb[0].mxu0  ;;  %v275_v28 = vpop.f32.mrb[0].mxu1 }
  0xf9   :  { %v244_v29 = vadd.f32 %v787_v26, %v243_v27  ;;  %v276_v30 = vadd.f32 %v787_v26, %v275_v28  ;;  %v245_v31 = vpop.f32.mrb[1].mxu0  ;;  %v277_v32 = vpop.f32.mrb[1].mxu1 }
  0xfa   :  { %v246_v33 = vpop.f32.mrb[2].mxu0  ;;  %v278_v34 = vpop.f32.mrb[2].mxu1 }
  0xfb   :  { %v306_v35 = vmax.f32 %v244_v29, 0.0  ;;  %v314_v36 = vmax.f32 %v276_v30, 0.0  ;;  %v247_v37 = vadd.f32 %v787_v26, %v246_v33  ;;  %v248_v38 = vpop.f32.mrb[3].mxu0  ;;  %v280_v39 = vpop.f32.mrb[3].mxu1  ;;  %v279_v40 = vadd.f32 %v787_v26, %v278_v34 }
  0xfc   :  { %v605_v41 = vpack.c.bf16 %v244_v29, %v244_v29  ;;  %v613_v48 = vpack.c.bf16 %v276_v30, %v276_v30 }
  0xfd   :  { %v589_v42 = vpack.c.bf16 %v306_v35, %v306_v35  ;;  %v597_v43 = vpack.c.bf16 %v314_v36, %v314_v36  ;;  %v307_v44 = vmax.f32 %v247_v37, 0.0  ;;  %v315_v45 = vmax.f32 %v279_v40, 0.0 }
  0xfe   :  { %451 = vrot.lane.b32.xlu0 %v605_v41, %s675_s0  ;;  %v614_v46 = vpack.c.bf16 %v279_v40, %v279_v40  ;;  %v606_v0 = vpack.c.bf16 %v247_v37, %v247_v37 }
  0xff   :  { %387 = vst.msk [vmem:[%s952_s3] sm:$0xf] %vm386_vm1, %v589_v42  ;;  %395 = vst.msk [vmem:[%s952_s3 + $0x20] sm:$0xf] %vm386_vm1, %v597_v43  ;;  %v590_v47 = vpack.c.bf16 %v307_v44, %v307_v44  ;;  %v598_v49 = vpack.c.bf16 %v315_v45, %v315_v45 }
 0x100   :  { %469 = vrot.lane.b32.xlu1 %v614_v46, %s675_s0  ;;  %v251_v50 = vpop.f32.mrb[4].mxu0  ;;  %v283_v51 = vpop.f32.mrb[4].mxu1 }
 0x101   :  { %388 = vst.msk [vmem:[%s952_s3 + $0x4] sm:$0xf] %vm386_vm1, %v590_v47  ;;  %v252_v52 = vadd.f32 %v787_v26, %v251_v50  ;;  %v253_v53 = vpop.f32.mrb[5].mxu0  ;;  %v284_v54 = vadd.f32 %v787_v26, %v283_v51  ;;  %v285_v55 = vpop.f32.mrb[5].mxu1  ;;  %396 = vst.msk [vmem:[%s952_s3 + $0x24] sm:$0xf] %vm386_vm1, %v598_v49 }
 0x102   :  { %467 = vrot.lane.b32.xlu0 %v613_v48, %s675_s0  ;;  %v254_v56 = vpop.f32.mrb[6].mxu0  ;;  %v286_v57 = vpop.f32.mrb[6].mxu1 }
 0x103   :  { %v308_v58 = vmax.f32 %v252_v52, 0.0  ;;  %v607_v59 = vpack.c.bf16 %v252_v52, %v252_v52  ;;  %v255_v60 = vadd.f32 %v787_v26, %v254_v56  ;;  %v256_v61 = vpop.f32.mrb[7].mxu0  ;;  %v316_v62 = vmax.f32 %v284_v54, 0.0  ;;  %v288_v63 = vpop.f32.mrb[7].mxu1 }
 0x104   :  { %v287_v1 = vadd.f32 %v787_v26, %v286_v57  ;;  %v615_v5 = vpack.c.bf16 %v284_v54, %v284_v54 }
 0x105   :  { %v591_v2 = vpack.c.bf16 %v308_v58, %v308_v58  ;;  %v309_v3 = vmax.f32 %v255_v60, 0.0  ;;  %v599_v4 = vpack.c.bf16 %v316_v62, %v316_v62  ;;  %455 = vrot.lane.b32.xlu1 %v607_v59, %s675_s0  ;;  %v608_v8 = vpack.c.bf16 %v255_v60, %v255_v60 }
 0x106   :  { %v317_v6 = vmax.f32 %v287_v1, 0.0  ;;  %453 = vrot.lane.b32.xlu0 %v606_v0, %s675_s0  ;;  %v616_v16 = vpack.c.bf16 %v287_v1, %v287_v1 }
 0x107   :  { %389 = vst.msk [vmem:[%s952_s3 + $0x8] sm:$0xf] %vm386_vm1, %v591_v2  ;;  %v592_v7 = vpack.c.bf16 %v309_v3, %v309_v3  ;;  %397 = vst.msk [vmem:[%s952_s3 + $0x28] sm:$0xf] %vm386_vm1, %v599_v4 }
 0x108   :  { %v600_v9 = vpack.c.bf16 %v317_v6, %v317_v6  ;;  %v259_v10 = vpop.f32.mrb[8].mxu0  ;;  %v291_v11 = vpop.f32.mrb[8].mxu1 }
 0x109   :  { %390 = vst.msk [vmem:[%s952_s3 + $0xc] sm:$0xf] %vm386_vm1, %v592_v7  ;;  %v260_v12 = vadd.f32 %v787_v26, %v259_v10  ;;  %v261_v13 = vpop.f32.mrb[9].mxu0  ;;  %457 = vrot.lane.b32.xlu1 %v608_v8, %s675_s0  ;;  %v292_v14 = vadd.f32 %v787_v26, %v291_v11  ;;  %v293_v15 = vpop.f32.mrb[9].mxu1 }
 0x10a   :  { %398 = vst.msk [vmem:[%s952_s3 + $0x2c] sm:$0xf] %vm386_vm1, %v600_v9  ;;  %v262_v17 = vpop.f32.mrb[10].mxu0  ;;  %471 = vrot.lane.b32.xlu0 %v615_v5, %s675_s0  ;;  %v294_v18 = vpop.f32.mrb[10].mxu1 }
 0x10b   :  { %v310_v19 = vmax.f32 %v260_v12, 0.0  ;;  %v609_v20 = vpack.c.bf16 %v260_v12, %v260_v12  ;;  %v263_v21 = vadd.f32 %v787_v26, %v262_v17  ;;  %v264_v22 = vpop.f32.mrb[11].mxu0  ;;  %v318_v23 = vmax.f32 %v292_v14, 0.0  ;;  %v296_v24 = vpop.f32.mrb[11].mxu1 }
 0x10c   :  { %v295_v25 = vadd.f32 %v787_v26, %v294_v18  ;;  %v617_v30 = vpack.c.bf16 %v292_v14, %v292_v14 }
 0x10d   :  { %v593_v27 = vpack.c.bf16 %v310_v19, %v310_v19  ;;  %v311_v28 = vmax.f32 %v263_v21, 0.0  ;;  %v601_v29 = vpack.c.bf16 %v318_v23, %v318_v23  ;;  %473 = vrot.lane.b32.xlu1 %v616_v16, %s675_s0  ;;  %v610_v33 = vpack.c.bf16 %v263_v21, %v263_v21 }
 0x10e   :  { %v319_v31 = vmax.f32 %v295_v25, 0.0  ;;  %459 = vrot.lane.b32.xlu0 %v609_v20, %s675_s0  ;;  %v618_v41 = vpack.c.bf16 %v295_v25, %v295_v25 }
 0x10f   :  { %391 = vst.msk [vmem:[%s952_s3 + $0x10] sm:$0xf] %vm386_vm1, %v593_v27  ;;  %v594_v32 = vpack.c.bf16 %v311_v28, %v311_v28  ;;  %399 = vst.msk [vmem:[%s952_s3 + $0x30] sm:$0xf] %vm386_vm1, %v601_v29 }
 0x110   :  { %v602_v34 = vpack.c.bf16 %v319_v31, %v319_v31  ;;  %v267_v35 = vpop.f32.mrb[12].mxu0  ;;  %v299_v36 = vpop.f32.mrb[12].mxu1 }
 0x111   :  { %392 = vst.msk [vmem:[%s952_s3 + $0x14] sm:$0xf] %vm386_vm1, %v594_v32  ;;  %v268_v37 = vadd.f32 %v787_v26, %v267_v35  ;;  %v269_v38 = vpop.f32.mrb[13].mxu0  ;;  %461 = vrot.lane.b32.xlu1 %v610_v33, %s675_s0  ;;  %v300_v39 = vadd.f32 %v787_v26, %v299_v36  ;;  %v301_v40 = vpop.f32.mrb[13].mxu1 }
 0x112   :  { %400 = vst.msk [vmem:[%s952_s3 + $0x34] sm:$0xf] %vm386_vm1, %v602_v34  ;;  %v270_v42 = vpop.f32.mrb[14].mxu0  ;;  %475 = vrot.lane.b32.xlu0 %v617_v30, %s675_s0  ;;  %v302_v43 = vpop.f32.mrb[14].mxu1 }
 0x113   :  { %v312_v44 = vmax.f32 %v268_v37, 0.0  ;;  %v611_v45 = vpack.c.bf16 %v268_v37, %v268_v37  ;;  %v271_v46 = vadd.f32 %v787_v26, %v270_v42  ;;  %v272_v47 = vpop.f32.mrb[15].mxu0  ;;  %v320_v48 = vmax.f32 %v300_v39, 0.0  ;;  %v304_v49 = vpop.f32.mrb[15].mxu1 }
 0x114   :  { %v303_v50 = vadd.f32 %v787_v26, %v302_v43  ;;  %v619_v54 = vpack.c.bf16 %v300_v39, %v300_v39 }
 0x115   :  { %v595_v51 = vpack.c.bf16 %v312_v44, %v312_v44  ;;  %v313_v52 = vmax.f32 %v271_v46, 0.0  ;;  %v603_v53 = vpack.c.bf16 %v320_v48, %v320_v48  ;;  %477 = vrot.lane.b32.xlu1 %v618_v41, %s675_s0  ;;  %v612_v57 = vpack.c.bf16 %v271_v46, %v271_v46 }
 0x116   :  { %v321_v55 = vmax.f32 %v303_v50, 0.0  ;;  %463 = vrot.lane.b32.xlu0 %v611_v45, %s675_s0  ;;  %v620_v58 = vpack.c.bf16 %v303_v50, %v303_v50 }
 0x117   :  { %393 = vst.msk [vmem:[%s952_s3 + $0x18] sm:$0xf] %vm386_vm1, %v595_v51  ;;  %v596_v56 = vpack.c.bf16 %v313_v52, %v313_v52  ;;  %401 = vst.msk [vmem:[%s952_s3 + $0x38] sm:$0xf] %vm386_vm1, %v603_v53 }
 0x118   :  { %v604_v26 = vpack.c.bf16 %v321_v55, %v321_v55 }
 0x119   :  { %394 = vst.msk [vmem:[%s952_s3 + $0x1c] sm:$0xf] %vm386_vm1, %v596_v56  ;;  %465 = vrot.lane.b32.xlu1 %v612_v57, %s675_s0 }
 0x11a   :  { %402 = vst.msk [vmem:[%s952_s3 + $0x3c] sm:$0xf] %vm386_vm1, %v604_v26  ;;  %479 = vrot.lane.b32.xlu0 %v619_v54, %s675_s0 }
 0x11d   :  { %481 = vrot.lane.b32.xlu1 %v620_v58, %s675_s0 }
 0x170   :  { %v452_v59 = vpop.permute.xlu0 %451 }
 0x171   :  { %499 = vst.msk [vmem:[%s953_s4] sm:$0xf] %vm386_vm1, %v452_v59 }
 0x172   :  { %v470_v60 = vpop.permute.xlu1 %469 }
 0x173   :  { %508 = vst.msk [vmem:[%s953_s4 + $0x24] sm:$0xf] %vm386_vm1, %v470_v60 }
 0x174   :  { %v468_v61 = vpop.permute.xlu0 %467 }
 0x175   :  { %507 = vst.msk [vmem:[%s953_s4 + $0x20] sm:$0xf] %vm386_vm1, %v468_v61 }
 0x177   :  { %v456_v62 = vpop.permute.xlu1 %455 }
 0x178   :  { %501 = vst.msk [vmem:[%s953_s4 + $0x8] sm:$0xf] %vm386_vm1, %v456_v62  ;;  %v454_v63 = vpop.permute.xlu0 %453 }
 0x179   :  { %500 = vst.msk [vmem:[%s953_s4 + $0x4] sm:$0xf] %vm386_vm1, %v454_v63 }
 0x17b   :  { %v458_v0 = vpop.permute.xlu1 %457 }
 0x17c   :  { %502 = vst.msk [vmem:[%s953_s4 + $0xc] sm:$0xf] %vm386_vm1, %v458_v0  ;;  %v472_v1 = vpop.permute.xlu0 %471 }
 0x17d   :  { %509 = vst.msk [vmem:[%s953_s4 + $0x28] sm:$0xf] %vm386_vm1, %v472_v1 }
 0x17f   :  { %v474_v2 = vpop.permute.xlu1 %473 }
 0x180   :  { %510 = vst.msk [vmem:[%s953_s4 + $0x2c] sm:$0xf] %vm386_vm1, %v474_v2  ;;  %v460_v3 = vpop.permute.xlu0 %459 }
 0x181   :  { %503 = vst.msk [vmem:[%s953_s4 + $0x10] sm:$0xf] %vm386_vm1, %v460_v3 }
 0x183   :  { %v462_v4 = vpop.permute.xlu1 %461 }
 0x184   :  { %504 = vst.msk [vmem:[%s953_s4 + $0x14] sm:$0xf] %vm386_vm1, %v462_v4  ;;  %v476_v5 = vpop.permute.xlu0 %475 }
 0x185   :  { %511 = vst.msk [vmem:[%s953_s4 + $0x30] sm:$0xf] %vm386_vm1, %v476_v5 }
 0x187   :  { %v478_v6 = vpop.permute.xlu1 %477 }
 0x188   :  { %512 = vst.msk [vmem:[%s953_s4 + $0x34] sm:$0xf] %vm386_vm1, %v478_v6  ;;  %v464_v7 = vpop.permute.xlu0 %463 }
 0x189   :  { %505 = vst.msk [vmem:[%s953_s4 + $0x18] sm:$0xf] %vm386_vm1, %v464_v7 }
 0x18b   :  { %v466_v8 = vpop.permute.xlu1 %465 }
 0x18c   :  { %506 = vst.msk [vmem:[%s953_s4 + $0x1c] sm:$0xf] %vm386_vm1, %v466_v8  ;;  %v480_v9 = vpop.permute.xlu0 %479 }
 0x18d   :  { %513 = vst.msk [vmem:[%s953_s4 + $0x38] sm:$0xf] %vm386_vm1, %v480_v9 }
 0x18f   :  { %v482_v10 = vpop.permute.xlu1 %481 }
 0x190   :  { %514 = vst.msk [vmem:[%s953_s4 + $0x3c] sm:$0xf] %vm386_vm1, %v482_v10 }

// kernel: resnet2_forward.20
= control target key start
LH: loop header
LB: loop body
LE: loop exit
PB: predicated region body
PF: predicated region fallthrough
CT: control target
= control target key end

     0   :  { %vm321_vm0 = vcmask 261120   ;;  %vm668_vm1 = vcmask 257024   ;;  %s1257_s1 = inlined_call_operand.vmem [shape: bf16[288,32], index: 1, kind: input, shape index: {}]   ;;  %s1258_s0 = inlined_call_operand.vmem [shape: bf16[128,288], index: 0, kind: input, shape index: {}]   ;;  %s1259_s3 = inlined_call_operand.vmem [shape: bf16[128,32], index: 3, kind: input, shape index: {}]   ;;  %s1260_s2 = inlined_call_operand.vmem [shape: f32[1,32], index: 2, kind: input, shape index: {}]   ;;  %s1261_s4 = inlined_call_operand.vmem [shape: bf16[128,32], index: 4, kind: output, shape index: {}]  }
   0x1   :  { %v921_v0 = vld [vmem:[%s1257_s1 + $0x40] sm:$0xff]   ;;  %v923_v2 = vld [vmem:[%s1257_s1 + $0x48] sm:$0xff]   ;;  %v925_v4 = vld [vmem:[%s1257_s1 + $0x50] sm:$0xff]  }
   0x2   :  { %v922_v1 = vld [vmem:[%s1257_s1] sm:$0xff]   ;;  %811 = vmatprep.subr.bf16.mxu0 %v921_v0  ;;  %905 = vmatprep.subr.bf16.mxu1 %v921_v0  ;;  %v924_v3 = vld [vmem:[%s1257_s1 + $0x8] sm:$0xff]   ;;  %v926_v5 = vld [vmem:[%s1257_s1 + $0x10] sm:$0xff]  }
   0x3   :  { %812 = vmatpush3.bf16.msra.mxu0 %v922_v1  ;;  %913 = vmatpush3.bf16.msra.mxu1 %v922_v1  ;;  %v927_v6 = vld [vmem:[%s1257_s1 + $0x58] sm:$0xff]   ;;  %v929_v8 = vld [vmem:[%s1257_s1 + $0x60] sm:$0xff]   ;;  %v931_v10 = vld [vmem:[%s1257_s1 + $0x68] sm:$0xff]  }
   0x4   :  { %813 = vmatprep.subr.bf16.mxu0 %v923_v2  ;;  %906 = vmatprep.subr.bf16.mxu1 %v923_v2  ;;  %v928_v7 = vld [vmem:[%s1257_s1 + $0x18] sm:$0xff]   ;;  %v930_v9 = vld [vmem:[%s1257_s1 + $0x20] sm:$0xff]   ;;  %v932_v13 = vld [vmem:[%s1257_s1 + $0x28] sm:$0xff]  }
   0x5   :  { %v939_v11 = vld [vmem:[%s1258_s0 + $0x4] ss:$12 sps:$4 sm:$0xff]   ;;  %v942_v12 = vld [vmem:[%s1258_s0 + $0x94] ss:$12 sps:$4 sm:$0xff]   ;;  %v935_v16 = vld [vmem:[%s1257_s1 + $0x78] sm:$0xff]  }
   0x6   :  { %v933_v14 = vld [vmem:[%s1257_s1 + $0x70] sm:$0xff]   ;;  %378 = vmatprep.mubr.bf16.mxu0 %v939_v11  ;;  %426 = vmatprep.mubr.bf16.mxu1 %v942_v12  ;;  %v936_v17 = vld [vmem:[%s1257_s1 + $0x38] sm:$0xff]   ;;  %v937_v18 = vld [vmem:[%s1258_s0] ss:$12 sps:$4 sm:$0xff]  }
   0x7   :  { %814 = vmatpush3.bf16.msra.mxu0 %v924_v3  ;;  %914 = vmatpush3.bf16.msra.mxu1 %v924_v3  ;;  %v934_v15 = vld [vmem:[%s1257_s1 + $0x30] sm:$0xff]   ;;  %v943_v19 = vld [vmem:[%s1257_s1 + $0x80] sm:$0xff]   ;;  %v944_v21 = vld [vmem:[%s1258_s0 + $0x1c] ss:$12 sps:$4 sm:$0xff]  }
   0x8   :  { %815 = vmatprep.subr.bf16.mxu0 %v925_v4  ;;  %907 = vmatprep.subr.bf16.mxu1 %v925_v4  ;;  %v940_v20 = vld [vmem:[%s1258_s0 + $0x90] ss:$12 sps:$4 sm:$0xff]   ;;  %v946_v22 = vld [vmem:[%s1258_s0 + $0xac] ss:$12 sps:$4 sm:$0xff]   ;;  %v949_v25 = vld [vmem:[%s1258_s0 + $0xa8] ss:$12 sps:$4 sm:$0xff]  }
   0x9   :  { %v950_v23 = vld [vmem:[%s1257_s1 + $0x88] sm:$0xff]   ;;  %v948_v24 = vld [vmem:[%s1258_s0 + $0x18] ss:$12 sps:$4 sm:$0xff]   ;;  %v951_v26 = vld [vmem:[%s1258_s0 + $0x34] ss:$12 sps:$4 sm:$0xff]  }
   0xa   :  { %v953_v27 = vld [vmem:[%s1258_s0 + $0x8] ss:$12 sps:$4 sm:$0xff]   ;;  %v954_v28 = vld [vmem:[%s1258_s0 + $0x30] ss:$12 sps:$4 sm:$0xff]   ;;  %v955_v29 = vld [vmem:[%s1258_s0 + $0x20] ss:$12 sps:$4 sm:$0xff]  }
   0xb   :  { %816 = vmatpush3.bf16.msra.mxu0 %v926_v5  ;;  %915 = vmatpush3.bf16.msra.mxu1 %v926_v5  ;;  %v956_v30 = vld [vmem:[%s1258_s0 + $0x4c] ss:$12 sps:$4 sm:$0xff]   ;;  %v959_v32 = vld [vmem:[%s1258_s0 + $0x48] ss:$12 sps:$4 sm:$0xff]   ;;  %v960_v33 = vld [vmem:[%s1258_s0 + $0x50] ss:$12 sps:$4 sm:$0xff]  }
   0xc   :  { %817 = vmatprep.subr.bf16.mxu0 %v927_v6  ;;  %908 = vmatprep.subr.bf16.mxu1 %v927_v6  ;;  %v958_v31 = vld [vmem:[%s1258_s0 + $0x38] ss:$12 sps:$4 sm:$0xff]   ;;  %v963_v35 = vld [vmem:[%s1258_s0 + $0x68] ss:$12 sps:$4 sm:$0xff]   ;;  %v964_v36 = vld [vmem:[%s1258_s0 + $0x60] ss:$12 sps:$4 sm:$0xff]  }
   0xd   :  { %v961_v34 = vld [vmem:[%s1258_s0 + $0x64] ss:$12 sps:$4 sm:$0xff]   ;;  %v965_v37 = vld [vmem:[%s1258_s0 + $0x80] ss:$12 sps:$4 sm:$0xff]   ;;  %v966_v38 = vld [vmem:[%s1258_s0 + $0x7c] ss:$12 sps:$4 sm:$0xff]  }
   0xe   :  { %v968_v39 = vld [vmem:[%s1258_s0 + $0x98] ss:$12 sps:$4 sm:$0xff]   ;;  %v970_v41 = vld [vmem:[%s1258_s0 + $0xb0] ss:$12 sps:$4 sm:$0xff]   ;;  %v804_v2 = vld [vmem:[%s1259_s3 + $0x8] sm:$0xff]  }
   0xf   :  { %818 = vmatpush3.bf16.msra.mxu0 %v928_v7  ;;  %916 = vmatpush3.bf16.msra.mxu1 %v928_v7  ;;  %v969_v40 = vld [vmem:[%s1258_s0 + $0x78] ss:$12 sps:$4 sm:$0xff]   ;;  %v1144_v3 = vld [vmem:[%s1260_s2] ss:$0 sm:$0xff]  ;;  %v778_v6 = vunpack.c.l.bf16 %v804_v2 }
  0x10   :  { %819 = vmatprep.subr.bf16.mxu0 %v929_v8  ;;  %909 = vmatprep.subr.bf16.mxu1 %v929_v8  ;;  %v773_v4 = vld [vmem:[%s1259_s3] sm:$0xff]  }
  0x13   :  { %820 = vmatpush3.bf16.msra.mxu0 %v930_v9  ;;  %917 = vmatpush3.bf16.msra.mxu1 %v930_v9 }
  0x14   :  { %821 = vmatprep.subr.bf16.mxu0 %v931_v10  ;;  %910 = vmatprep.subr.bf16.mxu1 %v931_v10  ;;  %v774_v10 = vunpack.c.l.bf16 %v773_v4 }
  0x17   :  { %822 = vmatpush3.bf16.msra.mxu0 %v932_v13  ;;  %918 = vmatpush3.bf16.msra.mxu1 %v932_v13 }
  0x18   :  { %823 = vmatprep.subr.bf16.mxu0 %v933_v14  ;;  %911 = vmatprep.subr.bf16.mxu1 %v933_v14 }
  0x1b   :  { %824 = vmatpush3.bf16.msra.mxu0 %v934_v15  ;;  %919 = vmatpush3.bf16.msra.mxu1 %v934_v15  ;;  %v779_v15 = vunpack.c.h.bf16 %v804_v2 }
  0x1c   :  { %825 = vmatprep.subr.bf16.mxu0 %v935_v16  ;;  %912 = vmatprep.subr.bf16.mxu1 %v935_v16 }
  0x1f   :  { %826 = vmatpush3.bf16.msra.mxu0 %v936_v17  ;;  %920 = vmatpush3.bf16.msra.mxu1 %v936_v17 }
  0x20   :  { %885 = vmatprep.subr.bf16.mxu1 %v943_v19 }
  0x22   :  { %379 = vmatmul.mubr.bf16.vlgmr.msra.gmra.mrb[0].mxu0 %v937_v18  ;;  %427 = vmatmul.mubr.bf16.vlgmr.msra.gmra.mrb[0].mxu1 %v940_v20 }
  0x23   :  { %886 = vmatpush3.bf16.msra.mxu1 %v943_v19  ;;  %386 = vmatprep.mubr.bf16.mxu0 %v944_v21  ;;  %v775_v21 = vunpack.c.h.bf16 %v773_v4 }
  0x24   :  { %434 = vmatprep.mubr.bf16.mxu1 %v946_v22  ;;  %887 = vmatprep.subr.bf16.mxu1 %v950_v23 }
  0x27   :  { %888 = vmatpush3.bf16.msra.mxu1 %v950_v23 }
  0x2a   :  { %387 = vmatmul.mubr.bf16.gmra.mrb[4].mxu0 %v948_v24  ;;  %435 = vmatmul.mubr.bf16.gmra.mrb[4].mxu1 %v949_v25 }
  0x2b   :  { %394 = vmatprep.mubr.bf16.mxu0 %v951_v26  ;;  %889 = vmatprep.mubr.msk.bf16.mxu1 %vm321_vm0, %v953_v27 }
  0x32   :  { %395 = vmatmul.mubr.bf16.gmra.mrb[8].mxu0 %v954_v28  ;;  %890 = vmatmul.mubr.msk.bf16.vlgmr.msra.gmra.mrb[8].mxu1 %vm321_vm0, %v955_v29 }
  0x33   :  { %402 = vmatprep.mubr.bf16.mxu0 %v956_v30  ;;  %893 = vmatprep.mubr.msk.bf16.mxu1 %vm321_vm0, %v958_v31  ;;  %v805_v31 = vld [vmem:[%s1259_s3 + $0x10] sm:$0xff]  }
  0x3a   :  { %403 = vmatmul.mubr.bf16.gmra.mrb[12].mxu0 %v959_v32  ;;  %894 = vmatmul.mubr.msk.bf16.gmra.mrb[12].mxu1 %vm321_vm0, %v960_v33 }
  0x3b   :  { %410 = vmatprep.mubr.bf16.mxu0 %v961_v34  ;;  %897 = vmatprep.mubr.msk.bf16.mxu1 %vm321_vm0, %v963_v35 }
  0x42   :  { %411 = vmatmul.mubr.bf16.gmra.mrb[16].mxu0 %v964_v36  ;;  %898 = vmatmul.mubr.msk.bf16.gmra.mrb[16].mxu1 %vm321_vm0, %v965_v37 }
  0x43   :  { %418 = vmatprep.mubr.bf16.mxu0 %v966_v38  ;;  %901 = vmatprep.mubr.msk.bf16.mxu1 %vm321_vm0, %v968_v39 }
  0x4a   :  { %419 = vmatmul.mubr.bf16.gmra.mrb[20].mxu0 %v969_v40  ;;  %902 = vmatmul.mubr.msk.bf16.gmra.mrb[20].mxu1 %vm321_vm0, %v970_v41  ;;  %v806_v40 = vld [vmem:[%s1259_s3 + $0x18] sm:$0xff]  }
  0xf5   :  { %v827_v42 = vpop.f32.mrb[0].mxu0  ;;  %v863_v43 = vpop.f32.mrb[0].mxu1 }
  0xf6   :  { %v828_v44 = vpop.f32.mrb[1].mxu0  ;;  %v864_v45 = vpop.f32.mrb[1].mxu1 }
  0xf7   :  { %v829_v46 = vadd.f32 %v828_v44, %v827_v42  ;;  %v830_v47 = vpop.f32.mrb[2].mxu0  ;;  %v1130_v48 = vadd.f32 %v864_v45, %v863_v43  ;;  %v866_v49 = vpop.f32.mrb[2].mxu1  ;;  %v782_v42 = vunpack.c.l.bf16 %v805_v31 }
  0xf8   :  { %v831_v50 = vpop.f32.mrb[3].mxu0  ;;  %v867_v51 = vpop.f32.mrb[3].mxu1 }
  0xf9   :  { %v832_v52 = vadd.f32 %v831_v50, %v830_v47  ;;  %v1132_v53 = vadd.f32 %v867_v51, %v866_v49  ;;  %v381_v9 = vadd.f32 %v829_v46, %v1144_v3  ;;  %v783_v46 = vunpack.c.h.bf16 %v805_v31 }
  0xfb   :  { %v384_v20 = vadd.f32 %v832_v52, %v1144_v3 }
  0xfd   :  { %v833_v54 = vpop.f32.mrb[4].mxu0  ;;  %v869_v55 = vpop.f32.mrb[4].mxu1 }
  0xfe   :  { %v834_v56 = vpop.f32.mrb[5].mxu0  ;;  %v870_v57 = vpop.f32.mrb[5].mxu1 }
  0xff   :  { %v835_v58 = vadd.f32 %v834_v56, %v833_v54  ;;  %v836_v59 = vpop.f32.mrb[6].mxu0  ;;  %v1134_v60 = vadd.f32 %v870_v57, %v869_v55  ;;  %v872_v61 = vpop.f32.mrb[6].mxu1  ;;  %v786_v55 = vunpack.c.l.bf16 %v806_v40 }
 0x100   :  { %v837_v62 = vpop.f32.mrb[7].mxu0  ;;  %v873_v63 = vpop.f32.mrb[7].mxu1 }
 0x101   :  { %v838_v0 = vadd.f32 %v837_v62, %v836_v59  ;;  %v1136_v1 = vadd.f32 %v873_v63, %v872_v61  ;;  %v389_v5 = vadd.f32 %v835_v58, %v1144_v3  ;;  %v787_v63 = vunpack.c.h.bf16 %v806_v40  ;;  %v808_v40 = vld [vmem:[%s1259_s3 + $0x28] sm:$0xff]  }
 0x103   :  { %v392_v14 = vadd.f32 %v838_v0, %v1144_v3 }
 0x105   :  { %v839_v7 = vpop.f32.mrb[8].mxu0  ;;  %v891_v8 = vpop.f32.mrb[8].mxu1 }
 0x106   :  { %v486_v11 = vadd.f32 %v891_v8, %v389_v5  ;;  %v840_v12 = vpop.f32.mrb[9].mxu0  ;;  %v477_v13 = vpop.f32.mrb[9].mxu1 }
 0x107   :  { %v841_v16 = vadd.f32 %v840_v12, %v839_v7  ;;  %v478_v17 = vadd.f32 %v477_v13, %v381_v9  ;;  %v842_v18 = vpop.f32.mrb[10].mxu0  ;;  %v892_v19 = vpop.f32.mrb[10].mxu1  ;;  %v807_v12 = vld [vmem:[%s1259_s3 + $0x20] sm:$0xff]  }
 0x108   :  { %v574_v22 = vadd.f32 %v778_v6, %v486_v11  ;;  %v489_v23 = vadd.f32 %v892_v19, %v392_v14  ;;  %v843_v24 = vpop.f32.mrb[11].mxu0  ;;  %v480_v25 = vpop.f32.mrb[11].mxu1 }
 0x109   :  { %v572_v26 = vadd.f32 %v774_v10, %v478_v17  ;;  %v844_v27 = vadd.f32 %v843_v24, %v842_v18  ;;  %v481_v28 = vadd.f32 %v480_v25, %v384_v20  ;;  %v397_v41 = vadd.f32 %v841_v16, %v1144_v3 }
 0x10a   :  { %v590_v29 = vmax.f32 %v574_v22, 0.0  ;;  %v575_v30 = vadd.f32 %v779_v15, %v489_v23 }
 0x10b   :  { %v588_v32 = vmax.f32 %v572_v26, 0.0  ;;  %v573_v33 = vadd.f32 %v775_v21, %v481_v28  ;;  %v400_v54 = vadd.f32 %v844_v27, %v1144_v3  ;;  %v790_v21 = vunpack.c.l.bf16 %v807_v12  ;;  %v810_v28 = vld [vmem:[%s1259_s3 + $0x38] sm:$0xff]  }
 0x10c   :  { %v758_v34 = vpack.c.bf16 %v590_v29, %v590_v29  ;;  %v591_v35 = vmax.f32 %v575_v30, 0.0  ;;  %v809_v29 = vld [vmem:[%s1259_s3 + $0x30] sm:$0xff]  }
 0x10d   :  { %v756_v36 = vpack.c.bf16 %v588_v32, %v588_v32  ;;  %v589_v37 = vmax.f32 %v573_v33, 0.0  ;;  %v845_v38 = vpop.f32.mrb[12].mxu0  ;;  %v895_v39 = vpop.f32.mrb[12].mxu1  ;;  %v791_v33 = vunpack.c.h.bf16 %v807_v12 }
 0x10e   :  { %671 = vst.msk [vmem:[%s1261_s4 + $0x8] sm:$0xf] %vm668_vm1, %v758_v34  ;;  %v759_v43 = vpack.c.bf16 %v591_v35, %v591_v35  ;;  %v846_v44 = vpop.f32.mrb[13].mxu0  ;;  %v493_v45 = vpop.f32.mrb[13].mxu1  ;;  %v437_v34 = vadd.f32 %v1134_v60, %v1144_v3  ;;  %v802_v35 = vunpack.c.l.bf16 %v810_v28 }
 0x10f   :  { %669 = vst.msk [vmem:[%s1261_s4] sm:$0xf] %vm668_vm1, %v756_v36  ;;  %v757_v47 = vpack.c.bf16 %v589_v37, %v589_v37  ;;  %v847_v49 = vadd.f32 %v846_v44, %v845_v38  ;;  %v494_v50 = vadd.f32 %v493_v45, %v397_v41  ;;  %v848_v51 = vpop.f32.mrb[14].mxu0  ;;  %v896_v52 = vpop.f32.mrb[14].mxu1  ;;  %v429_v41 = vadd.f32 %v1130_v48, %v1144_v3 }
 0x110   :  { %672 = vst.msk [vmem:[%s1261_s4 + $0xc] sm:$0xf] %vm668_vm1, %v759_v43  ;;  %v849_v56 = vpop.f32.mrb[15].mxu0  ;;  %v496_v57 = vpop.f32.mrb[15].mxu1  ;;  %v440_v45 = vadd.f32 %v1136_v1, %v1144_v3  ;;  %v432_v48 = vadd.f32 %v1132_v53, %v1144_v3  ;;  %v795_v53 = vunpack.c.h.bf16 %v808_v40 }
 0x111   :  { %670 = vst.msk [vmem:[%s1261_s4 + $0x4] sm:$0xf] %vm668_vm1, %v757_v47  ;;  %v405_v58 = vadd.f32 %v847_v49, %v1144_v3  ;;  %v576_v59 = vadd.f32 %v782_v42, %v494_v50  ;;  %v850_v61 = vadd.f32 %v849_v56, %v848_v51  ;;  %v497_v62 = vadd.f32 %v496_v57, %v400_v54 }
 0x112   :  { %v798_v42 = vunpack.c.l.bf16 %v809_v29  ;;  %v799_v47 = vunpack.c.h.bf16 %v809_v29  ;;  %v794_v57 = vunpack.c.l.bf16 %v808_v40 }
 0x113   :  { %v502_v0 = vadd.f32 %v895_v39, %v405_v58  ;;  %v592_v2 = vmax.f32 %v576_v59, 0.0  ;;  %v408_v4 = vadd.f32 %v850_v61, %v1144_v3  ;;  %v577_v5 = vadd.f32 %v783_v46, %v497_v62 }
 0x114   :  { %v803_v46 = vunpack.c.h.bf16 %v810_v28 }
 0x115   :  { %v578_v6 = vadd.f32 %v786_v55, %v502_v0  ;;  %v760_v7 = vpack.c.bf16 %v592_v2, %v592_v2  ;;  %v505_v8 = vadd.f32 %v896_v52, %v408_v4  ;;  %v593_v9 = vmax.f32 %v577_v5, 0.0  ;;  %v851_v10 = vpop.f32.mrb[16].mxu0  ;;  %v1179_v11 = vpop.f32.mrb[16].mxu1 }
 0x116   :  { %v852_v13 = vpop.f32.mrb[17].mxu0  ;;  %v509_v14 = vpop.f32.mrb[17].mxu1 }
 0x117   :  { %v594_v15 = vmax.f32 %v578_v6, 0.0  ;;  %673 = vst.msk [vmem:[%s1261_s4 + $0x10] sm:$0xf] %vm668_vm1, %v760_v7  ;;  %v579_v16 = vadd.f32 %v787_v63, %v505_v8  ;;  %v761_v17 = vpack.c.bf16 %v593_v9, %v593_v9  ;;  %v853_v18 = vadd.f32 %v852_v13, %v851_v10  ;;  %v854_v19 = vpop.f32.mrb[18].mxu0  ;;  %v1188_v20 = vpop.f32.mrb[18].mxu1 }
 0x118   :  { %v855_v22 = vpop.f32.mrb[19].mxu0  ;;  %v512_v23 = vpop.f32.mrb[19].mxu1 }
 0x119   :  { %v762_v24 = vpack.c.bf16 %v594_v15, %v594_v15  ;;  %v595_v25 = vmax.f32 %v579_v16, 0.0  ;;  %674 = vst.msk [vmem:[%s1261_s4 + $0x14] sm:$0xf] %vm668_vm1, %v761_v17  ;;  %v413_v26 = vadd.f32 %v853_v18, %v1144_v3  ;;  %v856_v27 = vadd.f32 %v855_v22, %v854_v19 }
 0x11b   :  { %675 = vst.msk [vmem:[%s1261_s4 + $0x18] sm:$0xf] %vm668_vm1, %v762_v24  ;;  %v763_v30 = vpack.c.bf16 %v595_v25, %v595_v25  ;;  %v510_v31 = vadd.f32 %v509_v14, %v413_v26  ;;  %v416_v32 = vadd.f32 %v856_v27, %v1144_v3 }
 0x11d   :  { %676 = vst.msk [vmem:[%s1261_s4 + $0x1c] sm:$0xf] %vm668_vm1, %v763_v30  ;;  %v580_v36 = vadd.f32 %v790_v21, %v510_v31  ;;  %v513_v37 = vadd.f32 %v512_v23, %v416_v32  ;;  %v857_v38 = vpop.f32.mrb[20].mxu0  ;;  %v903_v39 = vpop.f32.mrb[20].mxu1 }
 0x11e   :  { %v534_v43 = vadd.f32 %v903_v39, %v437_v34  ;;  %v858_v60 = vpop.f32.mrb[21].mxu0  ;;  %v525_v44 = vpop.f32.mrb[21].mxu1 }
 0x11f   :  { %v596_v49 = vmax.f32 %v580_v36, 0.0  ;;  %v581_v50 = vadd.f32 %v791_v33, %v513_v37  ;;  %v859_v51 = vadd.f32 %v858_v60, %v857_v38  ;;  %v526_v52 = vadd.f32 %v525_v44, %v429_v41  ;;  %v860_v54 = vpop.f32.mrb[22].mxu0  ;;  %v904_v55 = vpop.f32.mrb[22].mxu1 }
 0x120   :  { %v586_v56 = vadd.f32 %v802_v35, %v534_v43  ;;  %v537_v58 = vadd.f32 %v904_v55, %v440_v45  ;;  %v861_v59 = vpop.f32.mrb[23].mxu0  ;;  %v528_v61 = vpop.f32.mrb[23].mxu1 }
 0x121   :  { %v764_v62 = vpack.c.bf16 %v596_v49, %v596_v49  ;;  %v597_v63 = vmax.f32 %v581_v50, 0.0  ;;  %v421_v1 = vadd.f32 %v859_v51, %v1144_v3  ;;  %v584_v0 = vadd.f32 %v798_v42, %v526_v52 }
 0x122   :  { %v602_v2 = vmax.f32 %v586_v56, 0.0  ;;  %v587_v4 = vadd.f32 %v803_v46, %v537_v58  ;;  %v862_v5 = vadd.f32 %v861_v59, %v860_v54  ;;  %v529_v6 = vadd.f32 %v528_v61, %v432_v48 }
 0x123   :  { %677 = vst.msk [vmem:[%s1261_s4 + $0x20] sm:$0xf] %vm668_vm1, %v764_v62  ;;  %v765_v7 = vpack.c.bf16 %v597_v63, %v597_v63  ;;  %v518_v8 = vadd.f32 %v1179_v11, %v421_v1  ;;  %v600_v9 = vmax.f32 %v584_v0, 0.0 }
 0x124   :  { %v770_v10 = vpack.c.bf16 %v602_v2, %v602_v2  ;;  %v603_v12 = vmax.f32 %v587_v4, 0.0  ;;  %v424_v13 = vadd.f32 %v862_v5, %v1144_v3  ;;  %v585_v14 = vadd.f32 %v799_v47, %v529_v6 }
 0x125   :  { %678 = vst.msk [vmem:[%s1261_s4 + $0x24] sm:$0xf] %vm668_vm1, %v765_v7  ;;  %v582_v15 = vadd.f32 %v794_v57, %v518_v8  ;;  %v768_v16 = vpack.c.bf16 %v600_v9, %v600_v9 }
 0x126   :  { %683 = vst.msk [vmem:[%s1261_s4 + $0x38] sm:$0xf] %vm668_vm1, %v770_v10  ;;  %v771_v11 = vpack.c.bf16 %v603_v12, %v603_v12  ;;  %v521_v17 = vadd.f32 %v1188_v20, %v424_v13  ;;  %v601_v18 = vmax.f32 %v585_v14, 0.0 }
 0x127   :  { %v598_v19 = vmax.f32 %v582_v15, 0.0  ;;  %681 = vst.msk [vmem:[%s1261_s4 + $0x30] sm:$0xf] %vm668_vm1, %v768_v16 }
 0x128   :  { %684 = vst.msk [vmem:[%s1261_s4 + $0x3c] sm:$0xf] %vm668_vm1, %v771_v11  ;;  %v583_v3 = vadd.f32 %v795_v53, %v521_v17  ;;  %v769_v21 = vpack.c.bf16 %v601_v18, %v601_v18 }
 0x129   :  { %v766_v22 = vpack.c.bf16 %v598_v19, %v598_v19 }
 0x12a   :  { %v599_v23 = vmax.f32 %v583_v3, 0.0  ;;  %682 = vst.msk [vmem:[%s1261_s4 + $0x34] sm:$0xf] %vm668_vm1, %v769_v21 }
 0x12b   :  { %679 = vst.msk [vmem:[%s1261_s4 + $0x28] sm:$0xf] %vm668_vm1, %v766_v22 }
 0x12c   :  { %v767_v20 = vpack.c.bf16 %v599_v23, %v599_v23 }
 0x12e   :  { %680 = vst.msk [vmem:[%s1261_s4 + $0x2c] sm:$0xf] %vm668_vm1, %v767_v20 }

// kernel: resnet2_forward.21
= control target key start
LH: loop header
LB: loop body
LE: loop exit
PB: predicated region body
PF: predicated region fallthrough
CT: control target
= control target key end

     0   :  { %vm318_vm0 = vcmask 261120   ;;  %vm617_vm1 = vcmask 257024   ;;  %s1132_s1 = inlined_call_operand.vmem [shape: bf16[288,32], index: 1, kind: input, shape index: {}]   ;;  %s1133_s0 = inlined_call_operand.vmem [shape: bf16[128,288], index: 0, kind: input, shape index: {}]   ;;  %s1134_s2 = inlined_call_operand.vmem [shape: f32[1,32], index: 2, kind: input, shape index: {}]   ;;  %s1135_s3 = inlined_call_operand.vmem [shape: bf16[128,32], index: 3, kind: output, shape index: {}]  }
   0x1   :  { %v831_v0 = vld [vmem:[%s1132_s1 + $0x40] sm:$0xff]   ;;  %v833_v2 = vld [vmem:[%s1132_s1 + $0x48] sm:$0xff]   ;;  %v835_v4 = vld [vmem:[%s1132_s1 + $0x50] sm:$0xff]  }
   0x2   :  { %v832_v1 = vld [vmem:[%s1132_s1] sm:$0xff]   ;;  %721 = vmatprep.subr.bf16.mxu0 %v831_v0  ;;  %815 = vmatprep.subr.bf16.mxu1 %v831_v0  ;;  %v834_v3 = vld [vmem:[%s1132_s1 + $0x8] sm:$0xff]   ;;  %v836_v5 = vld [vmem:[%s1132_s1 + $0x10] sm:$0xff]  }
   0x3   :  { %722 = vmatpush3.bf16.msra.mxu0 %v832_v1  ;;  %823 = vmatpush3.bf16.msra.mxu1 %v832_v1  ;;  %v837_v6 = vld [vmem:[%s1132_s1 + $0x58] sm:$0xff]   ;;  %v839_v8 = vld [vmem:[%s1132_s1 + $0x60] sm:$0xff]   ;;  %v841_v10 = vld [vmem:[%s1132_s1 + $0x68] sm:$0xff]  }
   0x4   :  { %723 = vmatprep.subr.bf16.mxu0 %v833_v2  ;;  %816 = vmatprep.subr.bf16.mxu1 %v833_v2  ;;  %v838_v7 = vld [vmem:[%s1132_s1 + $0x18] sm:$0xff]   ;;  %v840_v9 = vld [vmem:[%s1132_s1 + $0x20] sm:$0xff]   ;;  %v842_v13 = vld [vmem:[%s1132_s1 + $0x28] sm:$0xff]  }
   0x5   :  { %v849_v11 = vld [vmem:[%s1133_s0 + $0x4] ss:$12 sps:$4 sm:$0xff]   ;;  %v852_v12 = vld [vmem:[%s1133_s0 + $0x94] ss:$12 sps:$4 sm:$0xff]   ;;  %v845_v16 = vld [vmem:[%s1132_s1 + $0x78] sm:$0xff]  }
   0x6   :  { %v843_v14 = vld [vmem:[%s1132_s1 + $0x70] sm:$0xff]   ;;  %375 = vmatprep.mubr.bf16.mxu0 %v849_v11  ;;  %423 = vmatprep.mubr.bf16.mxu1 %v852_v12  ;;  %v846_v17 = vld [vmem:[%s1132_s1 + $0x38] sm:$0xff]   ;;  %v847_v18 = vld [vmem:[%s1133_s0] ss:$12 sps:$4 sm:$0xff]  }
   0x7   :  { %724 = vmatpush3.bf16.msra.mxu0 %v834_v3  ;;  %824 = vmatpush3.bf16.msra.mxu1 %v834_v3  ;;  %v844_v15 = vld [vmem:[%s1132_s1 + $0x30] sm:$0xff]   ;;  %v853_v19 = vld [vmem:[%s1132_s1 + $0x80] sm:$0xff]   ;;  %v854_v21 = vld [vmem:[%s1133_s0 + $0x1c] ss:$12 sps:$4 sm:$0xff]  }
   0x8   :  { %725 = vmatprep.subr.bf16.mxu0 %v835_v4  ;;  %817 = vmatprep.subr.bf16.mxu1 %v835_v4  ;;  %v850_v20 = vld [vmem:[%s1133_s0 + $0x90] ss:$12 sps:$4 sm:$0xff]   ;;  %v856_v22 = vld [vmem:[%s1133_s0 + $0xac] ss:$12 sps:$4 sm:$0xff]   ;;  %v859_v25 = vld [vmem:[%s1133_s0 + $0xa8] ss:$12 sps:$4 sm:$0xff]  }
   0x9   :  { %v860_v23 = vld [vmem:[%s1132_s1 + $0x88] sm:$0xff]   ;;  %v858_v24 = vld [vmem:[%s1133_s0 + $0x18] ss:$12 sps:$4 sm:$0xff]   ;;  %v861_v26 = vld [vmem:[%s1133_s0 + $0x34] ss:$12 sps:$4 sm:$0xff]  }
   0xa   :  { %v863_v27 = vld [vmem:[%s1133_s0 + $0x8] ss:$12 sps:$4 sm:$0xff]   ;;  %v864_v28 = vld [vmem:[%s1133_s0 + $0x30] ss:$12 sps:$4 sm:$0xff]   ;;  %v865_v29 = vld [vmem:[%s1133_s0 + $0x20] ss:$12 sps:$4 sm:$0xff]  }
   0xb   :  { %726 = vmatpush3.bf16.msra.mxu0 %v836_v5  ;;  %825 = vmatpush3.bf16.msra.mxu1 %v836_v5  ;;  %v866_v30 = vld [vmem:[%s1133_s0 + $0x4c] ss:$12 sps:$4 sm:$0xff]   ;;  %v869_v32 = vld [vmem:[%s1133_s0 + $0x48] ss:$12 sps:$4 sm:$0xff]   ;;  %v870_v33 = vld [vmem:[%s1133_s0 + $0x50] ss:$12 sps:$4 sm:$0xff]  }
   0xc   :  { %727 = vmatprep.subr.bf16.mxu0 %v837_v6  ;;  %818 = vmatprep.subr.bf16.mxu1 %v837_v6  ;;  %v868_v31 = vld [vmem:[%s1133_s0 + $0x38] ss:$12 sps:$4 sm:$0xff]   ;;  %v873_v35 = vld [vmem:[%s1133_s0 + $0x68] ss:$12 sps:$4 sm:$0xff]   ;;  %v874_v36 = vld [vmem:[%s1133_s0 + $0x60] ss:$12 sps:$4 sm:$0xff]  }
   0xd   :  { %v871_v34 = vld [vmem:[%s1133_s0 + $0x64] ss:$12 sps:$4 sm:$0xff]   ;;  %v875_v37 = vld [vmem:[%s1133_s0 + $0x80] ss:$12 sps:$4 sm:$0xff]   ;;  %v876_v38 = vld [vmem:[%s1133_s0 + $0x7c] ss:$12 sps:$4 sm:$0xff]  }
   0xe   :  { %v878_v39 = vld [vmem:[%s1133_s0 + $0x98] ss:$12 sps:$4 sm:$0xff]   ;;  %v880_v41 = vld [vmem:[%s1133_s0 + $0xb0] ss:$12 sps:$4 sm:$0xff]   ;;  %v1046_v2 = vld [vmem:[%s1134_s2] ss:$0 sm:$0xff] }
   0xf   :  { %728 = vmatpush3.bf16.msra.mxu0 %v838_v7  ;;  %826 = vmatpush3.bf16.msra.mxu1 %v838_v7  ;;  %v879_v40 = vld [vmem:[%s1133_s0 + $0x78] ss:$12 sps:$4 sm:$0xff]  }
  0x10   :  { %729 = vmatprep.subr.bf16.mxu0 %v839_v8  ;;  %819 = vmatprep.subr.bf16.mxu1 %v839_v8 }
  0x13   :  { %730 = vmatpush3.bf16.msra.mxu0 %v840_v9  ;;  %827 = vmatpush3.bf16.msra.mxu1 %v840_v9 }
  0x14   :  { %731 = vmatprep.subr.bf16.mxu0 %v841_v10  ;;  %820 = vmatprep.subr.bf16.mxu1 %v841_v10 }
  0x17   :  { %732 = vmatpush3.bf16.msra.mxu0 %v842_v13  ;;  %828 = vmatpush3.bf16.msra.mxu1 %v842_v13 }
  0x18   :  { %733 = vmatprep.subr.bf16.mxu0 %v843_v14  ;;  %821 = vmatprep.subr.bf16.mxu1 %v843_v14 }
  0x1b   :  { %734 = vmatpush3.bf16.msra.mxu0 %v844_v15  ;;  %829 = vmatpush3.bf16.msra.mxu1 %v844_v15 }
  0x1c   :  { %735 = vmatprep.subr.bf16.mxu0 %v845_v16  ;;  %822 = vmatprep.subr.bf16.mxu1 %v845_v16 }
  0x1f   :  { %736 = vmatpush3.bf16.msra.mxu0 %v846_v17  ;;  %830 = vmatpush3.bf16.msra.mxu1 %v846_v17 }
  0x20   :  { %795 = vmatprep.subr.bf16.mxu1 %v853_v19 }
  0x22   :  { %376 = vmatmul.mubr.bf16.vlgmr.msra.gmra.mrb[0].mxu0 %v847_v18  ;;  %424 = vmatmul.mubr.bf16.vlgmr.msra.gmra.mrb[0].mxu1 %v850_v20 }
  0x23   :  { %796 = vmatpush3.bf16.msra.mxu1 %v853_v19  ;;  %383 = vmatprep.mubr.bf16.mxu0 %v854_v21 }
  0x24   :  { %431 = vmatprep.mubr.bf16.mxu1 %v856_v22  ;;  %797 = vmatprep.subr.bf16.mxu1 %v860_v23 }
  0x27   :  { %798 = vmatpush3.bf16.msra.mxu1 %v860_v23 }
  0x2a   :  { %384 = vmatmul.mubr.bf16.gmra.mrb[4].mxu0 %v858_v24  ;;  %432 = vmatmul.mubr.bf16.gmra.mrb[4].mxu1 %v859_v25 }
  0x2b   :  { %391 = vmatprep.mubr.bf16.mxu0 %v861_v26  ;;  %799 = vmatprep.mubr.msk.bf16.mxu1 %vm318_vm0, %v863_v27 }
  0x32   :  { %392 = vmatmul.mubr.bf16.gmra.mrb[8].mxu0 %v864_v28  ;;  %800 = vmatmul.mubr.msk.bf16.vlgmr.msra.gmra.mrb[8].mxu1 %vm318_vm0, %v865_v29 }
  0x33   :  { %399 = vmatprep.mubr.bf16.mxu0 %v866_v30  ;;  %803 = vmatprep.mubr.msk.bf16.mxu1 %vm318_vm0, %v868_v31 }
  0x3a   :  { %400 = vmatmul.mubr.bf16.gmra.mrb[12].mxu0 %v869_v32  ;;  %804 = vmatmul.mubr.msk.bf16.gmra.mrb[12].mxu1 %vm318_vm0, %v870_v33 }
  0x3b   :  { %407 = vmatprep.mubr.bf16.mxu0 %v871_v34  ;;  %807 = vmatprep.mubr.msk.bf16.mxu1 %vm318_vm0, %v873_v35 }
  0x42   :  { %408 = vmatmul.mubr.bf16.gmra.mrb[16].mxu0 %v874_v36  ;;  %808 = vmatmul.mubr.msk.bf16.gmra.mrb[16].mxu1 %vm318_vm0, %v875_v37 }
  0x43   :  { %415 = vmatprep.mubr.bf16.mxu0 %v876_v38  ;;  %811 = vmatprep.mubr.msk.bf16.mxu1 %vm318_vm0, %v878_v39 }
  0x4a   :  { %416 = vmatmul.mubr.bf16.gmra.mrb[20].mxu0 %v879_v40  ;;  %812 = vmatmul.mubr.msk.bf16.gmra.mrb[20].mxu1 %vm318_vm0, %v880_v41 }
  0xf5   :  { %v737_v42 = vpop.f32.mrb[0].mxu0  ;;  %v773_v43 = vpop.f32.mrb[0].mxu1 }
  0xf6   :  { %v738_v44 = vpop.f32.mrb[1].mxu0  ;;  %v774_v45 = vpop.f32.mrb[1].mxu1 }
  0xf7   :  { %v739_v46 = vadd.f32 %v738_v44, %v737_v42  ;;  %v740_v47 = vpop.f32.mrb[2].mxu0  ;;  %v1035_v48 = vadd.f32 %v774_v45, %v773_v43  ;;  %v776_v49 = vpop.f32.mrb[2].mxu1 }
  0xf8   :  { %v741_v50 = vpop.f32.mrb[3].mxu0  ;;  %v777_v51 = vpop.f32.mrb[3].mxu1 }
  0xf9   :  { %v742_v52 = vadd.f32 %v741_v50, %v740_v47  ;;  %v1037_v53 = vadd.f32 %v777_v51, %v776_v49  ;;  %v378_v6 = vadd.f32 %v739_v46, %v1046_v2 }
  0xfb   :  { %v381_v15 = vadd.f32 %v742_v52, %v1046_v2 }
  0xfd   :  { %v743_v54 = vpop.f32.mrb[4].mxu0  ;;  %v779_v55 = vpop.f32.mrb[4].mxu1 }
  0xfe   :  { %v744_v56 = vpop.f32.mrb[5].mxu0  ;;  %v780_v57 = vpop.f32.mrb[5].mxu1 }
  0xff   :  { %v745_v58 = vadd.f32 %v744_v56, %v743_v54  ;;  %v746_v59 = vpop.f32.mrb[6].mxu0  ;;  %v1039_v60 = vadd.f32 %v780_v57, %v779_v55  ;;  %v782_v61 = vpop.f32.mrb[6].mxu1 }
 0x100   :  { %v747_v62 = vpop.f32.mrb[7].mxu0  ;;  %v783_v63 = vpop.f32.mrb[7].mxu1 }
 0x101   :  { %v748_v0 = vadd.f32 %v747_v62, %v746_v59  ;;  %v1041_v1 = vadd.f32 %v783_v63, %v782_v61  ;;  %v386_v3 = vadd.f32 %v745_v58, %v1046_v2 }
 0x103   :  { %v389_v10 = vadd.f32 %v748_v0, %v1046_v2 }
 0x105   :  { %v749_v4 = vpop.f32.mrb[8].mxu0  ;;  %v801_v5 = vpop.f32.mrb[8].mxu1 }
 0x106   :  { %v483_v7 = vadd.f32 %v801_v5, %v386_v3  ;;  %v750_v8 = vpop.f32.mrb[9].mxu0  ;;  %v474_v9 = vpop.f32.mrb[9].mxu1 }
 0x107   :  { %v751_v11 = vadd.f32 %v750_v8, %v749_v4  ;;  %v475_v12 = vadd.f32 %v474_v9, %v378_v6  ;;  %v752_v13 = vpop.f32.mrb[10].mxu0  ;;  %v802_v14 = vpop.f32.mrb[10].mxu1  ;;  %v434_v9 = vadd.f32 %v1039_v60, %v1046_v2 }
 0x108   :  { %v539_v16 = vmax.f32 %v483_v7, 0.0  ;;  %v486_v17 = vadd.f32 %v802_v14, %v389_v10  ;;  %v753_v18 = vpop.f32.mrb[11].mxu0  ;;  %v477_v19 = vpop.f32.mrb[11].mxu1  ;;  %v426_v14 = vadd.f32 %v1035_v48, %v1046_v2 }
 0x109   :  { %v537_v20 = vmax.f32 %v475_v12, 0.0  ;;  %v754_v21 = vadd.f32 %v753_v18, %v752_v13  ;;  %v478_v22 = vadd.f32 %v477_v19, %v381_v15  ;;  %v394_v31 = vadd.f32 %v751_v11, %v1046_v2 }
 0x10a   :  { %v707_v23 = vpack.c.bf16 %v539_v16, %v539_v16  ;;  %v540_v24 = vmax.f32 %v486_v17, 0.0  ;;  %v437_v18 = vadd.f32 %v1041_v1, %v1046_v2 }
 0x10b   :  { %v705_v25 = vpack.c.bf16 %v537_v20, %v537_v20  ;;  %v538_v26 = vmax.f32 %v478_v22, 0.0  ;;  %v397_v38 = vadd.f32 %v754_v21, %v1046_v2 }
 0x10c   :  { %620 = vst.msk [vmem:[%s1135_s3 + $0x8] sm:$0xf] %vm617_vm1, %v707_v23  ;;  %v708_v27 = vpack.c.bf16 %v540_v24, %v540_v24 }
 0x10d   :  { %618 = vst.msk [vmem:[%s1135_s3] sm:$0xf] %vm617_vm1, %v705_v25  ;;  %v706_v28 = vpack.c.bf16 %v538_v26, %v538_v26  ;;  %v755_v29 = vpop.f32.mrb[12].mxu0  ;;  %v805_v30 = vpop.f32.mrb[12].mxu1 }
 0x10e   :  { %621 = vst.msk [vmem:[%s1135_s3 + $0xc] sm:$0xf] %vm617_vm1, %v708_v27  ;;  %v756_v32 = vpop.f32.mrb[13].mxu0  ;;  %v490_v33 = vpop.f32.mrb[13].mxu1  ;;  %v429_v27 = vadd.f32 %v1037_v53, %v1046_v2 }
 0x10f   :  { %619 = vst.msk [vmem:[%s1135_s3 + $0x4] sm:$0xf] %vm617_vm1, %v706_v28  ;;  %v757_v34 = vadd.f32 %v756_v32, %v755_v29  ;;  %v491_v35 = vadd.f32 %v490_v33, %v394_v31  ;;  %v758_v36 = vpop.f32.mrb[14].mxu0  ;;  %v806_v37 = vpop.f32.mrb[14].mxu1 }
 0x110   :  { %v759_v39 = vpop.f32.mrb[15].mxu0  ;;  %v493_v40 = vpop.f32.mrb[15].mxu1 }
 0x111   :  { %v402_v41 = vadd.f32 %v757_v34, %v1046_v2  ;;  %v541_v42 = vmax.f32 %v491_v35, 0.0  ;;  %v760_v43 = vadd.f32 %v759_v39, %v758_v36  ;;  %v494_v44 = vadd.f32 %v493_v40, %v397_v38 }
 0x113   :  { %v499_v45 = vadd.f32 %v805_v30, %v402_v41  ;;  %v709_v46 = vpack.c.bf16 %v541_v42, %v541_v42  ;;  %v405_v47 = vadd.f32 %v760_v43, %v1046_v2  ;;  %v542_v49 = vmax.f32 %v494_v44, 0.0 }
 0x115   :  { %v543_v50 = vmax.f32 %v499_v45, 0.0  ;;  %622 = vst.msk [vmem:[%s1135_s3 + $0x10] sm:$0xf] %vm617_vm1, %v709_v46  ;;  %v502_v51 = vadd.f32 %v806_v37, %v405_v47  ;;  %v710_v52 = vpack.c.bf16 %v542_v49, %v542_v49  ;;  %v761_v54 = vpop.f32.mrb[16].mxu0  ;;  %v809_v55 = vpop.f32.mrb[16].mxu1 }
 0x116   :  { %v762_v56 = vpop.f32.mrb[17].mxu0  ;;  %v506_v57 = vpop.f32.mrb[17].mxu1 }
 0x117   :  { %v711_v58 = vpack.c.bf16 %v543_v50, %v543_v50  ;;  %v544_v59 = vmax.f32 %v502_v51, 0.0  ;;  %623 = vst.msk [vmem:[%s1135_s3 + $0x14] sm:$0xf] %vm617_vm1, %v710_v52  ;;  %v763_v61 = vadd.f32 %v762_v56, %v761_v54  ;;  %v764_v62 = vpop.f32.mrb[18].mxu0  ;;  %v810_v63 = vpop.f32.mrb[18].mxu1 }
 0x118   :  { %v765_v0 = vpop.f32.mrb[19].mxu0  ;;  %v509_v3 = vpop.f32.mrb[19].mxu1 }
 0x119   :  { %624 = vst.msk [vmem:[%s1135_s3 + $0x18] sm:$0xf] %vm617_vm1, %v711_v58  ;;  %v712_v4 = vpack.c.bf16 %v544_v59, %v544_v59  ;;  %v410_v5 = vadd.f32 %v763_v61, %v1046_v2  ;;  %v766_v6 = vadd.f32 %v765_v0, %v764_v62 }
 0x11b   :  { %625 = vst.msk [vmem:[%s1135_s3 + $0x1c] sm:$0xf] %vm617_vm1, %v712_v4  ;;  %v507_v7 = vadd.f32 %v506_v57, %v410_v5  ;;  %v413_v8 = vadd.f32 %v766_v6, %v1046_v2 }
 0x11d   :  { %v545_v10 = vmax.f32 %v507_v7, 0.0  ;;  %v510_v11 = vadd.f32 %v509_v3, %v413_v8  ;;  %v767_v12 = vpop.f32.mrb[20].mxu0  ;;  %v813_v13 = vpop.f32.mrb[20].mxu1 }
 0x11e   :  { %v531_v15 = vadd.f32 %v813_v13, %v434_v9  ;;  %v768_v16 = vpop.f32.mrb[21].mxu0  ;;  %v522_v17 = vpop.f32.mrb[21].mxu1 }
 0x11f   :  { %v713_v19 = vpack.c.bf16 %v545_v10, %v545_v10  ;;  %v546_v20 = vmax.f32 %v510_v11, 0.0  ;;  %v769_v21 = vadd.f32 %v768_v16, %v767_v12  ;;  %v523_v22 = vadd.f32 %v522_v17, %v426_v14  ;;  %v770_v23 = vpop.f32.mrb[22].mxu0  ;;  %v814_v24 = vpop.f32.mrb[22].mxu1 }
 0x120   :  { %v551_v60 = vmax.f32 %v531_v15, 0.0  ;;  %v534_v25 = vadd.f32 %v814_v24, %v437_v18  ;;  %v771_v26 = vpop.f32.mrb[23].mxu0  ;;  %v525_v28 = vpop.f32.mrb[23].mxu1 }
 0x121   :  { %626 = vst.msk [vmem:[%s1135_s3 + $0x20] sm:$0xf] %vm617_vm1, %v713_v19  ;;  %v714_v48 = vpack.c.bf16 %v546_v20, %v546_v20  ;;  %v418_v1 = vadd.f32 %v769_v21, %v1046_v2  ;;  %v549_v29 = vmax.f32 %v523_v22, 0.0  ;;  %v772_v30 = vadd.f32 %v771_v26, %v770_v23 }
 0x122   :  { %v719_v31 = vpack.c.bf16 %v551_v60, %v551_v60  ;;  %v552_v32 = vmax.f32 %v534_v25, 0.0  ;;  %v526_v33 = vadd.f32 %v525_v28, %v429_v27 }
 0x123   :  { %627 = vst.msk [vmem:[%s1135_s3 + $0x24] sm:$0xf] %vm617_vm1, %v714_v48  ;;  %v515_v53 = vadd.f32 %v809_v55, %v418_v1  ;;  %v717_v34 = vpack.c.bf16 %v549_v29, %v549_v29  ;;  %v421_v35 = vadd.f32 %v772_v30, %v1046_v2 }
 0x124   :  { %632 = vst.msk [vmem:[%s1135_s3 + $0x38] sm:$0xf] %vm617_vm1, %v719_v31  ;;  %v720_v36 = vpack.c.bf16 %v552_v32, %v552_v32  ;;  %v550_v37 = vmax.f32 %v526_v33, 0.0 }
 0x125   :  { %v547_v38 = vmax.f32 %v515_v53, 0.0  ;;  %630 = vst.msk [vmem:[%s1135_s3 + $0x30] sm:$0xf] %vm617_vm1, %v717_v34  ;;  %v518_v39 = vadd.f32 %v810_v63, %v421_v35 }
 0x126   :  { %633 = vst.msk [vmem:[%s1135_s3 + $0x3c] sm:$0xf] %vm617_vm1, %v720_v36  ;;  %v718_v2 = vpack.c.bf16 %v550_v37, %v550_v37 }
 0x127   :  { %v715_v40 = vpack.c.bf16 %v547_v38, %v547_v38  ;;  %v548_v41 = vmax.f32 %v518_v39, 0.0 }
 0x128   :  { %631 = vst.msk [vmem:[%s1135_s3 + $0x34] sm:$0xf] %vm617_vm1, %v718_v2 }
 0x129   :  { %628 = vst.msk [vmem:[%s1135_s3 + $0x28] sm:$0xf] %vm617_vm1, %v715_v40  ;;  %v716_v42 = vpack.c.bf16 %v548_v41, %v548_v41 }
 0x12b   :  { %629 = vst.msk [vmem:[%s1135_s3 + $0x2c] sm:$0xf] %vm617_vm1, %v716_v42 }

// kernel: resnet2_forward.23
= control target key start
LH: loop header
LB: loop body
LE: loop exit
PB: predicated region body
PF: predicated region fallthrough
CT: control target
= control target key end

     0   :  { %vm206_vm0 = vcmask 261120   ;;  %vm331_vm1 = vcmask 519168   ;;  %s615_s1 = inlined_call_operand.vmem [shape: bf16[288,128], index: 1, kind: input, shape index: {}]   ;;  %s616_s0 = inlined_call_operand.vmem [shape: bf16[32,288], index: 0, kind: input, shape index: {}]   ;;  %s617_s2 = inlined_call_operand.vmem [shape: f32[1,128], index: 2, kind: input, shape index: {}]   ;;  %s618_s3 = inlined_call_operand.vmem [shape: bf16[32,64], index: 3, kind: output, shape index: {0}]   ;;  %s619_s4 = inlined_call_operand.vmem [shape: bf16[32,64], index: 4, kind: output, shape index: {1}]  }
   0x1   :  { %v456_v0 = vld [vmem:[%s615_s1 + $0x40] sm:$0xff]   ;;  %v458_v2 = vld [vmem:[%s615_s1 + $0x48] sm:$0xff]   ;;  %v460_v4 = vld [vmem:[%s615_s1 + $0x50] sm:$0xff]  }
   0x2   :  { %v457_v1 = vld [vmem:[%s615_s1] sm:$0xff]   ;;  %415 = vmatprep.subr.bf16.mxu0 %v456_v0  ;;  %v459_v3 = vld [vmem:[%s615_s1 + $0x8] sm:$0xff]   ;;  %v461_v5 = vld [vmem:[%s615_s1 + $0x10] sm:$0xff]  }
   0x3   :  { %416 = vmatpush3.bf16.msra.mxu0 %v457_v1  ;;  %v462_v6 = vld [vmem:[%s615_s1 + $0x58] sm:$0xff]   ;;  %v464_v8 = vld [vmem:[%s615_s1 + $0x60] sm:$0xff]   ;;  %v466_v11 = vld [vmem:[%s615_s1 + $0x68] sm:$0xff]  }
   0x4   :  { %417 = vmatprep.subr.bf16.mxu0 %v458_v2  ;;  %v463_v7 = vld [vmem:[%s615_s1 + $0x18] sm:$0xff]   ;;  %v465_v9 = vld [vmem:[%s615_s1 + $0x20] sm:$0xff]   ;;  %v467_v12 = vld [vmem:[%s615_s1 + $0x28] sm:$0xff]  }
   0x5   :  { %v471_v10 = vld [vmem:[%s615_s1 + $0x80] sm:$0xff]   ;;  %v468_v13 = vld [vmem:[%s615_s1 + $0x70] sm:$0xff]   ;;  %v476_v15 = vld [vmem:[%s615_s1 + $0x88] sm:$0xff]  }
   0x6   :  { %447 = vmatprep.subr.bf16.mxu1 %v471_v10  ;;  %v475_v14 = vld [vmem:[%s616_s0 + $0x4] ss:$12 sps:$4 sm:$0xff]   ;;  %v477_v16 = vld [vmem:[%s616_s0 + $0x8] ss:$12 sps:$4 sm:$0xff]   ;;  %v478_v17 = vld [vmem:[%s616_s0 + $0x20] ss:$12 sps:$4 sm:$0xff]  }
   0x7   :  { %418 = vmatpush3.bf16.msra.mxu0 %v459_v3  ;;  %448 = vmatpush3.bf16.msra.mxu1 %v471_v10  ;;  %v469_v18 = vld [vmem:[%s615_s1 + $0x30] sm:$0xff]   ;;  %v470_v19 = vld [vmem:[%s615_s1 + $0x78] sm:$0xff]   ;;  %v473_v21 = vld [vmem:[%s616_s0] ss:$12 sps:$4 sm:$0xff]  }
   0x8   :  { %419 = vmatprep.subr.bf16.mxu0 %v460_v4  ;;  %245 = vmatprep.mubr.bf16.mxu0 %v475_v14  ;;  %v472_v20 = vld [vmem:[%s615_s1 + $0x38] sm:$0xff]   ;;  %v372_v30 = vld [vmem:[%s617_s2] ss:$0 sm:$0xff] }
   0x9   :  { %449 = vmatprep.subr.bf16.mxu1 %v476_v15  ;;  %451 = vmatprep.mubr.msk.bf16.mxu1 %vm206_vm0, %v477_v16  ;;  %v479_v22 = vld [vmem:[%s616_s0 + $0x1c] ss:$12 sps:$4 sm:$0xff]   ;;  %v481_v23 = vld [vmem:[%s616_s0 + $0x18] ss:$12 sps:$4 sm:$0xff]   ;;  %s482_s0 = smov 64  }
   0xb   :  { %420 = vmatpush3.bf16.msra.mxu0 %v461_v5  ;;  %450 = vmatpush3.bf16.msra.mxu1 %v476_v15 }
   0xc   :  { %421 = vmatprep.subr.bf16.mxu0 %v462_v6 }
   0xe   :  { %452 = vmatmul.mubr.msk.bf16.vlgmr.msra.gmra.mrb[0].mxu1 %vm206_vm0, %v478_v17 }
   0xf   :  { %422 = vmatpush3.bf16.msra.mxu0 %v463_v7 }
  0x10   :  { %423 = vmatprep.subr.bf16.mxu0 %v464_v8 }
  0x13   :  { %424 = vmatpush3.bf16.msra.mxu0 %v465_v9 }
  0x14   :  { %425 = vmatprep.subr.bf16.mxu0 %v466_v11 }
  0x17   :  { %426 = vmatpush3.bf16.msra.mxu0 %v467_v12 }
  0x18   :  { %427 = vmatprep.subr.bf16.mxu0 %v468_v13 }
  0x1b   :  { %428 = vmatpush3.bf16.msra.mxu0 %v469_v18 }
  0x1c   :  { %429 = vmatprep.subr.bf16.mxu0 %v470_v19 }
  0x1f   :  { %430 = vmatpush3.bf16.msra.mxu0 %v472_v20 }
  0x22   :  { %246 = vmatmul.mubr.bf16.vlgmr.msra.gmra.mrb[0].mxu0 %v473_v21 }
  0x23   :  { %253 = vmatprep.mubr.bf16.mxu0 %v479_v22 }
  0x2a   :  { %254 = vmatmul.mubr.bf16.gmra.mrb[4].mxu0 %v481_v23 }
  0xe1   :  { %v453_v24 = vpop.f32.mrb[0].mxu1 }
  0xe2   :  { %v296_v25 = vpop.f32.mrb[1].mxu1 }
  0xe3   :  { %v454_v26 = vpop.f32.mrb[2].mxu1 }
  0xe4   :  { %v299_v27 = vpop.f32.mrb[3].mxu1 }
  0xf5   :  { %v431_v28 = vpop.f32.mrb[0].mxu0 }
  0xf6   :  { %v432_v29 = vpop.f32.mrb[1].mxu0 }
  0xf7   :  { %v433_v31 = vadd.f32 %v432_v29, %v431_v28  ;;  %v434_v32 = vpop.f32.mrb[2].mxu0 }
  0xf8   :  { %v435_v33 = vpop.f32.mrb[3].mxu0 }
  0xf9   :  { %v436_v34 = vadd.f32 %v435_v33, %v434_v32  ;;  %v248_v35 = vadd.f32 %v433_v31, %v372_v30 }
  0xfb   :  { %v297_v36 = vadd.f32 %v296_v25, %v248_v35  ;;  %v251_v37 = vadd.f32 %v436_v34, %v372_v30 }
  0xfd   :  { %v311_v38 = vmax.f32 %v297_v36, 0.0  ;;  %v300_v39 = vadd.f32 %v299_v27, %v251_v37  ;;  %v437_v40 = vpop.f32.mrb[4].mxu0  ;;  %v411_v41 = vpack.c.bf16 %v297_v36, %v297_v36 }
  0xfe   :  { %v438_v42 = vpop.f32.mrb[5].mxu0 }
  0xff   :  { %v407_v43 = vpack.c.bf16 %v311_v38, %v311_v38  ;;  %v312_v44 = vmax.f32 %v300_v39, 0.0  ;;  %v439_v45 = vadd.f32 %v438_v42, %v437_v40  ;;  %v440_v46 = vpop.f32.mrb[6].mxu0  ;;  %348 = vrot.lane.b32.xlu0 %v411_v41, %s482_s0  ;;  %v412_v49 = vpack.c.bf16 %v300_v39, %v300_v39 }
 0x100   :  { %v441_v47 = vpop.f32.mrb[7].mxu0 }
 0x101   :  { %332 = vst.msk [vmem:[%s618_s3] sm:$0xf] %vm331_vm1, %v407_v43  ;;  %v408_v48 = vpack.c.bf16 %v312_v44, %v312_v44  ;;  %v256_v50 = vadd.f32 %v439_v45, %v372_v30  ;;  %v442_v51 = vadd.f32 %v441_v47, %v440_v46 }
 0x103   :  { %333 = vst.msk [vmem:[%s618_s3 + $0x4] sm:$0xf] %vm331_vm1, %v408_v48  ;;  %v259_v52 = vadd.f32 %v442_v51, %v372_v30  ;;  %350 = vrot.lane.b32.xlu0 %v412_v49, %s482_s0  ;;  %v305_v53 = vadd.f32 %v453_v24, %v256_v50 }
 0x105   :  { %v308_v54 = vadd.f32 %v454_v26, %v259_v52  ;;  %v413_v55 = vpack.c.bf16 %v305_v53, %v305_v53  ;;  %v313_v56 = vmax.f32 %v305_v53, 0.0 }
 0x107   :  { %v314_v57 = vmax.f32 %v308_v54, 0.0  ;;  %352 = vrot.lane.b32.xlu1 %v413_v55, %s482_s0  ;;  %v409_v58 = vpack.c.bf16 %v313_v56, %v313_v56  ;;  %v414_v60 = vpack.c.bf16 %v308_v54, %v308_v54 }
 0x109   :  { %v410_v59 = vpack.c.bf16 %v314_v57, %v314_v57  ;;  %334 = vst.msk [vmem:[%s618_s3 + $0x8] sm:$0xf] %vm331_vm1, %v409_v58 }
 0x10b   :  { %335 = vst.msk [vmem:[%s618_s3 + $0xc] sm:$0xf] %vm331_vm1, %v410_v59  ;;  %354 = vrot.lane.b32.xlu1 %v414_v60, %s482_s0 }
 0x171   :  { %v349_v61 = vpop.permute.xlu0 %348 }
 0x172   :  { %360 = vst.msk [vmem:[%s619_s4] sm:$0xf] %vm331_vm1, %v349_v61 }
 0x175   :  { %v351_v62 = vpop.permute.xlu0 %350 }
 0x176   :  { %361 = vst.msk [vmem:[%s619_s4 + $0x4] sm:$0xf] %vm331_vm1, %v351_v62 }
 0x179   :  { %v353_v63 = vpop.permute.xlu1 %352 }
 0x17a   :  { %362 = vst.msk [vmem:[%s619_s4 + $0x8] sm:$0xf] %vm331_vm1, %v353_v63 }
 0x17d   :  { %v355_v0 = vpop.permute.xlu1 %354 }
 0x17e   :  { %363 = vst.msk [vmem:[%s619_s4 + $0xc] sm:$0xf] %vm331_vm1, %v355_v0 }

// kernel: resnet2_forward.24
= control target key start
LH: loop header
LB: loop body
LE: loop exit
PB: predicated region body
PF: predicated region fallthrough
CT: control target
= control target key end

     0   :  { %vm375_vm0 = vcmask 523264   ;;  %vm561_vm1 = vcmask 519168   ;;  %s944_s1 = inlined_call_operand.vmem [shape: bf16[576,64], index: 1, kind: input, shape index: {}]   ;;  %s945_s0 = inlined_call_operand.vmem [shape: bf16[32,576], index: 0, kind: input, shape index: {}]   ;;  %s946_s2 = inlined_call_operand.vmem [shape: f32[1,64], index: 2, kind: input, shape index: {}]   ;;  %s947_s3 = inlined_call_operand.vmem [shape: bf16[32,64], index: 3, kind: input, shape index: {}]   ;;  %s948_s4 = inlined_call_operand.vmem [shape: bf16[32,64], index: 4, kind: output, shape index: {}]  }
   0x1   :  { %v710_v0 = vld [vmem:[%s944_s1 + $0x40] sm:$0xff]   ;;  %v714_v4 = vld [vmem:[%s944_s1 + $0x48] sm:$0xff]   ;;  %v718_v8 = vld [vmem:[%s944_s1 + $0x50] sm:$0xff]  }
   0x2   :  { %v711_v1 = vld [vmem:[%s944_s1] sm:$0xff]   ;;  %636 = vmatprep.subr.bf16.mxu0 %v710_v0  ;;  %v715_v5 = vld [vmem:[%s944_s1 + $0x8] sm:$0xff]   ;;  %v719_v9 = vld [vmem:[%s944_s1 + $0x10] sm:$0xff]  }
   0x3   :  { %v712_v2 = vld [vmem:[%s944_s1 + $0xc0] sm:$0xff]   ;;  %637 = vmatpush3.bf16.msra.mxu0 %v711_v1  ;;  %v716_v6 = vld [vmem:[%s944_s1 + $0xc8] sm:$0xff]   ;;  %v720_v10 = vld [vmem:[%s944_s1 + $0xd0] sm:$0xff]  }
   0x4   :  { %v713_v3 = vld [vmem:[%s944_s1 + $0x80] sm:$0xff]   ;;  %664 = vmatprep.subr.bf16.mxu1 %v712_v2  ;;  %638 = vmatprep.subr.bf16.mxu0 %v714_v4  ;;  %v717_v7 = vld [vmem:[%s944_s1 + $0x88] sm:$0xff]   ;;  %v721_v11 = vld [vmem:[%s944_s1 + $0x90] sm:$0xff]  }
   0x5   :  { %665 = vmatpush3.bf16.msra.mxu1 %v713_v3  ;;  %v722_v12 = vld [vmem:[%s944_s1 + $0x58] sm:$0xff]   ;;  %v726_v16 = vld [vmem:[%s944_s1 + $0x60] sm:$0xff]   ;;  %v730_v20 = vld [vmem:[%s944_s1 + $0x68] sm:$0xff]  }
   0x6   :  { %666 = vmatprep.subr.bf16.mxu1 %v716_v6  ;;  %v723_v13 = vld [vmem:[%s944_s1 + $0x18] sm:$0xff]   ;;  %v727_v17 = vld [vmem:[%s944_s1 + $0x20] sm:$0xff]   ;;  %v731_v21 = vld [vmem:[%s944_s1 + $0x28] sm:$0xff]  }
   0x7   :  { %639 = vmatpush3.bf16.msra.mxu0 %v715_v5  ;;  %v724_v14 = vld [vmem:[%s944_s1 + $0xd8] sm:$0xff]   ;;  %v728_v18 = vld [vmem:[%s944_s1 + $0xe0] sm:$0xff]   ;;  %v732_v22 = vld [vmem:[%s944_s1 + $0xe8] sm:$0xff]  }
   0x8   :  { %640 = vmatprep.subr.bf16.mxu0 %v718_v8  ;;  %v725_v15 = vld [vmem:[%s944_s1 + $0x98] sm:$0xff]   ;;  %v729_v19 = vld [vmem:[%s944_s1 + $0xa0] sm:$0xff]   ;;  %v733_v23 = vld [vmem:[%s944_s1 + $0xa8] sm:$0xff]  }
   0x9   :  { %667 = vmatpush3.bf16.msra.mxu1 %v717_v7  ;;  %v734_v24 = vld [vmem:[%s944_s1 + $0x70] sm:$0xff]   ;;  %v738_v28 = vld [vmem:[%s944_s1 + $0x78] sm:$0xff]   ;;  %v745_v34 = vld [vmem:[%s944_s1 + $0x100] sm:$0xff]  }
   0xa   :  { %668 = vmatprep.subr.bf16.mxu1 %v720_v10  ;;  %v735_v25 = vld [vmem:[%s944_s1 + $0x30] sm:$0xff]   ;;  %v739_v29 = vld [vmem:[%s944_s1 + $0x38] sm:$0xff]   ;;  %v748_v36 = vld [vmem:[%s945_s0 + $0xc] ss:$20 sps:$4 sm:$0xff]  }
   0xb   :  { %641 = vmatpush3.bf16.msra.mxu0 %v719_v9  ;;  %v736_v26 = vld [vmem:[%s944_s1 + $0xf0] sm:$0xff]   ;;  %v740_v30 = vld [vmem:[%s944_s1 + $0xf8] sm:$0xff]   ;;  %v749_v37 = vld [vmem:[%s944_s1 + $0x108] sm:$0xff]   ;;  %463 = vmatprep.mubr.bf16.mxu1 %v748_v36 }
   0xc   :  { %642 = vmatprep.subr.bf16.mxu0 %v722_v12  ;;  %v737_v27 = vld [vmem:[%s944_s1 + $0xb0] sm:$0xff]   ;;  %v743_v32 = vld [vmem:[%s945_s0 + $0x4] ss:$20 sps:$4 sm:$0xff]   ;;  %v746_v35 = vld [vmem:[%s945_s0 + $0x8] ss:$20 sps:$4 sm:$0xff]  }
   0xd   :  { %669 = vmatpush3.bf16.msra.mxu1 %v721_v11  ;;  %v741_v31 = vld [vmem:[%s945_s0] ss:$20 sps:$4 sm:$0xff]   ;;  %v744_v33 = vld [vmem:[%s944_s1 + $0xb8] sm:$0xff]   ;;  %414 = vmatprep.mubr.bf16.mxu0 %v743_v32  ;;  %v756_v42 = vld [vmem:[%s945_s0 + $0x30] ss:$20 sps:$4 sm:$0xff]  }
   0xe   :  { %670 = vmatprep.subr.bf16.mxu1 %v724_v14  ;;  %v750_v38 = vld [vmem:[%s945_s0 + $0x2c] ss:$20 sps:$4 sm:$0xff]   ;;  %v752_v39 = vld [vmem:[%s945_s0 + $0x28] ss:$20 sps:$4 sm:$0xff]   ;;  %v753_v40 = vld [vmem:[%s944_s1 + $0x110] sm:$0xff]  }
   0xf   :  { %643 = vmatpush3.bf16.msra.mxu0 %v723_v13  ;;  %v754_v41 = vld [vmem:[%s945_s0 + $0x34] ss:$20 sps:$4 sm:$0xff]   ;;  %v757_v43 = vld [vmem:[%s944_s1 + $0x118] sm:$0xff]   ;;  %v758_v44 = vld [vmem:[%s945_s0 + $0x10] ss:$20 sps:$4 sm:$0xff]  }
  0x10   :  { %644 = vmatprep.subr.bf16.mxu0 %v726_v16  ;;  %v759_v45 = vld [vmem:[%s945_s0 + $0x38] ss:$20 sps:$4 sm:$0xff]   ;;  %v570_v47 = vld [vmem:[%s946_s2] ss:$0 sm:$0xff] }
  0x11   :  { %671 = vmatpush3.bf16.msra.mxu1 %v725_v15  ;;  %v635_v10 = vld [vmem:[%s947_s3 + $0x8] sm:$0xff]   ;;  %v628_v13 = vld [vmem:[%s947_s3] sm:$0xff]  }
  0x12   :  { %672 = vmatprep.subr.bf16.mxu1 %v728_v18  ;;  %v633_v16 = vunpack.c.l.bf16 %v635_v10  ;;  %v629_v18 = vunpack.c.l.bf16 %v628_v13 }
  0x13   :  { %645 = vmatpush3.bf16.msra.mxu0 %v727_v17 }
  0x14   :  { %646 = vmatprep.subr.bf16.mxu0 %v730_v20 }
  0x15   :  { %673 = vmatpush3.bf16.msra.mxu1 %v729_v19 }
  0x16   :  { %674 = vmatprep.subr.bf16.mxu1 %v732_v22  ;;  %v634_v22 = vunpack.c.h.bf16 %v635_v10 }
  0x17   :  { %647 = vmatpush3.bf16.msra.mxu0 %v731_v21 }
  0x18   :  { %648 = vmatprep.subr.bf16.mxu0 %v734_v24 }
  0x19   :  { %675 = vmatpush3.bf16.msra.mxu1 %v733_v23 }
  0x1a   :  { %676 = vmatprep.subr.bf16.mxu1 %v736_v26 }
  0x1b   :  { %649 = vmatpush3.bf16.msra.mxu0 %v735_v25  ;;  %v630_v25 = vunpack.c.h.bf16 %v628_v13 }
  0x1c   :  { %650 = vmatprep.subr.bf16.mxu0 %v738_v28 }
  0x1d   :  { %677 = vmatpush3.bf16.msra.mxu1 %v737_v27 }
  0x1e   :  { %678 = vmatprep.subr.bf16.mxu1 %v740_v30 }
  0x1f   :  { %651 = vmatpush3.bf16.msra.mxu0 %v739_v29 }
  0x20   :  { %698 = vmatprep.subr.bf16.mxu0 %v745_v34 }
  0x21   :  { %679 = vmatpush3.bf16.msra.mxu1 %v744_v33 }
  0x22   :  { %415 = vmatmul.mubr.bf16.vlgmr.msra.gmra.mrb[0].mxu0 %v741_v31 }
  0x23   :  { %699 = vmatpush3.bf16.msra.mxu0 %v745_v34  ;;  %422 = vmatprep.mubr.bf16.mxu0 %v750_v38 }
  0x24   :  { %464 = vmatmul.mubr.bf16.vlgmr.msra.gmra.mrb[0].mxu1 %v746_v35  ;;  %700 = vmatprep.subr.bf16.mxu0 %v749_v37 }
  0x25   :  { %471 = vmatprep.mubr.bf16.mxu1 %v754_v41 }
  0x27   :  { %701 = vmatpush3.bf16.msra.mxu0 %v749_v37 }
  0x28   :  { %702 = vmatprep.subr.bf16.mxu0 %v753_v40 }
  0x2a   :  { %423 = vmatmul.mubr.bf16.gmra.mrb[4].mxu0 %v752_v39 }
  0x2b   :  { %706 = vmatprep.mubr.msk.bf16.mxu0 %vm375_vm0, %v758_v44  ;;  %703 = vmatpush3.bf16.msra.mxu0 %v753_v40 }
  0x2c   :  { %472 = vmatmul.mubr.bf16.gmra.mrb[4].mxu1 %v756_v42  ;;  %704 = vmatprep.subr.bf16.mxu0 %v757_v43 }
  0x2f   :  { %705 = vmatpush3.bf16.msra.mxu0 %v757_v43 }
  0x32   :  { %707 = vmatmul.mubr.msk.bf16.vlgmr.msra.gmra.mrb[8].mxu0 %vm375_vm0, %v759_v45 }
  0xf5   :  { %v652_v46 = vpop.f32.mrb[0].mxu0 }
  0xf6   :  { %v653_v48 = vpop.f32.mrb[1].mxu0 }
  0xf7   :  { %v654_v49 = vadd.f32 %v653_v48, %v652_v46  ;;  %v655_v50 = vpop.f32.mrb[2].mxu0  ;;  %v680_v51 = vpop.f32.mrb[0].mxu1 }
  0xf8   :  { %v656_v52 = vpop.f32.mrb[3].mxu0  ;;  %v681_v55 = vpop.f32.mrb[1].mxu1 }
  0xf9   :  { %v417_v53 = vadd.f32 %v654_v49, %v570_v47  ;;  %v657_v54 = vadd.f32 %v656_v52, %v655_v50  ;;  %v682_v56 = vadd.f32 %v681_v55, %v680_v51  ;;  %v683_v57 = vpop.f32.mrb[2].mxu1 }
  0xfa   :  { %v684_v59 = vpop.f32.mrb[3].mxu1 }
  0xfb   :  { %v420_v58 = vadd.f32 %v657_v54, %v570_v47  ;;  %v685_v60 = vadd.f32 %v684_v59, %v683_v57  ;;  %v466_v61 = vadd.f32 %v682_v56, %v417_v53 }
  0xfd   :  { %v658_v62 = vpop.f32.mrb[4].mxu0  ;;  %v469_v0 = vadd.f32 %v685_v60, %v420_v58 }
  0xfe   :  { %v659_v63 = vpop.f32.mrb[5].mxu0 }
  0xff   :  { %v660_v1 = vadd.f32 %v659_v63, %v658_v62  ;;  %v661_v2 = vpop.f32.mrb[6].mxu0  ;;  %v686_v3 = vpop.f32.mrb[4].mxu1 }
 0x100   :  { %v662_v4 = vpop.f32.mrb[7].mxu0  ;;  %v687_v7 = vpop.f32.mrb[5].mxu1 }
 0x101   :  { %v425_v5 = vadd.f32 %v660_v1, %v570_v47  ;;  %v663_v6 = vadd.f32 %v662_v4, %v661_v2  ;;  %v688_v8 = vadd.f32 %v687_v7, %v686_v3  ;;  %v689_v9 = vpop.f32.mrb[6].mxu1 }
 0x102   :  { %v690_v12 = vpop.f32.mrb[7].mxu1 }
 0x103   :  { %v428_v11 = vadd.f32 %v663_v6, %v570_v47  ;;  %v691_v14 = vadd.f32 %v690_v12, %v689_v9  ;;  %v474_v15 = vadd.f32 %v688_v8, %v425_v5 }
 0x105   :  { %v708_v17 = vpop.f32.mrb[8].mxu0  ;;  %v477_v19 = vadd.f32 %v691_v14, %v428_v11 }
 0x106   :  { %v523_v20 = vadd.f32 %v708_v17, %v474_v15  ;;  %v514_v21 = vpop.f32.mrb[9].mxu0 }
 0x107   :  { %v515_v23 = vadd.f32 %v514_v21, %v466_v61  ;;  %v709_v24 = vpop.f32.mrb[10].mxu0 }
 0x108   :  { %v539_v26 = vadd.f32 %v633_v16, %v523_v20  ;;  %v526_v27 = vadd.f32 %v709_v24, %v477_v19  ;;  %v517_v28 = vpop.f32.mrb[11].mxu0 }
 0x109   :  { %v537_v29 = vadd.f32 %v629_v18, %v515_v23  ;;  %v518_v30 = vadd.f32 %v517_v28, %v469_v0 }
 0x10a   :  { %v543_v31 = vmax.f32 %v539_v26, 0.0  ;;  %v540_v32 = vadd.f32 %v634_v22, %v526_v27 }
 0x10b   :  { %v541_v33 = vmax.f32 %v537_v29, 0.0  ;;  %v538_v34 = vadd.f32 %v630_v25, %v518_v30 }
 0x10c   :  { %v625_v35 = vpack.c.bf16 %v543_v31, %v543_v31  ;;  %v544_v36 = vmax.f32 %v540_v32, 0.0 }
 0x10d   :  { %v623_v37 = vpack.c.bf16 %v541_v33, %v541_v33  ;;  %v542_v38 = vmax.f32 %v538_v34, 0.0 }
 0x10e   :  { %564 = vst.msk [vmem:[%s948_s4 + $0x8] sm:$0xf] %vm561_vm1, %v625_v35  ;;  %v626_v39 = vpack.c.bf16 %v544_v36, %v544_v36 }
 0x10f   :  { %562 = vst.msk [vmem:[%s948_s4] sm:$0xf] %vm561_vm1, %v623_v37  ;;  %v624_v40 = vpack.c.bf16 %v542_v38, %v542_v38 }
 0x110   :  { %565 = vst.msk [vmem:[%s948_s4 + $0xc] sm:$0xf] %vm561_vm1, %v626_v39 }
 0x111   :  { %563 = vst.msk [vmem:[%s948_s4 + $0x4] sm:$0xf] %vm561_vm1, %v624_v40 }

// kernel: resnet2_forward.27
= control target key start
LH: loop header
LB: loop body
LE: loop exit
PB: predicated region body
PF: predicated region fallthrough
CT: control target
= control target key end

     0   :  { %v216_v1 = vmov 0.0   ;;  %vm217_vm0 = vmmov 0   ;;  %vm24_vm1 = vcmask 523264   ;;  %s277_s0 = inlined_call_operand.vmem [shape: bf16[2,16,64], index: 0, kind: input, shape index: {}]   ;;  %s278_s1 = inlined_call_operand.vmem [shape: bf16[64,10], index: 1, kind: input, shape index: {}]   ;;  %s279_s2 = inlined_call_operand.vmem [shape: f32[1,10], index: 2, kind: input, shape index: {}]   ;;  %s280_s3 = inlined_call_operand.hbm [shape: f32[2,10], index: 3, kind: output, shape index: {}]  }
   0x1   :  { %v188_v0 = vld [vmem:[%s278_s1] sm:$0xff]   ;;  %173 = vmatprep.subr.bf16.mxu0 %v216_v1  ;;  %v189_v2 = vld [vmem:[%s278_s1 + $0x8] sm:$0xff]   ;;  %181 = vmatprep.mubr.msk.bf16.mxu0 %vm217_vm0, %v216_v1 }
   0x2   :  { %174 = vmatpush3.bf16.msra.mxu0 %v188_v0  ;;  %v160_v3 = vld [vmem:[%s277_s0] sm:$0xff]   ;;  %v167_v4 = vld [vmem:[%s277_s0 + $0x8] sm:$0xff]  }
   0x3   :  { %175 = vmatprep.subr.bf16.mxu0 %v216_v1  ;;  %v161_v5 = vunpack.c.l.bf16 %v160_v3  ;;  %v162_v6 = vunpack.c.h.bf16 %v160_v3  ;;  %v165_v7 = vunpack.c.l.bf16 %v167_v4  ;;  %v166_v8 = vunpack.c.h.bf16 %v167_v4 }
   0x4   :  { %8 = vsyncpa [#allocation3], 0  ;;  %v190_v9 = vld [vmem:[%s278_s1 + $0x10] sm:$0xff]   ;;  %v191_v16 = vld [vmem:[%s278_s1 + $0x18] sm:$0xff]   ;;  %vm67_vm2 = vcmask 1041409   ;;  %s218_s24 = smov [#allocation2]  }
   0x5   :  { %v25_v10 = vsel %vm24_vm1, %v161_v5, 0.0  ;;  %v26_v11 = vsel %vm24_vm1, %v162_v6, 0.0  ;;  %v34_v12 = vsel %vm24_vm1, %v165_v7, 0.0  ;;  %v35_v13 = vsel %vm24_vm1, %v166_v8, 0.0  ;;  %v153_v37 = vld [vmem:[%s279_s2] ss:$0 sm:$0xff] }
   0x6   :  { %176 = vmatpush3.bf16.msra.mxu0 %v189_v2  ;;  %v27_v14 = vadd.f32 %v26_v11, %v25_v10  ;;  %v36_v15 = vadd.f32 %v35_v13, %v34_v12  ;;  %s145_s25 = sshll.u32 %s218_s24, 4  ;;  %vm137_vm3 = vcmask 74752   ;;  %s146_s25 = int_to_ptr.vmem [resolvable:$true] %s145_s25 }
   0x7   :  { %177 = vmatprep.subr.bf16.mxu0 %v216_v1  ;;  %s192_s26 = scalar_lea.vmem %s146_s25, 32  ;;  %p197_p1 = scmp.lt.s32.totalorder %s146_s25, %s146_s25 }
   0x8   :  { %v28_v17 = vrot.slane %v27_v14, 4  ;;  %v37_v18 = vrot.slane %v36_v15, 4  ;;  %p193_p0 = scmp.ne.s32.totalorder %s146_s25, %s192_s26  ;;  %p198_p2 = scmp.lt.s32.totalorder %s192_s26, %s192_s26 }
   0xa   :  { %178 = vmatpush3.bf16.msra.mxu0 %v190_v9  ;;  %v29_v19 = vadd.f32 %v28_v17, %v27_v14  ;;  %v38_v20 = vadd.f32 %v37_v18, %v36_v15  ;;  %p199_p3 = por %p198_p2, %p197_p1 }
   0xb   :  { %179 = vmatprep.subr.bf16.mxu0 %v216_v1 }
   0xc   :  { %v30_v21 = vrot.slane %v29_v19, 2  ;;  %v39_v22 = vrot.slane %v38_v20, 2  ;;  %p200_p4 = pnand %p199_p3, %p193_p0 }
   0xe   :  { %180 = vmatpush3.bf16.msra.mxu0 %v191_v16  ;;  %v31_v23 = vadd.f32 %v30_v21, %v29_v19  ;;  %v40_v24 = vadd.f32 %v39_v22, %v38_v20 }
  0x10   :  { %v32_v25 = vrot.slane %v31_v23, 1  ;;  %v41_v26 = vrot.slane %v40_v24, 1 }
  0x12   :  { %v33_v27 = vadd.f32 %v32_v25, %v31_v23  ;;  %v42_v28 = vadd.f32 %v41_v26, %v40_v24 }
  0x14   :  { %v44_v29 = vmul.f32 0.0625, %v33_v27  ;;  %v45_v30 = vmul.f32 0.0625, %v42_v28 }
  0x16   :  { %v46_v31 = vpack.c.bf16 %v44_v29, %v44_v29  ;;  %v47_v32 = vpack.c.bf16 %v45_v30, %v45_v30 }
  0x18   :  { %v65_v33 = vunpack.c.l.b16 %v46_v31  ;;  %v66_v34 = vunpack.c.l.b16 %v47_v32 }
  0x1a   :  { %v68_v35 = vsel %vm67_vm2, %v66_v34, %v65_v33 }
  0x1b   :  { %v69_v36 = vpack.c.b16 %v68_v35, %v68_v35 }
  0x1d   :  { %182 = vmatmul.mubr.msk.bf16.vlgmr.msra.gmra.mrb[0].mxu0 %vm24_vm1, %v69_v36 }
  0xf0   :  { %v131_v38 = vpop.f32.mrb[0].mxu0 }
  0xf1   :  { %v132_v39 = vadd.f32 %v153_v37, %v131_v38  ;;  %v183_v40 = vpop.f32.mrb[1].mxu0 }
  0xf2   :  { %v134_v41 = vpop.f32.mrb[2].mxu0 }
  0xf3   :  { %v184_v42 = vpop.f32.mrb[3].mxu0  ;;  %138 = vst.msk [vmem:[#allocation2] sm:$0x3] %vm137_vm3, %v132_v39 }
  0xf4   :  { %203 = shalt.err (!%p200_p4)
}
  0xf5   :  { %s204_s2 = scalar_lea.hbm %s280_s3, 32 }
  0xf6   :  { %p205_p5 = scmp.ne.s32.totalorder %s280_s3, %s204_s2  ;;  %p208_p6 = scmp.lt.u32.totalorder %s204_s2, %s280_s3 }
  0xf8   :  { %p210_p7 = pnand %p208_p6, %p205_p5 }
  0xfa   :  { %213 = shalt.err (!%p210_p7)
}
  0xfb   :  { %148 = dma.vmem_to_hbm [thread:$0]  %s146_s25, 32, %s280_s3, [#allocation3]  }
  0xfc   :  { %214 = dma.done.wait [#allocation3], 32  }
  0xfd   :  { %215 = vsyncadd [#allocation3], 4294967264 }
  0xfe   :  { %152 = vsyncpa [#allocation3], 1 }

// kernel: resnet2_forward.25
= control target key start
LH: loop header
LB: loop body
LE: loop exit
PB: predicated region body
PF: predicated region fallthrough
CT: control target
= control target key end

     0   :  { %vm372_vm0 = vcmask 523264   ;;  %vm546_vm1 = vcmask 519168   ;;  %s909_s1 = inlined_call_operand.vmem [shape: bf16[576,64], index: 1, kind: input, shape index: {}]   ;;  %s910_s0 = inlined_call_operand.vmem [shape: bf16[32,576], index: 0, kind: input, shape index: {}]   ;;  %s911_s2 = inlined_call_operand.vmem [shape: f32[1,64], index: 2, kind: input, shape index: {}]   ;;  %s912_s3 = inlined_call_operand.vmem [shape: bf16[32,64], index: 3, kind: output, shape index: {}]  }
   0x1   :  { %v686_v0 = vld [vmem:[%s909_s1 + $0x40] sm:$0xff]   ;;  %v690_v4 = vld [vmem:[%s909_s1 + $0x48] sm:$0xff]   ;;  %v694_v8 = vld [vmem:[%s909_s1 + $0x50] sm:$0xff]  }
   0x2   :  { %v687_v1 = vld [vmem:[%s909_s1] sm:$0xff]   ;;  %612 = vmatprep.subr.bf16.mxu0 %v686_v0  ;;  %v691_v5 = vld [vmem:[%s909_s1 + $0x8] sm:$0xff]   ;;  %v695_v9 = vld [vmem:[%s909_s1 + $0x10] sm:$0xff]  }
   0x3   :  { %v688_v2 = vld [vmem:[%s909_s1 + $0xc0] sm:$0xff]   ;;  %613 = vmatpush3.bf16.msra.mxu0 %v687_v1  ;;  %v692_v6 = vld [vmem:[%s909_s1 + $0xc8] sm:$0xff]   ;;  %v696_v10 = vld [vmem:[%s909_s1 + $0xd0] sm:$0xff]  }
   0x4   :  { %v689_v3 = vld [vmem:[%s909_s1 + $0x80] sm:$0xff]   ;;  %640 = vmatprep.subr.bf16.mxu1 %v688_v2  ;;  %614 = vmatprep.subr.bf16.mxu0 %v690_v4  ;;  %v693_v7 = vld [vmem:[%s909_s1 + $0x88] sm:$0xff]   ;;  %v697_v11 = vld [vmem:[%s909_s1 + $0x90] sm:$0xff]  }
   0x5   :  { %641 = vmatpush3.bf16.msra.mxu1 %v689_v3  ;;  %v698_v12 = vld [vmem:[%s909_s1 + $0x58] sm:$0xff]   ;;  %v702_v16 = vld [vmem:[%s909_s1 + $0x60] sm:$0xff]   ;;  %v706_v20 = vld [vmem:[%s909_s1 + $0x68] sm:$0xff]  }
   0x6   :  { %642 = vmatprep.subr.bf16.mxu1 %v692_v6  ;;  %v699_v13 = vld [vmem:[%s909_s1 + $0x18] sm:$0xff]   ;;  %v703_v17 = vld [vmem:[%s909_s1 + $0x20] sm:$0xff]   ;;  %v707_v21 = vld [vmem:[%s909_s1 + $0x28] sm:$0xff]  }
   0x7   :  { %615 = vmatpush3.bf16.msra.mxu0 %v691_v5  ;;  %v700_v14 = vld [vmem:[%s909_s1 + $0xd8] sm:$0xff]   ;;  %v704_v18 = vld [vmem:[%s909_s1 + $0xe0] sm:$0xff]   ;;  %v708_v22 = vld [vmem:[%s909_s1 + $0xe8] sm:$0xff]  }
   0x8   :  { %616 = vmatprep.subr.bf16.mxu0 %v694_v8  ;;  %v701_v15 = vld [vmem:[%s909_s1 + $0x98] sm:$0xff]   ;;  %v705_v19 = vld [vmem:[%s909_s1 + $0xa0] sm:$0xff]   ;;  %v709_v23 = vld [vmem:[%s909_s1 + $0xa8] sm:$0xff]  }
   0x9   :  { %643 = vmatpush3.bf16.msra.mxu1 %v693_v7  ;;  %v710_v24 = vld [vmem:[%s909_s1 + $0x70] sm:$0xff]   ;;  %v714_v28 = vld [vmem:[%s909_s1 + $0x78] sm:$0xff]   ;;  %v721_v34 = vld [vmem:[%s909_s1 + $0x100] sm:$0xff]  }
   0xa   :  { %644 = vmatprep.subr.bf16.mxu1 %v696_v10  ;;  %v711_v25 = vld [vmem:[%s909_s1 + $0x30] sm:$0xff]   ;;  %v715_v29 = vld [vmem:[%s909_s1 + $0x38] sm:$0xff]   ;;  %v724_v36 = vld [vmem:[%s910_s0 + $0xc] ss:$20 sps:$4 sm:$0xff]  }
   0xb   :  { %617 = vmatpush3.bf16.msra.mxu0 %v695_v9  ;;  %v712_v26 = vld [vmem:[%s909_s1 + $0xf0] sm:$0xff]   ;;  %v716_v30 = vld [vmem:[%s909_s1 + $0xf8] sm:$0xff]   ;;  %v725_v37 = vld [vmem:[%s909_s1 + $0x108] sm:$0xff]   ;;  %460 = vmatprep.mubr.bf16.mxu1 %v724_v36 }
   0xc   :  { %618 = vmatprep.subr.bf16.mxu0 %v698_v12  ;;  %v713_v27 = vld [vmem:[%s909_s1 + $0xb0] sm:$0xff]   ;;  %v719_v32 = vld [vmem:[%s910_s0 + $0x4] ss:$20 sps:$4 sm:$0xff]   ;;  %v722_v35 = vld [vmem:[%s910_s0 + $0x8] ss:$20 sps:$4 sm:$0xff]  }
   0xd   :  { %645 = vmatpush3.bf16.msra.mxu1 %v697_v11  ;;  %v717_v31 = vld [vmem:[%s910_s0] ss:$20 sps:$4 sm:$0xff]   ;;  %v720_v33 = vld [vmem:[%s909_s1 + $0xb8] sm:$0xff]   ;;  %411 = vmatprep.mubr.bf16.mxu0 %v719_v32  ;;  %v732_v42 = vld [vmem:[%s910_s0 + $0x30] ss:$20 sps:$4 sm:$0xff]  }
   0xe   :  { %646 = vmatprep.subr.bf16.mxu1 %v700_v14  ;;  %v726_v38 = vld [vmem:[%s910_s0 + $0x2c] ss:$20 sps:$4 sm:$0xff]   ;;  %v728_v39 = vld [vmem:[%s910_s0 + $0x28] ss:$20 sps:$4 sm:$0xff]   ;;  %v729_v40 = vld [vmem:[%s909_s1 + $0x110] sm:$0xff]  }
   0xf   :  { %619 = vmatpush3.bf16.msra.mxu0 %v699_v13  ;;  %v730_v41 = vld [vmem:[%s910_s0 + $0x34] ss:$20 sps:$4 sm:$0xff]   ;;  %v733_v43 = vld [vmem:[%s909_s1 + $0x118] sm:$0xff]   ;;  %v734_v44 = vld [vmem:[%s910_s0 + $0x10] ss:$20 sps:$4 sm:$0xff]  }
  0x10   :  { %620 = vmatprep.subr.bf16.mxu0 %v702_v16  ;;  %v735_v45 = vld [vmem:[%s910_s0 + $0x38] ss:$20 sps:$4 sm:$0xff]   ;;  %v555_v47 = vld [vmem:[%s911_s2] ss:$0 sm:$0xff] }
  0x11   :  { %647 = vmatpush3.bf16.msra.mxu1 %v701_v15 }
  0x12   :  { %648 = vmatprep.subr.bf16.mxu1 %v704_v18 }
  0x13   :  { %621 = vmatpush3.bf16.msra.mxu0 %v703_v17 }
  0x14   :  { %622 = vmatprep.subr.bf16.mxu0 %v706_v20 }
  0x15   :  { %649 = vmatpush3.bf16.msra.mxu1 %v705_v19 }
  0x16   :  { %650 = vmatprep.subr.bf16.mxu1 %v708_v22 }
  0x17   :  { %623 = vmatpush3.bf16.msra.mxu0 %v707_v21 }
  0x18   :  { %624 = vmatprep.subr.bf16.mxu0 %v710_v24 }
  0x19   :  { %651 = vmatpush3.bf16.msra.mxu1 %v709_v23 }
  0x1a   :  { %652 = vmatprep.subr.bf16.mxu1 %v712_v26 }
  0x1b   :  { %625 = vmatpush3.bf16.msra.mxu0 %v711_v25 }
  0x1c   :  { %626 = vmatprep.subr.bf16.mxu0 %v714_v28 }
  0x1d   :  { %653 = vmatpush3.bf16.msra.mxu1 %v713_v27 }
  0x1e   :  { %654 = vmatprep.subr.bf16.mxu1 %v716_v30 }
  0x1f   :  { %627 = vmatpush3.bf16.msra.mxu0 %v715_v29 }
  0x20   :  { %674 = vmatprep.subr.bf16.mxu0 %v721_v34 }
  0x21   :  { %655 = vmatpush3.bf16.msra.mxu1 %v720_v33 }
  0x22   :  { %412 = vmatmul.mubr.bf16.vlgmr.msra.gmra.mrb[0].mxu0 %v717_v31 }
  0x23   :  { %675 = vmatpush3.bf16.msra.mxu0 %v721_v34  ;;  %419 = vmatprep.mubr.bf16.mxu0 %v726_v38 }
  0x24   :  { %461 = vmatmul.mubr.bf16.vlgmr.msra.gmra.mrb[0].mxu1 %v722_v35  ;;  %676 = vmatprep.subr.bf16.mxu0 %v725_v37 }
  0x25   :  { %468 = vmatprep.mubr.bf16.mxu1 %v730_v41 }
  0x27   :  { %677 = vmatpush3.bf16.msra.mxu0 %v725_v37 }
  0x28   :  { %678 = vmatprep.subr.bf16.mxu0 %v729_v40 }
  0x2a   :  { %420 = vmatmul.mubr.bf16.gmra.mrb[4].mxu0 %v728_v39 }
  0x2b   :  { %682 = vmatprep.mubr.msk.bf16.mxu0 %vm372_vm0, %v734_v44  ;;  %679 = vmatpush3.bf16.msra.mxu0 %v729_v40 }
  0x2c   :  { %469 = vmatmul.mubr.bf16.gmra.mrb[4].mxu1 %v732_v42  ;;  %680 = vmatprep.subr.bf16.mxu0 %v733_v43 }
  0x2f   :  { %681 = vmatpush3.bf16.msra.mxu0 %v733_v43 }
  0x32   :  { %683 = vmatmul.mubr.msk.bf16.vlgmr.msra.gmra.mrb[8].mxu0 %vm372_vm0, %v735_v45 }
  0xf5   :  { %v628_v46 = vpop.f32.mrb[0].mxu0 }
  0xf6   :  { %v629_v48 = vpop.f32.mrb[1].mxu0 }
  0xf7   :  { %v630_v49 = vadd.f32 %v629_v48, %v628_v46  ;;  %v631_v50 = vpop.f32.mrb[2].mxu0  ;;  %v656_v51 = vpop.f32.mrb[0].mxu1 }
  0xf8   :  { %v632_v52 = vpop.f32.mrb[3].mxu0  ;;  %v657_v55 = vpop.f32.mrb[1].mxu1 }
  0xf9   :  { %v414_v53 = vadd.f32 %v630_v49, %v555_v47  ;;  %v633_v54 = vadd.f32 %v632_v52, %v631_v50  ;;  %v658_v56 = vadd.f32 %v657_v55, %v656_v51  ;;  %v659_v57 = vpop.f32.mrb[2].mxu1 }
  0xfa   :  { %v660_v59 = vpop.f32.mrb[3].mxu1 }
  0xfb   :  { %v417_v58 = vadd.f32 %v633_v54, %v555_v47  ;;  %v661_v60 = vadd.f32 %v660_v59, %v659_v57  ;;  %v463_v61 = vadd.f32 %v658_v56, %v414_v53 }
  0xfd   :  { %v634_v62 = vpop.f32.mrb[4].mxu0  ;;  %v466_v0 = vadd.f32 %v661_v60, %v417_v58 }
  0xfe   :  { %v635_v63 = vpop.f32.mrb[5].mxu0 }
  0xff   :  { %v636_v1 = vadd.f32 %v635_v63, %v634_v62  ;;  %v637_v2 = vpop.f32.mrb[6].mxu0  ;;  %v662_v3 = vpop.f32.mrb[4].mxu1 }
 0x100   :  { %v638_v4 = vpop.f32.mrb[7].mxu0  ;;  %v663_v7 = vpop.f32.mrb[5].mxu1 }
 0x101   :  { %v422_v5 = vadd.f32 %v636_v1, %v555_v47  ;;  %v639_v6 = vadd.f32 %v638_v4, %v637_v2  ;;  %v664_v8 = vadd.f32 %v663_v7, %v662_v3  ;;  %v665_v9 = vpop.f32.mrb[6].mxu1 }
 0x102   :  { %v666_v11 = vpop.f32.mrb[7].mxu1 }
 0x103   :  { %v425_v10 = vadd.f32 %v639_v6, %v555_v47  ;;  %v667_v12 = vadd.f32 %v666_v11, %v665_v9  ;;  %v471_v13 = vadd.f32 %v664_v8, %v422_v5 }
 0x105   :  { %v684_v14 = vpop.f32.mrb[8].mxu0  ;;  %v474_v15 = vadd.f32 %v667_v12, %v425_v10 }
 0x106   :  { %v520_v16 = vadd.f32 %v684_v14, %v471_v13  ;;  %v511_v17 = vpop.f32.mrb[9].mxu0 }
 0x107   :  { %v512_v18 = vadd.f32 %v511_v17, %v463_v61  ;;  %v685_v19 = vpop.f32.mrb[10].mxu0 }
 0x108   :  { %v528_v20 = vmax.f32 %v520_v16, 0.0  ;;  %v523_v21 = vadd.f32 %v685_v19, %v474_v15  ;;  %v514_v22 = vpop.f32.mrb[11].mxu0 }
 0x109   :  { %v526_v23 = vmax.f32 %v512_v18, 0.0  ;;  %v515_v24 = vadd.f32 %v514_v22, %v466_v0 }
 0x10a   :  { %v610_v25 = vpack.c.bf16 %v528_v20, %v528_v20  ;;  %v529_v26 = vmax.f32 %v523_v21, 0.0 }
 0x10b   :  { %v608_v27 = vpack.c.bf16 %v526_v23, %v526_v23  ;;  %v527_v28 = vmax.f32 %v515_v24, 0.0 }
 0x10c   :  { %549 = vst.msk [vmem:[%s912_s3 + $0x8] sm:$0xf] %vm546_vm1, %v610_v25  ;;  %v611_v29 = vpack.c.bf16 %v529_v26, %v529_v26 }
 0x10d   :  { %547 = vst.msk [vmem:[%s912_s3] sm:$0xf] %vm546_vm1, %v608_v27  ;;  %v609_v30 = vpack.c.bf16 %v527_v28, %v527_v28 }
 0x10e   :  { %550 = vst.msk [vmem:[%s912_s3 + $0xc] sm:$0xf] %vm546_vm1, %v611_v29 }
 0x10f   :  { %548 = vst.msk [vmem:[%s912_s3 + $0x4] sm:$0xf] %vm546_vm1, %v609_v30 }

</bundles_post_ra>
